<compile_context>
chip_gen: v5e
topology: v5e:2x2
jax: 0.10.0
libtpu: 0.0.40
codegen_flags: <defaults>
</compile_context>

<pallas_src>
import functools

import jax
import jax.numpy as jnp
from jax.experimental import pallas as pl
from jax.experimental.pallas import tpu as pltpu

LANE = 128
SUBLANE = 8


def _round_up(x, m):
    return (x + m - 1) // m * m


def _zero_map(nd):
    return lambda i: (0,) * nd


# ---------------------------------------------------------------- kernel math
def _lstm_cell_pergate(gx_i, gx_f, gx_g, gx_o, h, c, whh):
    """One LSTM cell step; input projection (incl. bias) already folded into gx_*."""
    gi = gx_i + jnp.dot(h, whh[0], preferred_element_type=jnp.float32)
    gf = gx_f + jnp.dot(h, whh[1], preferred_element_type=jnp.float32)
    gg = gx_g + jnp.dot(h, whh[2], preferred_element_type=jnp.float32)
    go = gx_o + jnp.dot(h, whh[3], preferred_element_type=jnp.float32)
    i = jax.nn.sigmoid(gi)
    f = jax.nn.sigmoid(gf)
    g = jnp.tanh(gg)
    o = jax.nn.sigmoid(go)
    c_new = f * c + i * g
    h_new = o * jnp.tanh(c_new)
    return h_new, c_new


def _bilstm_last(x2d, wih, whh, b, st, T, Bp):
    """Bidirectional LSTM "last timestep" output.

    x2d: (T*Bp, E) time-major flattened input.
    wih: (2, 4, E, H)   [dir, gate]   whh: (2, 4, H, H)
    b:   (2, 4, 1, H)                 st:  (2, 2, Bp, H)  [h/c, dir]
    Returns (h_forward_final, h_backward_at_last_pos), each (Bp, H).
    """
    # ---- forward direction: hoisted input projection, bias folded in --------
    xw = [jnp.dot(x2d, wih[0, k], preferred_element_type=jnp.float32) + b[0, k]
          for k in range(4)]                      # each (T*Bp, H)
    whh_f = [whh[0, k] for k in range(4)]
    h = st[0, 0]
    c = st[1, 0]
    for t in range(T):                            # T is small & static -> unrolled
        lo = t * Bp                               # sublane-aligned (Bp multiple of 8)
        h, c = _lstm_cell_pergate(
            xw[0][lo:lo + Bp], xw[1][lo:lo + Bp],
            xw[2][lo:lo + Bp], xw[3][lo:lo + Bp],
            h, c, whh_f)

    # ---- backward direction at output position T-1 == one step on x[T-1] ----
    x_last = x2d[(T - 1) * Bp:T * Bp]
    gx_b = [jnp.dot(x_last, wih[1, k], preferred_element_type=jnp.float32) + b[1, k]
            for k in range(4)]
    whh_b = [whh[1, k] for k in range(4)]
    hb, _ = _lstm_cell_pergate(gx_b[0], gx_b[1], gx_b[2], gx_b[3],
                               st[0, 1], st[1, 1], whh_b)
    return h, hb


def diacritics_kernel(char_ref, word_ref, sent_ref,
                      c_wih_ref, c_whh_ref, c_b_ref, c_st_ref,
                      s_wih_ref, s_whh_ref, s_b_ref, s_st_ref,
                      dwc_ref, dww_ref, dws_ref, db_ref,
                      out_ref, *, Tc, Ts, Bp):
    h_cf, h_cb = _bilstm_last(char_ref[...], c_wih_ref[...], c_whh_ref[...],
                              c_b_ref[...], c_st_ref[...], Tc, Bp)
    h_sf, h_sb = _bilstm_last(sent_ref[...], s_wih_ref[...], s_whh_ref[...],
                              s_b_ref[...], s_st_ref[...], Ts, Bp)

    dwc = dwc_ref[...]          # (2, Hc, Cp)
    dws = dws_ref[...]          # (2, Hs, Cp)
    # dropout: inference mode -> identity
    # Dense layer as a sum of row-block matmuls (no in-kernel concatenation).
    out_ref[...] = (jnp.dot(h_cf, dwc[0], preferred_element_type=jnp.float32)
                    + jnp.dot(h_cb, dwc[1], preferred_element_type=jnp.float32)
                    + jnp.dot(word_ref[...], dww_ref[...],
                              preferred_element_type=jnp.float32)
                    + jnp.dot(h_sf, dws[0], preferred_element_type=jnp.float32)
                    + jnp.dot(h_sb, dws[1], preferred_element_type=jnp.float32)
                    + db_ref[...])


# ---------------------------------------------------------------- host packing
def _split_gates(w, H):
    # (..., 4H) -> (4, ..., H), torch gate order (i, f, g, o)
    return jnp.stack([w[..., k * H:(k + 1) * H] for k in range(4)], axis=0)


def _pack_lstm(p, pre, H, B, Bp):
    wih = jnp.stack([_split_gates(p[f"{pre}_wih_f"], H),
                     _split_gates(p[f"{pre}_wih_b"], H)], axis=0)   # (2,4,E,H)
    whh = jnp.stack([_split_gates(p[f"{pre}_whh_f"], H),
                     _split_gates(p[f"{pre}_whh_b"], H)], axis=0)   # (2,4,H,H)
    b = jnp.stack([_split_gates(p[f"{pre}_b_f"], H),
                   _split_gates(p[f"{pre}_b_b"], H)], axis=0)       # (2,4,1,H)

    def pad_state(x):
        return jnp.zeros((Bp, H), jnp.float32).at[:B].set(x)

    st = jnp.stack(
        [jnp.stack([pad_state(p[f"{pre}_h0_f"]), pad_state(p[f"{pre}_h0_b"])], 0),
         jnp.stack([pad_state(p[f"{pre}_c0_f"]), pad_state(p[f"{pre}_c0_b"])], 0)],
        axis=0)                                                      # (2,2,Bp,H)
    return wih, whh, b, st


def _pack_dense(p, Hc, We, Hs, Cp):
    W = p["dense_w"]                       # (2Hc + We + 2Hs, nr_classes)
    nc = W.shape[-1]
    Wp = jnp.zeros((W.shape[0], Cp), jnp.float32).at[:, :nc].set(W)  # lane-pad
    o = 0
    w_cf = Wp[o:o + Hc]; o += Hc
    w_cb = Wp[o:o + Hc]; o += Hc
    w_word = Wp[o:o + We]; o += We
    w_sf = Wp[o:o + Hs]; o += Hs
    w_sb = Wp[o:o + Hs]; o += Hs
    d_w_c = jnp.stack([w_cf, w_cb], axis=0)       # (2, Hc, Cp)
    d_w_s = jnp.stack([w_sf, w_sb], axis=0)       # (2, Hs, Cp)
    d_b = jnp.zeros((1, Cp), jnp.float32).at[:, :nc].set(p["dense_b"])
    return d_w_c, w_word, d_w_s, d_b


# ---------------------------------------------------------------- wrapper
def diacritics_forward(char_emb, word_emb, sent_emb, params):
    B, Tc, _ = char_emb.shape
    _, Ts, We = sent_emb.shape
    Hc = params["c_whh_f"].shape[0]
    Hs = params["s_whh_f"].shape[0]
    nr_classes = params["dense_b"].shape[-1]

    Bp = _round_up(max(B, SUBLANE), SUBLANE)      # pad batch to sublane multiple
    Cp = _round_up(max(nr_classes, LANE), LANE)   # lane-dense output

    c_wih, c_whh, c_b, c_st = _pack_lstm(params, "c", Hc, B, Bp)
    s_wih, s_whh, s_b, s_st = _pack_lstm(params, "s", Hs, B, Bp)
    d_w_c, d_w_word, d_w_s, d_b = _pack_dense(params, Hc, We, Hs, Cp)

    def pad_time_major(x):                        # (B, T, E) -> (T*Bp, E)
        _, T, E = x.shape
        xp = jnp.zeros((Bp, T, E), jnp.float32).at[:B].set(x)
        return jnp.transpose(xp, (1, 0, 2)).reshape(T * Bp, E)

    char_x = pad_time_major(char_emb.astype(jnp.float32))
    sent_x = pad_time_major(sent_emb.astype(jnp.float32))
    word_x = jnp.zeros((Bp, We), jnp.float32).at[:B].set(word_emb)

    inputs = [char_x, word_x, sent_x,
              c_wih, c_whh, c_b, c_st,
              s_wih, s_whh, s_b, s_st,
              d_w_c, d_w_word, d_w_s, d_b]

    kernel = functools.partial(diacritics_kernel, Tc=Tc, Ts=Ts, Bp=Bp)

    out = pl.pallas_call(
        kernel,
        out_shape=jax.ShapeDtypeStruct((Bp, Cp), jnp.float32),
        grid=(1,),
        in_specs=[pl.BlockSpec(a.shape, _zero_map(a.ndim)) for a in inputs],
        out_specs=pl.BlockSpec((Bp, Cp), lambda i: (0, 0)),
        compiler_params=pltpu.CompilerParams(
            dimension_semantics=("arbitrary",)),
    )(*inputs)

    return out[:B, :nr_classes]


# ---------------------------------------------------------------- params
def init_params(key, *, Ec, We, Hc, Hs, B, nr_classes, vocab):
    ks = list(jax.random.split(key, 16))

    def unif(k, shape, scale):
        return jax.random.uniform(k, shape, jnp.float32, -scale, scale)

    def lstm_dir(k, E, H):
        k1, k2, k3 = jax.random.split(k, 3)
        s = 1.0 / jnp.sqrt(H)
        return (unif(k1, (E, 4 * H), s),          # W_ih^T  (gate order i,f,g,o)
                unif(k2, (H, 4 * H), s),          # W_hh^T
                unif(k3, (1, 4 * H), 2.0 * s))    # b_ih + b_hh combined

    def xav_state(k, B_, H):
        # xavier_normal_ on a (2, B, H) tensor: fan_in = B*H, fan_out = 2*H
        std = jnp.sqrt(2.0 / (B_ * H + 2 * H))
        return jax.random.normal(k, (B_, H), jnp.float32) * std

    p = {}
    p["c_wih_f"], p["c_whh_f"], p["c_b_f"] = lstm_dir(ks[0], Ec, Hc)
    p["c_wih_b"], p["c_whh_b"], p["c_b_b"] = lstm_dir(ks[1], Ec, Hc)
    p["c_h0_f"] = xav_state(ks[2], B, Hc)
    p["c_c0_f"] = xav_state(ks[3], B, Hc)
    p["c_h0_b"] = xav_state(ks[4], B, Hc)
    p["c_c0_b"] = xav_state(ks[5], B, Hc)

    p["s_wih_f"], p["s_whh_f"], p["s_b_f"] = lstm_dir(ks[6], We, Hs)
    p["s_wih_b"], p["s_whh_b"], p["s_b_b"] = lstm_dir(ks[7], We, Hs)
    p["s_h0_f"] = xav_state(ks[8], B, Hs)
    p["s_c0_f"] = xav_state(ks[9], B, Hs)
    p["s_h0_b"] = xav_state(ks[10], B, Hs)
    p["s_c0_b"] = xav_state(ks[11], B, Hs)

    concat = 2 * Hc + We + 2 * Hs
    sd = 1.0 / jnp.sqrt(concat)
    p["dense_w"] = unif(ks[12], (concat, nr_classes), sd)   # W^T
    p["dense_b"] = unif(ks[13], (1, nr_classes), sd)

    emb_table = jax.random.normal(ks[14], (vocab, Ec), jnp.float32)
    emb_table = emb_table.at[0].set(0.0)   # padding_idx = 0
    return p, emb_table


# ---------------------------------------------------------------- reference
def _hdot(a, b):
    return jnp.dot(a, b, precision=jax.lax.Precision.HIGHEST)


def _ref_lstm_cell(x, h, c, wih, whh, b, H):
    gates = _hdot(x, wih) + _hdot(h, whh) + b
    i = jax.nn.sigmoid(gates[:, 0 * H:1 * H])
    f = jax.nn.sigmoid(gates[:, 1 * H:2 * H])
    g = jnp.tanh(gates[:, 2 * H:3 * H])
    o = jax.nn.sigmoid(gates[:, 3 * H:4 * H])
    c_new = f * c + i * g
    h_new = o * jnp.tanh(c_new)
    return h_new, c_new


def _ref_bilstm_last(x, wih_f, whh_f, b_f, h0_f, c0_f,
                     wih_b, whh_b, b_b, h0_b, c0_b, H, T):
    h, c = h0_f, c0_f
    for t in range(T):
        h, c = _ref_lstm_cell(x[:, t, :], h, c, wih_f, whh_f, b_f, H)
    hb, _ = _ref_lstm_cell(x[:, T - 1, :], h0_b, c0_b, wih_b, whh_b, b_b, H)
    return jnp.concatenate([h, hb], axis=-1)


def reference(char_emb, word_emb, sent_emb, p):
    """Pure-JAX reference in the un-split / un-padded layout (full-width gates)."""
    _, Tc, _ = char_emb.shape
    _, Ts, _ = sent_emb.shape
    Hc = p["c_whh_f"].shape[0]
    Hs = p["s_whh_f"].shape[0]
    char_last = _ref_bilstm_last(
        char_emb,
        p["c_wih_f"], p["c_whh_f"], p["c_b_f"], p["c_h0_f"], p["c_c0_f"],
        p["c_wih_b"], p["c_whh_b"], p["c_b_b"], p["c_h0_b"], p["c_c0_b"], Hc, Tc)
    sent_last = _ref_bilstm_last(
        sent_emb,
        p["s_wih_f"], p["s_whh_f"], p["s_b_f"], p["s_h0_f"], p["s_c0_f"],
        p["s_wih_b"], p["s_whh_b"], p["s_b_b"], p["s_h0_b"], p["s_c0_b"], Hs, Ts)
    concat = jnp.concatenate([char_last, word_emb, sent_last], axis=-1)
    return _hdot(concat, p["dense_w"]) + p["dense_b"]


# ---------------------------------------------------------------- main
if __name__ == "__main__":
    # small but structurally faithful sizes
    B = 2
    character_window, sentence_window = 3, 3
    Tc = 2 * character_window + 1          # 7
    Ts = 2 * sentence_window + 1           # 7
    Ec = 16                                # character_embedding_size
    We = 64                                # word_embedding_size
    Hc = 32                                # characters_lstm_size
    Hs = 64                                # sentence_lstm_size
    vocab = 50                             # char_vocabulary_size
    nr_classes = 3

    key = jax.random.PRNGKey(0)
    k_in, k_p = jax.random.split(key)
    k1, k2, k3 = jax.random.split(k_in, 3)

    char_input = jax.random.randint(k1, (B, Tc), 1, vocab)            # int32 token ids
    word_embedding = jax.random.normal(k2, (B, We), jnp.float32)
    sentence_embedding = jax.random.normal(k3, (B, Ts, We), jnp.float32)

    params, emb_table = init_params(k_p, Ec=Ec, We=We, Hc=Hc, Hs=Hs,
                                    B=B, nr_classes=nr_classes, vocab=vocab)

    # embedding lookup (gather) done in plain JAX glue
    # TODO(synk): the torch module redraws xavier-normal (h0, c0) every forward;
    # here they are fixed deterministic parameters (documented deviation).
    char_emb = jnp.take(emb_table, char_input, axis=0)

    out = diacritics_forward(char_emb, word_embedding, sentence_embedding, params)
    out = jax.block_until_ready(out)

    ref = reference(char_emb, word_embedding, sentence_embedding, params)
    assert out.shape == (B, nr_classes)
    assert jnp.allclose(out, ref, atol=5e-4, rtol=5e-4), "mismatch vs pure-JAX ref"
    print("KERNEL_OK")
</pallas_src>

<mosaic_0001>
module attributes {stable_mosaic.version = 11 : i64} {
  func.func @diacritics_kernel(%arg0: i32, %arg1: memref<56x16xf32, #tpu.memory_space<vmem>>, %arg2: memref<8x64xf32, #tpu.memory_space<vmem>>, %arg3: memref<56x64xf32, #tpu.memory_space<vmem>>, %arg4: memref<2x4x16x32xf32, #tpu.memory_space<vmem>>, %arg5: memref<2x4x32x32xf32, #tpu.memory_space<vmem>>, %arg6: memref<2x4x1x32xf32, #tpu.memory_space<vmem>>, %arg7: memref<2x2x8x32xf32, #tpu.memory_space<vmem>>, %arg8: memref<2x4x64x64xf32, #tpu.memory_space<vmem>>, %arg9: memref<2x4x64x64xf32, #tpu.memory_space<vmem>>, %arg10: memref<2x4x1x64xf32, #tpu.memory_space<vmem>>, %arg11: memref<2x2x8x64xf32, #tpu.memory_space<vmem>>, %arg12: memref<2x32x128xf32, #tpu.memory_space<vmem>>, %arg13: memref<64x128xf32, #tpu.memory_space<vmem>>, %arg14: memref<2x64x128xf32, #tpu.memory_space<vmem>>, %arg15: memref<1x128xf32, #tpu.memory_space<vmem>>, %arg16: memref<8x128xf32, #tpu.memory_space<vmem>>) attributes {dimension_semantics = [#tpu.dimension_semantics<arbitrary>], iteration_bounds = array<i64: 1>, scalar_prefetch = 0 : i64, scratch_operands = 0 : i64, tpu.core_type = #tpu.core_type<tc>, window_params = [{pipeline_mode = #tpu.pipeline_mode<synchronous>, transform_indices = @transform_0, window_bounds = array<i64: 56, 16>}, {pipeline_mode = #tpu.pipeline_mode<synchronous>, transform_indices = @transform_1, window_bounds = array<i64: 8, 64>}, {pipeline_mode = #tpu.pipeline_mode<synchronous>, transform_indices = @transform_2, window_bounds = array<i64: 56, 64>}, {pipeline_mode = #tpu.pipeline_mode<synchronous>, transform_indices = @transform_3, window_bounds = array<i64: 2, 4, 16, 32>}, {pipeline_mode = #tpu.pipeline_mode<synchronous>, transform_indices = @transform_4, window_bounds = array<i64: 2, 4, 32, 32>}, {pipeline_mode = #tpu.pipeline_mode<synchronous>, transform_indices = @transform_5, window_bounds = array<i64: 2, 4, 1, 32>}, {pipeline_mode = #tpu.pipeline_mode<synchronous>, transform_indices = @transform_6, window_bounds = array<i64: 2, 2, 8, 32>}, {pipeline_mode = #tpu.pipeline_mode<synchronous>, transform_indices = @transform_7, window_bounds = array<i64: 2, 4, 64, 64>}, {pipeline_mode = #tpu.pipeline_mode<synchronous>, transform_indices = @transform_8, window_bounds = array<i64: 2, 4, 64, 64>}, {pipeline_mode = #tpu.pipeline_mode<synchronous>, transform_indices = @transform_9, window_bounds = array<i64: 2, 4, 1, 64>}, {pipeline_mode = #tpu.pipeline_mode<synchronous>, transform_indices = @transform_10, window_bounds = array<i64: 2, 2, 8, 64>}, {pipeline_mode = #tpu.pipeline_mode<synchronous>, transform_indices = @transform_11, window_bounds = array<i64: 2, 32, 128>}, {pipeline_mode = #tpu.pipeline_mode<synchronous>, transform_indices = @transform_12, window_bounds = array<i64: 64, 128>}, {pipeline_mode = #tpu.pipeline_mode<synchronous>, transform_indices = @transform_13, window_bounds = array<i64: 2, 64, 128>}, {pipeline_mode = #tpu.pipeline_mode<synchronous>, transform_indices = @transform_14, window_bounds = array<i64: 1, 128>}, {pipeline_mode = #tpu.pipeline_mode<synchronous>, transform_indices = @transform_15, window_bounds = array<i64: 8, 128>}]} {
    %c0 = arith.constant 0 : index
    %c0_0 = arith.constant 0 : index
    %0 = vector.load %arg1[%c0, %c0_0] : memref<56x16xf32, #tpu.memory_space<vmem>>, vector<56x16xf32>
    %c0_1 = arith.constant 0 : index
    %c0_2 = arith.constant 0 : index
    %c0_3 = arith.constant 0 : index
    %c0_4 = arith.constant 0 : index
    %1 = vector.load %arg4[%c0_1, %c0_2, %c0_3, %c0_4] : memref<2x4x16x32xf32, #tpu.memory_space<vmem>>, vector<2x4x16x32xf32>
    %c0_5 = arith.constant 0 : index
    %c0_6 = arith.constant 0 : index
    %c0_7 = arith.constant 0 : index
    %c0_8 = arith.constant 0 : index
    %2 = vector.load %arg5[%c0_5, %c0_6, %c0_7, %c0_8] : memref<2x4x32x32xf32, #tpu.memory_space<vmem>>, vector<2x4x32x32xf32>
    %c0_9 = arith.constant 0 : index
    %c0_10 = arith.constant 0 : index
    %c0_11 = arith.constant 0 : index
    %c0_12 = arith.constant 0 : index
    %3 = vector.load %arg6[%c0_9, %c0_10, %c0_11, %c0_12] : memref<2x4x1x32xf32, #tpu.memory_space<vmem>>, vector<2x4x1x32xf32>
    %c0_13 = arith.constant 0 : index
    %c0_14 = arith.constant 0 : index
    %c0_15 = arith.constant 0 : index
    %c0_16 = arith.constant 0 : index
    %4 = vector.load %arg7[%c0_13, %c0_14, %c0_15, %c0_16] : memref<2x2x8x32xf32, #tpu.memory_space<vmem>>, vector<2x2x8x32xf32>
    %5 = vector.extract_strided_slice %1 {offsets = [0, 0, 0, 0], sizes = [1, 1, 16, 32], strides = [1, 1, 1, 1]} : vector<2x4x16x32xf32> to vector<1x1x16x32xf32>
    %6 = vector.shape_cast %5 : vector<1x1x16x32xf32> to vector<16x32xf32>
    %cst = arith.constant dense<0.000000e+00> : vector<56x32xf32>
    %7 = tpu.matmul %0, %6, %cst {dimension_numbers = #tpu.dot_dimension_numbers<[1], [0], [0], [1], [0, 0, 1, 1], [], []>} : vector<56x16xf32>, vector<16x32xf32>, vector<56x32xf32> -> vector<56x32xf32>
    %8 = vector.extract_strided_slice %3 {offsets = [0, 0, 0, 0], sizes = [1, 1, 1, 32], strides = [1, 1, 1, 1]} : vector<2x4x1x32xf32> to vector<1x1x1x32xf32>
    %9 = vector.shape_cast %8 : vector<1x1x1x32xf32> to vector<1x32xf32>
    %10 = vector.broadcast %9 : vector<1x32xf32> to vector<56x32xf32>
    %11 = arith.addf %7, %10 : vector<56x32xf32>
    %12 = vector.extract_strided_slice %1 {offsets = [0, 1, 0, 0], sizes = [1, 1, 16, 32], strides = [1, 1, 1, 1]} : vector<2x4x16x32xf32> to vector<1x1x16x32xf32>
    %13 = vector.shape_cast %12 : vector<1x1x16x32xf32> to vector<16x32xf32>
    %cst_17 = arith.constant dense<0.000000e+00> : vector<56x32xf32>
    %14 = tpu.matmul %0, %13, %cst_17 {dimension_numbers = #tpu.dot_dimension_numbers<[1], [0], [0], [1], [0, 0, 1, 1], [], []>} : vector<56x16xf32>, vector<16x32xf32>, vector<56x32xf32> -> vector<56x32xf32>
    %15 = vector.extract_strided_slice %3 {offsets = [0, 1, 0, 0], sizes = [1, 1, 1, 32], strides = [1, 1, 1, 1]} : vector<2x4x1x32xf32> to vector<1x1x1x32xf32>
    %16 = vector.shape_cast %15 : vector<1x1x1x32xf32> to vector<1x32xf32>
    %17 = vector.broadcast %16 : vector<1x32xf32> to vector<56x32xf32>
    %18 = arith.addf %14, %17 : vector<56x32xf32>
    %19 = vector.extract_strided_slice %1 {offsets = [0, 2, 0, 0], sizes = [1, 1, 16, 32], strides = [1, 1, 1, 1]} : vector<2x4x16x32xf32> to vector<1x1x16x32xf32>
    %20 = vector.shape_cast %19 : vector<1x1x16x32xf32> to vector<16x32xf32>
    %cst_18 = arith.constant dense<0.000000e+00> : vector<56x32xf32>
    %21 = tpu.matmul %0, %20, %cst_18 {dimension_numbers = #tpu.dot_dimension_numbers<[1], [0], [0], [1], [0, 0, 1, 1], [], []>} : vector<56x16xf32>, vector<16x32xf32>, vector<56x32xf32> -> vector<56x32xf32>
    %22 = vector.extract_strided_slice %3 {offsets = [0, 2, 0, 0], sizes = [1, 1, 1, 32], strides = [1, 1, 1, 1]} : vector<2x4x1x32xf32> to vector<1x1x1x32xf32>
    %23 = vector.shape_cast %22 : vector<1x1x1x32xf32> to vector<1x32xf32>
    %24 = vector.broadcast %23 : vector<1x32xf32> to vector<56x32xf32>
    %25 = arith.addf %21, %24 : vector<56x32xf32>
    %26 = vector.extract_strided_slice %1 {offsets = [0, 3, 0, 0], sizes = [1, 1, 16, 32], strides = [1, 1, 1, 1]} : vector<2x4x16x32xf32> to vector<1x1x16x32xf32>
    %27 = vector.shape_cast %26 : vector<1x1x16x32xf32> to vector<16x32xf32>
    %cst_19 = arith.constant dense<0.000000e+00> : vector<56x32xf32>
    %28 = tpu.matmul %0, %27, %cst_19 {dimension_numbers = #tpu.dot_dimension_numbers<[1], [0], [0], [1], [0, 0, 1, 1], [], []>} : vector<56x16xf32>, vector<16x32xf32>, vector<56x32xf32> -> vector<56x32xf32>
    %29 = vector.extract_strided_slice %3 {offsets = [0, 3, 0, 0], sizes = [1, 1, 1, 32], strides = [1, 1, 1, 1]} : vector<2x4x1x32xf32> to vector<1x1x1x32xf32>
    %30 = vector.shape_cast %29 : vector<1x1x1x32xf32> to vector<1x32xf32>
    %31 = vector.broadcast %30 : vector<1x32xf32> to vector<56x32xf32>
    %32 = arith.addf %28, %31 : vector<56x32xf32>
    %33 = vector.extract_strided_slice %2 {offsets = [0, 0, 0, 0], sizes = [1, 1, 32, 32], strides = [1, 1, 1, 1]} : vector<2x4x32x32xf32> to vector<1x1x32x32xf32>
    %34 = vector.shape_cast %33 : vector<1x1x32x32xf32> to vector<32x32xf32>
    %35 = vector.extract_strided_slice %2 {offsets = [0, 1, 0, 0], sizes = [1, 1, 32, 32], strides = [1, 1, 1, 1]} : vector<2x4x32x32xf32> to vector<1x1x32x32xf32>
    %36 = vector.shape_cast %35 : vector<1x1x32x32xf32> to vector<32x32xf32>
    %37 = vector.extract_strided_slice %2 {offsets = [0, 2, 0, 0], sizes = [1, 1, 32, 32], strides = [1, 1, 1, 1]} : vector<2x4x32x32xf32> to vector<1x1x32x32xf32>
    %38 = vector.shape_cast %37 : vector<1x1x32x32xf32> to vector<32x32xf32>
    %39 = vector.extract_strided_slice %2 {offsets = [0, 3, 0, 0], sizes = [1, 1, 32, 32], strides = [1, 1, 1, 1]} : vector<2x4x32x32xf32> to vector<1x1x32x32xf32>
    %40 = vector.shape_cast %39 : vector<1x1x32x32xf32> to vector<32x32xf32>
    %41 = vector.extract_strided_slice %4 {offsets = [0, 0, 0, 0], sizes = [1, 1, 8, 32], strides = [1, 1, 1, 1]} : vector<2x2x8x32xf32> to vector<1x1x8x32xf32>
    %42 = vector.shape_cast %41 : vector<1x1x8x32xf32> to vector<8x32xf32>
    %43 = vector.extract_strided_slice %4 {offsets = [1, 0, 0, 0], sizes = [1, 1, 8, 32], strides = [1, 1, 1, 1]} : vector<2x2x8x32xf32> to vector<1x1x8x32xf32>
    %44 = vector.shape_cast %43 : vector<1x1x8x32xf32> to vector<8x32xf32>
    %45 = vector.extract_strided_slice %11 {offsets = [0, 0], sizes = [8, 32], strides = [1, 1]} : vector<56x32xf32> to vector<8x32xf32>
    %46 = vector.extract_strided_slice %18 {offsets = [0, 0], sizes = [8, 32], strides = [1, 1]} : vector<56x32xf32> to vector<8x32xf32>
    %47 = vector.extract_strided_slice %25 {offsets = [0, 0], sizes = [8, 32], strides = [1, 1]} : vector<56x32xf32> to vector<8x32xf32>
    %48 = vector.extract_strided_slice %32 {offsets = [0, 0], sizes = [8, 32], strides = [1, 1]} : vector<56x32xf32> to vector<8x32xf32>
    %cst_20 = arith.constant dense<0.000000e+00> : vector<8x32xf32>
    %49 = tpu.matmul %42, %34, %cst_20 {dimension_numbers = #tpu.dot_dimension_numbers<[1], [0], [0], [1], [0, 0, 1, 1], [], []>} : vector<8x32xf32>, vector<32x32xf32>, vector<8x32xf32> -> vector<8x32xf32>
    %50 = arith.addf %45, %49 : vector<8x32xf32>
    %cst_21 = arith.constant dense<0.000000e+00> : vector<8x32xf32>
    %51 = tpu.matmul %42, %36, %cst_21 {dimension_numbers = #tpu.dot_dimension_numbers<[1], [0], [0], [1], [0, 0, 1, 1], [], []>} : vector<8x32xf32>, vector<32x32xf32>, vector<8x32xf32> -> vector<8x32xf32>
    %52 = arith.addf %46, %51 : vector<8x32xf32>
    %cst_22 = arith.constant dense<0.000000e+00> : vector<8x32xf32>
    %53 = tpu.matmul %42, %38, %cst_22 {dimension_numbers = #tpu.dot_dimension_numbers<[1], [0], [0], [1], [0, 0, 1, 1], [], []>} : vector<8x32xf32>, vector<32x32xf32>, vector<8x32xf32> -> vector<8x32xf32>
    %54 = arith.addf %47, %53 : vector<8x32xf32>
    %cst_23 = arith.constant dense<0.000000e+00> : vector<8x32xf32>
    %55 = tpu.matmul %42, %40, %cst_23 {dimension_numbers = #tpu.dot_dimension_numbers<[1], [0], [0], [1], [0, 0, 1, 1], [], []>} : vector<8x32xf32>, vector<32x32xf32>, vector<8x32xf32> -> vector<8x32xf32>
    %56 = arith.addf %48, %55 : vector<8x32xf32>
    %57 = arith.negf %50 : vector<8x32xf32>
    %58 = math.exp %57 : vector<8x32xf32>
    %cst_24 = arith.constant 1.000000e+00 : f32
    %59 = vector.broadcast %cst_24 : f32 to vector<8x32xf32>
    %60 = arith.addf %59, %58 : vector<8x32xf32>
    %61 = arith.divf %59, %60 : vector<8x32xf32>
    %62 = arith.negf %52 : vector<8x32xf32>
    %63 = math.exp %62 : vector<8x32xf32>
    %cst_25 = arith.constant 1.000000e+00 : f32
    %64 = vector.broadcast %cst_25 : f32 to vector<8x32xf32>
    %65 = arith.addf %64, %63 : vector<8x32xf32>
    %66 = arith.divf %64, %65 : vector<8x32xf32>
    %67 = math.tanh %54 : vector<8x32xf32>
    %68 = arith.negf %56 : vector<8x32xf32>
    %69 = math.exp %68 : vector<8x32xf32>
    %cst_26 = arith.constant 1.000000e+00 : f32
    %70 = vector.broadcast %cst_26 : f32 to vector<8x32xf32>
    %71 = arith.addf %70, %69 : vector<8x32xf32>
    %72 = arith.divf %70, %71 : vector<8x32xf32>
    %73 = arith.mulf %66, %44 : vector<8x32xf32>
    %74 = arith.mulf %61, %67 : vector<8x32xf32>
    %75 = arith.addf %73, %74 : vector<8x32xf32>
    %76 = math.tanh %75 : vector<8x32xf32>
    %77 = arith.mulf %72, %76 : vector<8x32xf32>
    %78 = vector.extract_strided_slice %11 {offsets = [8, 0], sizes = [8, 32], strides = [1, 1]} : vector<56x32xf32> to vector<8x32xf32>
    %79 = vector.extract_strided_slice %18 {offsets = [8, 0], sizes = [8, 32], strides = [1, 1]} : vector<56x32xf32> to vector<8x32xf32>
    %80 = vector.extract_strided_slice %25 {offsets = [8, 0], sizes = [8, 32], strides = [1, 1]} : vector<56x32xf32> to vector<8x32xf32>
    %81 = vector.extract_strided_slice %32 {offsets = [8, 0], sizes = [8, 32], strides = [1, 1]} : vector<56x32xf32> to vector<8x32xf32>
    %cst_27 = arith.constant dense<0.000000e+00> : vector<8x32xf32>
    %82 = tpu.matmul %77, %34, %cst_27 {dimension_numbers = #tpu.dot_dimension_numbers<[1], [0], [0], [1], [0, 0, 1, 1], [], []>} : vector<8x32xf32>, vector<32x32xf32>, vector<8x32xf32> -> vector<8x32xf32>
    %83 = arith.addf %78, %82 : vector<8x32xf32>
    %cst_28 = arith.constant dense<0.000000e+00> : vector<8x32xf32>
    %84 = tpu.matmul %77, %36, %cst_28 {dimension_numbers = #tpu.dot_dimension_numbers<[1], [0], [0], [1], [0, 0, 1, 1], [], []>} : vector<8x32xf32>, vector<32x32xf32>, vector<8x32xf32> -> vector<8x32xf32>
    %85 = arith.addf %79, %84 : vector<8x32xf32>
    %cst_29 = arith.constant dense<0.000000e+00> : vector<8x32xf32>
    %86 = tpu.matmul %77, %38, %cst_29 {dimension_numbers = #tpu.dot_dimension_numbers<[1], [0], [0], [1], [0, 0, 1, 1], [], []>} : vector<8x32xf32>, vector<32x32xf32>, vector<8x32xf32> -> vector<8x32xf32>
    %87 = arith.addf %80, %86 : vector<8x32xf32>
    %cst_30 = arith.constant dense<0.000000e+00> : vector<8x32xf32>
    %88 = tpu.matmul %77, %40, %cst_30 {dimension_numbers = #tpu.dot_dimension_numbers<[1], [0], [0], [1], [0, 0, 1, 1], [], []>} : vector<8x32xf32>, vector<32x32xf32>, vector<8x32xf32> -> vector<8x32xf32>
    %89 = arith.addf %81, %88 : vector<8x32xf32>
    %90 = arith.negf %83 : vector<8x32xf32>
    %91 = math.exp %90 : vector<8x32xf32>
    %cst_31 = arith.constant 1.000000e+00 : f32
    %92 = vector.broadcast %cst_31 : f32 to vector<8x32xf32>
    %93 = arith.addf %92, %91 : vector<8x32xf32>
    %94 = arith.divf %92, %93 : vector<8x32xf32>
    %95 = arith.negf %85 : vector<8x32xf32>
    %96 = math.exp %95 : vector<8x32xf32>
    %cst_32 = arith.constant 1.000000e+00 : f32
    %97 = vector.broadcast %cst_32 : f32 to vector<8x32xf32>
    %98 = arith.addf %97, %96 : vector<8x32xf32>
    %99 = arith.divf %97, %98 : vector<8x32xf32>
    %100 = math.tanh %87 : vector<8x32xf32>
    %101 = arith.negf %89 : vector<8x32xf32>
    %102 = math.exp %101 : vector<8x32xf32>
    %cst_33 = arith.constant 1.000000e+00 : f32
    %103 = vector.broadcast %cst_33 : f32 to vector<8x32xf32>
    %104 = arith.addf %103, %102 : vector<8x32xf32>
    %105 = arith.divf %103, %104 : vector<8x32xf32>
    %106 = arith.mulf %99, %75 : vector<8x32xf32>
    %107 = arith.mulf %94, %100 : vector<8x32xf32>
    %108 = arith.addf %106, %107 : vector<8x32xf32>
    %109 = math.tanh %108 : vector<8x32xf32>
    %110 = arith.mulf %105, %109 : vector<8x32xf32>
    %111 = vector.extract_strided_slice %11 {offsets = [16, 0], sizes = [8, 32], strides = [1, 1]} : vector<56x32xf32> to vector<8x32xf32>
    %112 = vector.extract_strided_slice %18 {offsets = [16, 0], sizes = [8, 32], strides = [1, 1]} : vector<56x32xf32> to vector<8x32xf32>
    %113 = vector.extract_strided_slice %25 {offsets = [16, 0], sizes = [8, 32], strides = [1, 1]} : vector<56x32xf32> to vector<8x32xf32>
    %114 = vector.extract_strided_slice %32 {offsets = [16, 0], sizes = [8, 32], strides = [1, 1]} : vector<56x32xf32> to vector<8x32xf32>
    %cst_34 = arith.constant dense<0.000000e+00> : vector<8x32xf32>
    %115 = tpu.matmul %110, %34, %cst_34 {dimension_numbers = #tpu.dot_dimension_numbers<[1], [0], [0], [1], [0, 0, 1, 1], [], []>} : vector<8x32xf32>, vector<32x32xf32>, vector<8x32xf32> -> vector<8x32xf32>
    %116 = arith.addf %111, %115 : vector<8x32xf32>
    %cst_35 = arith.constant dense<0.000000e+00> : vector<8x32xf32>
    %117 = tpu.matmul %110, %36, %cst_35 {dimension_numbers = #tpu.dot_dimension_numbers<[1], [0], [0], [1], [0, 0, 1, 1], [], []>} : vector<8x32xf32>, vector<32x32xf32>, vector<8x32xf32> -> vector<8x32xf32>
    %118 = arith.addf %112, %117 : vector<8x32xf32>
    %cst_36 = arith.constant dense<0.000000e+00> : vector<8x32xf32>
    %119 = tpu.matmul %110, %38, %cst_36 {dimension_numbers = #tpu.dot_dimension_numbers<[1], [0], [0], [1], [0, 0, 1, 1], [], []>} : vector<8x32xf32>, vector<32x32xf32>, vector<8x32xf32> -> vector<8x32xf32>
    %120 = arith.addf %113, %119 : vector<8x32xf32>
    %cst_37 = arith.constant dense<0.000000e+00> : vector<8x32xf32>
    %121 = tpu.matmul %110, %40, %cst_37 {dimension_numbers = #tpu.dot_dimension_numbers<[1], [0], [0], [1], [0, 0, 1, 1], [], []>} : vector<8x32xf32>, vector<32x32xf32>, vector<8x32xf32> -> vector<8x32xf32>
    %122 = arith.addf %114, %121 : vector<8x32xf32>
    %123 = arith.negf %116 : vector<8x32xf32>
    %124 = math.exp %123 : vector<8x32xf32>
    %cst_38 = arith.constant 1.000000e+00 : f32
    %125 = vector.broadcast %cst_38 : f32 to vector<8x32xf32>
    %126 = arith.addf %125, %124 : vector<8x32xf32>
    %127 = arith.divf %125, %126 : vector<8x32xf32>
    %128 = arith.negf %118 : vector<8x32xf32>
    %129 = math.exp %128 : vector<8x32xf32>
    %cst_39 = arith.constant 1.000000e+00 : f32
    %130 = vector.broadcast %cst_39 : f32 to vector<8x32xf32>
    %131 = arith.addf %130, %129 : vector<8x32xf32>
    %132 = arith.divf %130, %131 : vector<8x32xf32>
    %133 = math.tanh %120 : vector<8x32xf32>
    %134 = arith.negf %122 : vector<8x32xf32>
    %135 = math.exp %134 : vector<8x32xf32>
    %cst_40 = arith.constant 1.000000e+00 : f32
    %136 = vector.broadcast %cst_40 : f32 to vector<8x32xf32>
    %137 = arith.addf %136, %135 : vector<8x32xf32>
    %138 = arith.divf %136, %137 : vector<8x32xf32>
    %139 = arith.mulf %132, %108 : vector<8x32xf32>
    %140 = arith.mulf %127, %133 : vector<8x32xf32>
    %141 = arith.addf %139, %140 : vector<8x32xf32>
    %142 = math.tanh %141 : vector<8x32xf32>
    %143 = arith.mulf %138, %142 : vector<8x32xf32>
    %144 = vector.extract_strided_slice %11 {offsets = [24, 0], sizes = [8, 32], strides = [1, 1]} : vector<56x32xf32> to vector<8x32xf32>
    %145 = vector.extract_strided_slice %18 {offsets = [24, 0], sizes = [8, 32], strides = [1, 1]} : vector<56x32xf32> to vector<8x32xf32>
    %146 = vector.extract_strided_slice %25 {offsets = [24, 0], sizes = [8, 32], strides = [1, 1]} : vector<56x32xf32> to vector<8x32xf32>
    %147 = vector.extract_strided_slice %32 {offsets = [24, 0], sizes = [8, 32], strides = [1, 1]} : vector<56x32xf32> to vector<8x32xf32>
    %cst_41 = arith.constant dense<0.000000e+00> : vector<8x32xf32>
    %148 = tpu.matmul %143, %34, %cst_41 {dimension_numbers = #tpu.dot_dimension_numbers<[1], [0], [0], [1], [0, 0, 1, 1], [], []>} : vector<8x32xf32>, vector<32x32xf32>, vector<8x32xf32> -> vector<8x32xf32>
    %149 = arith.addf %144, %148 : vector<8x32xf32>
    %cst_42 = arith.constant dense<0.000000e+00> : vector<8x32xf32>
    %150 = tpu.matmul %143, %36, %cst_42 {dimension_numbers = #tpu.dot_dimension_numbers<[1], [0], [0], [1], [0, 0, 1, 1], [], []>} : vector<8x32xf32>, vector<32x32xf32>, vector<8x32xf32> -> vector<8x32xf32>
    %151 = arith.addf %145, %150 : vector<8x32xf32>
    %cst_43 = arith.constant dense<0.000000e+00> : vector<8x32xf32>
    %152 = tpu.matmul %143, %38, %cst_43 {dimension_numbers = #tpu.dot_dimension_numbers<[1], [0], [0], [1], [0, 0, 1, 1], [], []>} : vector<8x32xf32>, vector<32x32xf32>, vector<8x32xf32> -> vector<8x32xf32>
    %153 = arith.addf %146, %152 : vector<8x32xf32>
    %cst_44 = arith.constant dense<0.000000e+00> : vector<8x32xf32>
    %154 = tpu.matmul %143, %40, %cst_44 {dimension_numbers = #tpu.dot_dimension_numbers<[1], [0], [0], [1], [0, 0, 1, 1], [], []>} : vector<8x32xf32>, vector<32x32xf32>, vector<8x32xf32> -> vector<8x32xf32>
    %155 = arith.addf %147, %154 : vector<8x32xf32>
    %156 = arith.negf %149 : vector<8x32xf32>
    %157 = math.exp %156 : vector<8x32xf32>
    %cst_45 = arith.constant 1.000000e+00 : f32
    %158 = vector.broadcast %cst_45 : f32 to vector<8x32xf32>
    %159 = arith.addf %158, %157 : vector<8x32xf32>
    %160 = arith.divf %158, %159 : vector<8x32xf32>
    %161 = arith.negf %151 : vector<8x32xf32>
    %162 = math.exp %161 : vector<8x32xf32>
    %cst_46 = arith.constant 1.000000e+00 : f32
    %163 = vector.broadcast %cst_46 : f32 to vector<8x32xf32>
    %164 = arith.addf %163, %162 : vector<8x32xf32>
    %165 = arith.divf %163, %164 : vector<8x32xf32>
    %166 = math.tanh %153 : vector<8x32xf32>
    %167 = arith.negf %155 : vector<8x32xf32>
    %168 = math.exp %167 : vector<8x32xf32>
    %cst_47 = arith.constant 1.000000e+00 : f32
    %169 = vector.broadcast %cst_47 : f32 to vector<8x32xf32>
    %170 = arith.addf %169, %168 : vector<8x32xf32>
    %171 = arith.divf %169, %170 : vector<8x32xf32>
    %172 = arith.mulf %165, %141 : vector<8x32xf32>
    %173 = arith.mulf %160, %166 : vector<8x32xf32>
    %174 = arith.addf %172, %173 : vector<8x32xf32>
    %175 = math.tanh %174 : vector<8x32xf32>
    %176 = arith.mulf %171, %175 : vector<8x32xf32>
    %177 = vector.extract_strided_slice %11 {offsets = [32, 0], sizes = [8, 32], strides = [1, 1]} : vector<56x32xf32> to vector<8x32xf32>
    %178 = vector.extract_strided_slice %18 {offsets = [32, 0], sizes = [8, 32], strides = [1, 1]} : vector<56x32xf32> to vector<8x32xf32>
    %179 = vector.extract_strided_slice %25 {offsets = [32, 0], sizes = [8, 32], strides = [1, 1]} : vector<56x32xf32> to vector<8x32xf32>
    %180 = vector.extract_strided_slice %32 {offsets = [32, 0], sizes = [8, 32], strides = [1, 1]} : vector<56x32xf32> to vector<8x32xf32>
    %cst_48 = arith.constant dense<0.000000e+00> : vector<8x32xf32>
    %181 = tpu.matmul %176, %34, %cst_48 {dimension_numbers = #tpu.dot_dimension_numbers<[1], [0], [0], [1], [0, 0, 1, 1], [], []>} : vector<8x32xf32>, vector<32x32xf32>, vector<8x32xf32> -> vector<8x32xf32>
    %182 = arith.addf %177, %181 : vector<8x32xf32>
    %cst_49 = arith.constant dense<0.000000e+00> : vector<8x32xf32>
    %183 = tpu.matmul %176, %36, %cst_49 {dimension_numbers = #tpu.dot_dimension_numbers<[1], [0], [0], [1], [0, 0, 1, 1], [], []>} : vector<8x32xf32>, vector<32x32xf32>, vector<8x32xf32> -> vector<8x32xf32>
    %184 = arith.addf %178, %183 : vector<8x32xf32>
    %cst_50 = arith.constant dense<0.000000e+00> : vector<8x32xf32>
    %185 = tpu.matmul %176, %38, %cst_50 {dimension_numbers = #tpu.dot_dimension_numbers<[1], [0], [0], [1], [0, 0, 1, 1], [], []>} : vector<8x32xf32>, vector<32x32xf32>, vector<8x32xf32> -> vector<8x32xf32>
    %186 = arith.addf %179, %185 : vector<8x32xf32>
    %cst_51 = arith.constant dense<0.000000e+00> : vector<8x32xf32>
    %187 = tpu.matmul %176, %40, %cst_51 {dimension_numbers = #tpu.dot_dimension_numbers<[1], [0], [0], [1], [0, 0, 1, 1], [], []>} : vector<8x32xf32>, vector<32x32xf32>, vector<8x32xf32> -> vector<8x32xf32>
    %188 = arith.addf %180, %187 : vector<8x32xf32>
    %189 = arith.negf %182 : vector<8x32xf32>
    %190 = math.exp %189 : vector<8x32xf32>
    %cst_52 = arith.constant 1.000000e+00 : f32
    %191 = vector.broadcast %cst_52 : f32 to vector<8x32xf32>
    %192 = arith.addf %191, %190 : vector<8x32xf32>
    %193 = arith.divf %191, %192 : vector<8x32xf32>
    %194 = arith.negf %184 : vector<8x32xf32>
    %195 = math.exp %194 : vector<8x32xf32>
    %cst_53 = arith.constant 1.000000e+00 : f32
    %196 = vector.broadcast %cst_53 : f32 to vector<8x32xf32>
    %197 = arith.addf %196, %195 : vector<8x32xf32>
    %198 = arith.divf %196, %197 : vector<8x32xf32>
    %199 = math.tanh %186 : vector<8x32xf32>
    %200 = arith.negf %188 : vector<8x32xf32>
    %201 = math.exp %200 : vector<8x32xf32>
    %cst_54 = arith.constant 1.000000e+00 : f32
    %202 = vector.broadcast %cst_54 : f32 to vector<8x32xf32>
    %203 = arith.addf %202, %201 : vector<8x32xf32>
    %204 = arith.divf %202, %203 : vector<8x32xf32>
    %205 = arith.mulf %198, %174 : vector<8x32xf32>
    %206 = arith.mulf %193, %199 : vector<8x32xf32>
    %207 = arith.addf %205, %206 : vector<8x32xf32>
    %208 = math.tanh %207 : vector<8x32xf32>
    %209 = arith.mulf %204, %208 : vector<8x32xf32>
    %210 = vector.extract_strided_slice %11 {offsets = [40, 0], sizes = [8, 32], strides = [1, 1]} : vector<56x32xf32> to vector<8x32xf32>
    %211 = vector.extract_strided_slice %18 {offsets = [40, 0], sizes = [8, 32], strides = [1, 1]} : vector<56x32xf32> to vector<8x32xf32>
    %212 = vector.extract_strided_slice %25 {offsets = [40, 0], sizes = [8, 32], strides = [1, 1]} : vector<56x32xf32> to vector<8x32xf32>
    %213 = vector.extract_strided_slice %32 {offsets = [40, 0], sizes = [8, 32], strides = [1, 1]} : vector<56x32xf32> to vector<8x32xf32>
    %cst_55 = arith.constant dense<0.000000e+00> : vector<8x32xf32>
    %214 = tpu.matmul %209, %34, %cst_55 {dimension_numbers = #tpu.dot_dimension_numbers<[1], [0], [0], [1], [0, 0, 1, 1], [], []>} : vector<8x32xf32>, vector<32x32xf32>, vector<8x32xf32> -> vector<8x32xf32>
    %215 = arith.addf %210, %214 : vector<8x32xf32>
    %cst_56 = arith.constant dense<0.000000e+00> : vector<8x32xf32>
    %216 = tpu.matmul %209, %36, %cst_56 {dimension_numbers = #tpu.dot_dimension_numbers<[1], [0], [0], [1], [0, 0, 1, 1], [], []>} : vector<8x32xf32>, vector<32x32xf32>, vector<8x32xf32> -> vector<8x32xf32>
    %217 = arith.addf %211, %216 : vector<8x32xf32>
    %cst_57 = arith.constant dense<0.000000e+00> : vector<8x32xf32>
    %218 = tpu.matmul %209, %38, %cst_57 {dimension_numbers = #tpu.dot_dimension_numbers<[1], [0], [0], [1], [0, 0, 1, 1], [], []>} : vector<8x32xf32>, vector<32x32xf32>, vector<8x32xf32> -> vector<8x32xf32>
    %219 = arith.addf %212, %218 : vector<8x32xf32>
    %cst_58 = arith.constant dense<0.000000e+00> : vector<8x32xf32>
    %220 = tpu.matmul %209, %40, %cst_58 {dimension_numbers = #tpu.dot_dimension_numbers<[1], [0], [0], [1], [0, 0, 1, 1], [], []>} : vector<8x32xf32>, vector<32x32xf32>, vector<8x32xf32> -> vector<8x32xf32>
    %221 = arith.addf %213, %220 : vector<8x32xf32>
    %222 = arith.negf %215 : vector<8x32xf32>
    %223 = math.exp %222 : vector<8x32xf32>
    %cst_59 = arith.constant 1.000000e+00 : f32
    %224 = vector.broadcast %cst_59 : f32 to vector<8x32xf32>
    %225 = arith.addf %224, %223 : vector<8x32xf32>
    %226 = arith.divf %224, %225 : vector<8x32xf32>
    %227 = arith.negf %217 : vector<8x32xf32>
    %228 = math.exp %227 : vector<8x32xf32>
    %cst_60 = arith.constant 1.000000e+00 : f32
    %229 = vector.broadcast %cst_60 : f32 to vector<8x32xf32>
    %230 = arith.addf %229, %228 : vector<8x32xf32>
    %231 = arith.divf %229, %230 : vector<8x32xf32>
    %232 = math.tanh %219 : vector<8x32xf32>
    %233 = arith.negf %221 : vector<8x32xf32>
    %234 = math.exp %233 : vector<8x32xf32>
    %cst_61 = arith.constant 1.000000e+00 : f32
    %235 = vector.broadcast %cst_61 : f32 to vector<8x32xf32>
    %236 = arith.addf %235, %234 : vector<8x32xf32>
    %237 = arith.divf %235, %236 : vector<8x32xf32>
    %238 = arith.mulf %231, %207 : vector<8x32xf32>
    %239 = arith.mulf %226, %232 : vector<8x32xf32>
    %240 = arith.addf %238, %239 : vector<8x32xf32>
    %241 = math.tanh %240 : vector<8x32xf32>
    %242 = arith.mulf %237, %241 : vector<8x32xf32>
    %243 = vector.extract_strided_slice %11 {offsets = [48, 0], sizes = [8, 32], strides = [1, 1]} : vector<56x32xf32> to vector<8x32xf32>
    %244 = vector.extract_strided_slice %18 {offsets = [48, 0], sizes = [8, 32], strides = [1, 1]} : vector<56x32xf32> to vector<8x32xf32>
    %245 = vector.extract_strided_slice %25 {offsets = [48, 0], sizes = [8, 32], strides = [1, 1]} : vector<56x32xf32> to vector<8x32xf32>
    %246 = vector.extract_strided_slice %32 {offsets = [48, 0], sizes = [8, 32], strides = [1, 1]} : vector<56x32xf32> to vector<8x32xf32>
    %cst_62 = arith.constant dense<0.000000e+00> : vector<8x32xf32>
    %247 = tpu.matmul %242, %34, %cst_62 {dimension_numbers = #tpu.dot_dimension_numbers<[1], [0], [0], [1], [0, 0, 1, 1], [], []>} : vector<8x32xf32>, vector<32x32xf32>, vector<8x32xf32> -> vector<8x32xf32>
    %248 = arith.addf %243, %247 : vector<8x32xf32>
    %cst_63 = arith.constant dense<0.000000e+00> : vector<8x32xf32>
    %249 = tpu.matmul %242, %36, %cst_63 {dimension_numbers = #tpu.dot_dimension_numbers<[1], [0], [0], [1], [0, 0, 1, 1], [], []>} : vector<8x32xf32>, vector<32x32xf32>, vector<8x32xf32> -> vector<8x32xf32>
    %250 = arith.addf %244, %249 : vector<8x32xf32>
    %cst_64 = arith.constant dense<0.000000e+00> : vector<8x32xf32>
    %251 = tpu.matmul %242, %38, %cst_64 {dimension_numbers = #tpu.dot_dimension_numbers<[1], [0], [0], [1], [0, 0, 1, 1], [], []>} : vector<8x32xf32>, vector<32x32xf32>, vector<8x32xf32> -> vector<8x32xf32>
    %252 = arith.addf %245, %251 : vector<8x32xf32>
    %cst_65 = arith.constant dense<0.000000e+00> : vector<8x32xf32>
    %253 = tpu.matmul %242, %40, %cst_65 {dimension_numbers = #tpu.dot_dimension_numbers<[1], [0], [0], [1], [0, 0, 1, 1], [], []>} : vector<8x32xf32>, vector<32x32xf32>, vector<8x32xf32> -> vector<8x32xf32>
    %254 = arith.addf %246, %253 : vector<8x32xf32>
    %255 = arith.negf %248 : vector<8x32xf32>
    %256 = math.exp %255 : vector<8x32xf32>
    %cst_66 = arith.constant 1.000000e+00 : f32
    %257 = vector.broadcast %cst_66 : f32 to vector<8x32xf32>
    %258 = arith.addf %257, %256 : vector<8x32xf32>
    %259 = arith.divf %257, %258 : vector<8x32xf32>
    %260 = arith.negf %250 : vector<8x32xf32>
    %261 = math.exp %260 : vector<8x32xf32>
    %cst_67 = arith.constant 1.000000e+00 : f32
    %262 = vector.broadcast %cst_67 : f32 to vector<8x32xf32>
    %263 = arith.addf %262, %261 : vector<8x32xf32>
    %264 = arith.divf %262, %263 : vector<8x32xf32>
    %265 = math.tanh %252 : vector<8x32xf32>
    %266 = arith.negf %254 : vector<8x32xf32>
    %267 = math.exp %266 : vector<8x32xf32>
    %cst_68 = arith.constant 1.000000e+00 : f32
    %268 = vector.broadcast %cst_68 : f32 to vector<8x32xf32>
    %269 = arith.addf %268, %267 : vector<8x32xf32>
    %270 = arith.divf %268, %269 : vector<8x32xf32>
    %271 = arith.mulf %264, %240 : vector<8x32xf32>
    %272 = arith.mulf %259, %265 : vector<8x32xf32>
    %273 = arith.addf %271, %272 : vector<8x32xf32>
    %274 = math.tanh %273 : vector<8x32xf32>
    %275 = arith.mulf %270, %274 : vector<8x32xf32>
    %276 = vector.extract_strided_slice %0 {offsets = [48, 0], sizes = [8, 16], strides = [1, 1]} : vector<56x16xf32> to vector<8x16xf32>
    %277 = vector.extract_strided_slice %1 {offsets = [1, 0, 0, 0], sizes = [1, 1, 16, 32], strides = [1, 1, 1, 1]} : vector<2x4x16x32xf32> to vector<1x1x16x32xf32>
    %278 = vector.shape_cast %277 : vector<1x1x16x32xf32> to vector<16x32xf32>
    %cst_69 = arith.constant dense<0.000000e+00> : vector<8x32xf32>
    %279 = tpu.matmul %276, %278, %cst_69 {dimension_numbers = #tpu.dot_dimension_numbers<[1], [0], [0], [1], [0, 0, 1, 1], [], []>} : vector<8x16xf32>, vector<16x32xf32>, vector<8x32xf32> -> vector<8x32xf32>
    %280 = vector.extract_strided_slice %3 {offsets = [1, 0, 0, 0], sizes = [1, 1, 1, 32], strides = [1, 1, 1, 1]} : vector<2x4x1x32xf32> to vector<1x1x1x32xf32>
    %281 = vector.shape_cast %280 : vector<1x1x1x32xf32> to vector<1x32xf32>
    %282 = vector.broadcast %281 : vector<1x32xf32> to vector<8x32xf32>
    %283 = arith.addf %279, %282 : vector<8x32xf32>
    %284 = vector.extract_strided_slice %1 {offsets = [1, 1, 0, 0], sizes = [1, 1, 16, 32], strides = [1, 1, 1, 1]} : vector<2x4x16x32xf32> to vector<1x1x16x32xf32>
    %285 = vector.shape_cast %284 : vector<1x1x16x32xf32> to vector<16x32xf32>
    %cst_70 = arith.constant dense<0.000000e+00> : vector<8x32xf32>
    %286 = tpu.matmul %276, %285, %cst_70 {dimension_numbers = #tpu.dot_dimension_numbers<[1], [0], [0], [1], [0, 0, 1, 1], [], []>} : vector<8x16xf32>, vector<16x32xf32>, vector<8x32xf32> -> vector<8x32xf32>
    %287 = vector.extract_strided_slice %3 {offsets = [1, 1, 0, 0], sizes = [1, 1, 1, 32], strides = [1, 1, 1, 1]} : vector<2x4x1x32xf32> to vector<1x1x1x32xf32>
    %288 = vector.shape_cast %287 : vector<1x1x1x32xf32> to vector<1x32xf32>
    %289 = vector.broadcast %288 : vector<1x32xf32> to vector<8x32xf32>
    %290 = arith.addf %286, %289 : vector<8x32xf32>
    %291 = vector.extract_strided_slice %1 {offsets = [1, 2, 0, 0], sizes = [1, 1, 16, 32], strides = [1, 1, 1, 1]} : vector<2x4x16x32xf32> to vector<1x1x16x32xf32>
    %292 = vector.shape_cast %291 : vector<1x1x16x32xf32> to vector<16x32xf32>
    %cst_71 = arith.constant dense<0.000000e+00> : vector<8x32xf32>
    %293 = tpu.matmul %276, %292, %cst_71 {dimension_numbers = #tpu.dot_dimension_numbers<[1], [0], [0], [1], [0, 0, 1, 1], [], []>} : vector<8x16xf32>, vector<16x32xf32>, vector<8x32xf32> -> vector<8x32xf32>
    %294 = vector.extract_strided_slice %3 {offsets = [1, 2, 0, 0], sizes = [1, 1, 1, 32], strides = [1, 1, 1, 1]} : vector<2x4x1x32xf32> to vector<1x1x1x32xf32>
    %295 = vector.shape_cast %294 : vector<1x1x1x32xf32> to vector<1x32xf32>
    %296 = vector.broadcast %295 : vector<1x32xf32> to vector<8x32xf32>
    %297 = arith.addf %293, %296 : vector<8x32xf32>
    %298 = vector.extract_strided_slice %1 {offsets = [1, 3, 0, 0], sizes = [1, 1, 16, 32], strides = [1, 1, 1, 1]} : vector<2x4x16x32xf32> to vector<1x1x16x32xf32>
    %299 = vector.shape_cast %298 : vector<1x1x16x32xf32> to vector<16x32xf32>
    %cst_72 = arith.constant dense<0.000000e+00> : vector<8x32xf32>
    %300 = tpu.matmul %276, %299, %cst_72 {dimension_numbers = #tpu.dot_dimension_numbers<[1], [0], [0], [1], [0, 0, 1, 1], [], []>} : vector<8x16xf32>, vector<16x32xf32>, vector<8x32xf32> -> vector<8x32xf32>
    %301 = vector.extract_strided_slice %3 {offsets = [1, 3, 0, 0], sizes = [1, 1, 1, 32], strides = [1, 1, 1, 1]} : vector<2x4x1x32xf32> to vector<1x1x1x32xf32>
    %302 = vector.shape_cast %301 : vector<1x1x1x32xf32> to vector<1x32xf32>
    %303 = vector.broadcast %302 : vector<1x32xf32> to vector<8x32xf32>
    %304 = arith.addf %300, %303 : vector<8x32xf32>
    %305 = vector.extract_strided_slice %2 {offsets = [1, 0, 0, 0], sizes = [1, 1, 32, 32], strides = [1, 1, 1, 1]} : vector<2x4x32x32xf32> to vector<1x1x32x32xf32>
    %306 = vector.shape_cast %305 : vector<1x1x32x32xf32> to vector<32x32xf32>
    %307 = vector.extract_strided_slice %2 {offsets = [1, 1, 0, 0], sizes = [1, 1, 32, 32], strides = [1, 1, 1, 1]} : vector<2x4x32x32xf32> to vector<1x1x32x32xf32>
    %308 = vector.shape_cast %307 : vector<1x1x32x32xf32> to vector<32x32xf32>
    %309 = vector.extract_strided_slice %2 {offsets = [1, 2, 0, 0], sizes = [1, 1, 32, 32], strides = [1, 1, 1, 1]} : vector<2x4x32x32xf32> to vector<1x1x32x32xf32>
    %310 = vector.shape_cast %309 : vector<1x1x32x32xf32> to vector<32x32xf32>
    %311 = vector.extract_strided_slice %2 {offsets = [1, 3, 0, 0], sizes = [1, 1, 32, 32], strides = [1, 1, 1, 1]} : vector<2x4x32x32xf32> to vector<1x1x32x32xf32>
    %312 = vector.shape_cast %311 : vector<1x1x32x32xf32> to vector<32x32xf32>
    %313 = vector.extract_strided_slice %4 {offsets = [0, 1, 0, 0], sizes = [1, 1, 8, 32], strides = [1, 1, 1, 1]} : vector<2x2x8x32xf32> to vector<1x1x8x32xf32>
    %314 = vector.shape_cast %313 : vector<1x1x8x32xf32> to vector<8x32xf32>
    %315 = vector.extract_strided_slice %4 {offsets = [1, 1, 0, 0], sizes = [1, 1, 8, 32], strides = [1, 1, 1, 1]} : vector<2x2x8x32xf32> to vector<1x1x8x32xf32>
    %316 = vector.shape_cast %315 : vector<1x1x8x32xf32> to vector<8x32xf32>
    %cst_73 = arith.constant dense<0.000000e+00> : vector<8x32xf32>
    %317 = tpu.matmul %314, %306, %cst_73 {dimension_numbers = #tpu.dot_dimension_numbers<[1], [0], [0], [1], [0, 0, 1, 1], [], []>} : vector<8x32xf32>, vector<32x32xf32>, vector<8x32xf32> -> vector<8x32xf32>
    %318 = arith.addf %283, %317 : vector<8x32xf32>
    %cst_74 = arith.constant dense<0.000000e+00> : vector<8x32xf32>
    %319 = tpu.matmul %314, %308, %cst_74 {dimension_numbers = #tpu.dot_dimension_numbers<[1], [0], [0], [1], [0, 0, 1, 1], [], []>} : vector<8x32xf32>, vector<32x32xf32>, vector<8x32xf32> -> vector<8x32xf32>
    %320 = arith.addf %290, %319 : vector<8x32xf32>
    %cst_75 = arith.constant dense<0.000000e+00> : vector<8x32xf32>
    %321 = tpu.matmul %314, %310, %cst_75 {dimension_numbers = #tpu.dot_dimension_numbers<[1], [0], [0], [1], [0, 0, 1, 1], [], []>} : vector<8x32xf32>, vector<32x32xf32>, vector<8x32xf32> -> vector<8x32xf32>
    %322 = arith.addf %297, %321 : vector<8x32xf32>
    %cst_76 = arith.constant dense<0.000000e+00> : vector<8x32xf32>
    %323 = tpu.matmul %314, %312, %cst_76 {dimension_numbers = #tpu.dot_dimension_numbers<[1], [0], [0], [1], [0, 0, 1, 1], [], []>} : vector<8x32xf32>, vector<32x32xf32>, vector<8x32xf32> -> vector<8x32xf32>
    %324 = arith.addf %304, %323 : vector<8x32xf32>
    %325 = arith.negf %318 : vector<8x32xf32>
    %326 = math.exp %325 : vector<8x32xf32>
    %cst_77 = arith.constant 1.000000e+00 : f32
    %327 = vector.broadcast %cst_77 : f32 to vector<8x32xf32>
    %328 = arith.addf %327, %326 : vector<8x32xf32>
    %329 = arith.divf %327, %328 : vector<8x32xf32>
    %330 = arith.negf %320 : vector<8x32xf32>
    %331 = math.exp %330 : vector<8x32xf32>
    %cst_78 = arith.constant 1.000000e+00 : f32
    %332 = vector.broadcast %cst_78 : f32 to vector<8x32xf32>
    %333 = arith.addf %332, %331 : vector<8x32xf32>
    %334 = arith.divf %332, %333 : vector<8x32xf32>
    %335 = math.tanh %322 : vector<8x32xf32>
    %336 = arith.negf %324 : vector<8x32xf32>
    %337 = math.exp %336 : vector<8x32xf32>
    %cst_79 = arith.constant 1.000000e+00 : f32
    %338 = vector.broadcast %cst_79 : f32 to vector<8x32xf32>
    %339 = arith.addf %338, %337 : vector<8x32xf32>
    %340 = arith.divf %338, %339 : vector<8x32xf32>
    %341 = arith.mulf %334, %316 : vector<8x32xf32>
    %342 = arith.mulf %329, %335 : vector<8x32xf32>
    %343 = arith.addf %341, %342 : vector<8x32xf32>
    %344 = math.tanh %343 : vector<8x32xf32>
    %345 = arith.mulf %340, %344 : vector<8x32xf32>
    %c0_80 = arith.constant 0 : index
    %c0_81 = arith.constant 0 : index
    %346 = vector.load %arg3[%c0_80, %c0_81] : memref<56x64xf32, #tpu.memory_space<vmem>>, vector<56x64xf32>
    %c0_82 = arith.constant 0 : index
    %c0_83 = arith.constant 0 : index
    %c0_84 = arith.constant 0 : index
    %c0_85 = arith.constant 0 : index
    %347 = vector.load %arg8[%c0_82, %c0_83, %c0_84, %c0_85] : memref<2x4x64x64xf32, #tpu.memory_space<vmem>>, vector<2x4x64x64xf32>
    %c0_86 = arith.constant 0 : index
    %c0_87 = arith.constant 0 : index
    %c0_88 = arith.constant 0 : index
    %c0_89 = arith.constant 0 : index
    %348 = vector.load %arg9[%c0_86, %c0_87, %c0_88, %c0_89] : memref<2x4x64x64xf32, #tpu.memory_space<vmem>>, vector<2x4x64x64xf32>
    %c0_90 = arith.constant 0 : index
    %c0_91 = arith.constant 0 : index
    %c0_92 = arith.constant 0 : index
    %c0_93 = arith.constant 0 : index
    %349 = vector.load %arg10[%c0_90, %c0_91, %c0_92, %c0_93] : memref<2x4x1x64xf32, #tpu.memory_space<vmem>>, vector<2x4x1x64xf32>
    %c0_94 = arith.constant 0 : index
    %c0_95 = arith.constant 0 : index
    %c0_96 = arith.constant 0 : index
    %c0_97 = arith.constant 0 : index
    %350 = vector.load %arg11[%c0_94, %c0_95, %c0_96, %c0_97] : memref<2x2x8x64xf32, #tpu.memory_space<vmem>>, vector<2x2x8x64xf32>
    %351 = vector.extract_strided_slice %347 {offsets = [0, 0, 0, 0], sizes = [1, 1, 64, 64], strides = [1, 1, 1, 1]} : vector<2x4x64x64xf32> to vector<1x1x64x64xf32>
    %352 = vector.shape_cast %351 : vector<1x1x64x64xf32> to vector<64x64xf32>
    %cst_98 = arith.constant dense<0.000000e+00> : vector<56x64xf32>
    %353 = tpu.matmul %346, %352, %cst_98 {dimension_numbers = #tpu.dot_dimension_numbers<[1], [0], [0], [1], [0, 0, 1, 1], [], []>} : vector<56x64xf32>, vector<64x64xf32>, vector<56x64xf32> -> vector<56x64xf32>
    %354 = vector.extract_strided_slice %349 {offsets = [0, 0, 0, 0], sizes = [1, 1, 1, 64], strides = [1, 1, 1, 1]} : vector<2x4x1x64xf32> to vector<1x1x1x64xf32>
    %355 = vector.shape_cast %354 : vector<1x1x1x64xf32> to vector<1x64xf32>
    %356 = vector.broadcast %355 : vector<1x64xf32> to vector<56x64xf32>
    %357 = arith.addf %353, %356 : vector<56x64xf32>
    %358 = vector.extract_strided_slice %347 {offsets = [0, 1, 0, 0], sizes = [1, 1, 64, 64], strides = [1, 1, 1, 1]} : vector<2x4x64x64xf32> to vector<1x1x64x64xf32>
    %359 = vector.shape_cast %358 : vector<1x1x64x64xf32> to vector<64x64xf32>
    %cst_99 = arith.constant dense<0.000000e+00> : vector<56x64xf32>
    %360 = tpu.matmul %346, %359, %cst_99 {dimension_numbers = #tpu.dot_dimension_numbers<[1], [0], [0], [1], [0, 0, 1, 1], [], []>} : vector<56x64xf32>, vector<64x64xf32>, vector<56x64xf32> -> vector<56x64xf32>
    %361 = vector.extract_strided_slice %349 {offsets = [0, 1, 0, 0], sizes = [1, 1, 1, 64], strides = [1, 1, 1, 1]} : vector<2x4x1x64xf32> to vector<1x1x1x64xf32>
    %362 = vector.shape_cast %361 : vector<1x1x1x64xf32> to vector<1x64xf32>
    %363 = vector.broadcast %362 : vector<1x64xf32> to vector<56x64xf32>
    %364 = arith.addf %360, %363 : vector<56x64xf32>
    %365 = vector.extract_strided_slice %347 {offsets = [0, 2, 0, 0], sizes = [1, 1, 64, 64], strides = [1, 1, 1, 1]} : vector<2x4x64x64xf32> to vector<1x1x64x64xf32>
    %366 = vector.shape_cast %365 : vector<1x1x64x64xf32> to vector<64x64xf32>
    %cst_100 = arith.constant dense<0.000000e+00> : vector<56x64xf32>
    %367 = tpu.matmul %346, %366, %cst_100 {dimension_numbers = #tpu.dot_dimension_numbers<[1], [0], [0], [1], [0, 0, 1, 1], [], []>} : vector<56x64xf32>, vector<64x64xf32>, vector<56x64xf32> -> vector<56x64xf32>
    %368 = vector.extract_strided_slice %349 {offsets = [0, 2, 0, 0], sizes = [1, 1, 1, 64], strides = [1, 1, 1, 1]} : vector<2x4x1x64xf32> to vector<1x1x1x64xf32>
    %369 = vector.shape_cast %368 : vector<1x1x1x64xf32> to vector<1x64xf32>
    %370 = vector.broadcast %369 : vector<1x64xf32> to vector<56x64xf32>
    %371 = arith.addf %367, %370 : vector<56x64xf32>
    %372 = vector.extract_strided_slice %347 {offsets = [0, 3, 0, 0], sizes = [1, 1, 64, 64], strides = [1, 1, 1, 1]} : vector<2x4x64x64xf32> to vector<1x1x64x64xf32>
    %373 = vector.shape_cast %372 : vector<1x1x64x64xf32> to vector<64x64xf32>
    %cst_101 = arith.constant dense<0.000000e+00> : vector<56x64xf32>
    %374 = tpu.matmul %346, %373, %cst_101 {dimension_numbers = #tpu.dot_dimension_numbers<[1], [0], [0], [1], [0, 0, 1, 1], [], []>} : vector<56x64xf32>, vector<64x64xf32>, vector<56x64xf32> -> vector<56x64xf32>
    %375 = vector.extract_strided_slice %349 {offsets = [0, 3, 0, 0], sizes = [1, 1, 1, 64], strides = [1, 1, 1, 1]} : vector<2x4x1x64xf32> to vector<1x1x1x64xf32>
    %376 = vector.shape_cast %375 : vector<1x1x1x64xf32> to vector<1x64xf32>
    %377 = vector.broadcast %376 : vector<1x64xf32> to vector<56x64xf32>
    %378 = arith.addf %374, %377 : vector<56x64xf32>
    %379 = vector.extract_strided_slice %348 {offsets = [0, 0, 0, 0], sizes = [1, 1, 64, 64], strides = [1, 1, 1, 1]} : vector<2x4x64x64xf32> to vector<1x1x64x64xf32>
    %380 = vector.shape_cast %379 : vector<1x1x64x64xf32> to vector<64x64xf32>
    %381 = vector.extract_strided_slice %348 {offsets = [0, 1, 0, 0], sizes = [1, 1, 64, 64], strides = [1, 1, 1, 1]} : vector<2x4x64x64xf32> to vector<1x1x64x64xf32>
    %382 = vector.shape_cast %381 : vector<1x1x64x64xf32> to vector<64x64xf32>
    %383 = vector.extract_strided_slice %348 {offsets = [0, 2, 0, 0], sizes = [1, 1, 64, 64], strides = [1, 1, 1, 1]} : vector<2x4x64x64xf32> to vector<1x1x64x64xf32>
    %384 = vector.shape_cast %383 : vector<1x1x64x64xf32> to vector<64x64xf32>
    %385 = vector.extract_strided_slice %348 {offsets = [0, 3, 0, 0], sizes = [1, 1, 64, 64], strides = [1, 1, 1, 1]} : vector<2x4x64x64xf32> to vector<1x1x64x64xf32>
    %386 = vector.shape_cast %385 : vector<1x1x64x64xf32> to vector<64x64xf32>
    %387 = vector.extract_strided_slice %350 {offsets = [0, 0, 0, 0], sizes = [1, 1, 8, 64], strides = [1, 1, 1, 1]} : vector<2x2x8x64xf32> to vector<1x1x8x64xf32>
    %388 = vector.shape_cast %387 : vector<1x1x8x64xf32> to vector<8x64xf32>
    %389 = vector.extract_strided_slice %350 {offsets = [1, 0, 0, 0], sizes = [1, 1, 8, 64], strides = [1, 1, 1, 1]} : vector<2x2x8x64xf32> to vector<1x1x8x64xf32>
    %390 = vector.shape_cast %389 : vector<1x1x8x64xf32> to vector<8x64xf32>
    %391 = vector.extract_strided_slice %357 {offsets = [0, 0], sizes = [8, 64], strides = [1, 1]} : vector<56x64xf32> to vector<8x64xf32>
    %392 = vector.extract_strided_slice %364 {offsets = [0, 0], sizes = [8, 64], strides = [1, 1]} : vector<56x64xf32> to vector<8x64xf32>
    %393 = vector.extract_strided_slice %371 {offsets = [0, 0], sizes = [8, 64], strides = [1, 1]} : vector<56x64xf32> to vector<8x64xf32>
    %394 = vector.extract_strided_slice %378 {offsets = [0, 0], sizes = [8, 64], strides = [1, 1]} : vector<56x64xf32> to vector<8x64xf32>
    %cst_102 = arith.constant dense<0.000000e+00> : vector<8x64xf32>
    %395 = tpu.matmul %388, %380, %cst_102 {dimension_numbers = #tpu.dot_dimension_numbers<[1], [0], [0], [1], [0, 0, 1, 1], [], []>} : vector<8x64xf32>, vector<64x64xf32>, vector<8x64xf32> -> vector<8x64xf32>
    %396 = arith.addf %391, %395 : vector<8x64xf32>
    %cst_103 = arith.constant dense<0.000000e+00> : vector<8x64xf32>
    %397 = tpu.matmul %388, %382, %cst_103 {dimension_numbers = #tpu.dot_dimension_numbers<[1], [0], [0], [1], [0, 0, 1, 1], [], []>} : vector<8x64xf32>, vector<64x64xf32>, vector<8x64xf32> -> vector<8x64xf32>
    %398 = arith.addf %392, %397 : vector<8x64xf32>
    %cst_104 = arith.constant dense<0.000000e+00> : vector<8x64xf32>
    %399 = tpu.matmul %388, %384, %cst_104 {dimension_numbers = #tpu.dot_dimension_numbers<[1], [0], [0], [1], [0, 0, 1, 1], [], []>} : vector<8x64xf32>, vector<64x64xf32>, vector<8x64xf32> -> vector<8x64xf32>
    %400 = arith.addf %393, %399 : vector<8x64xf32>
    %cst_105 = arith.constant dense<0.000000e+00> : vector<8x64xf32>
    %401 = tpu.matmul %388, %386, %cst_105 {dimension_numbers = #tpu.dot_dimension_numbers<[1], [0], [0], [1], [0, 0, 1, 1], [], []>} : vector<8x64xf32>, vector<64x64xf32>, vector<8x64xf32> -> vector<8x64xf32>
    %402 = arith.addf %394, %401 : vector<8x64xf32>
    %403 = arith.negf %396 : vector<8x64xf32>
    %404 = math.exp %403 : vector<8x64xf32>
    %cst_106 = arith.constant 1.000000e+00 : f32
    %405 = vector.broadcast %cst_106 : f32 to vector<8x64xf32>
    %406 = arith.addf %405, %404 : vector<8x64xf32>
    %407 = arith.divf %405, %406 : vector<8x64xf32>
    %408 = arith.negf %398 : vector<8x64xf32>
    %409 = math.exp %408 : vector<8x64xf32>
    %cst_107 = arith.constant 1.000000e+00 : f32
    %410 = vector.broadcast %cst_107 : f32 to vector<8x64xf32>
    %411 = arith.addf %410, %409 : vector<8x64xf32>
    %412 = arith.divf %410, %411 : vector<8x64xf32>
    %413 = math.tanh %400 : vector<8x64xf32>
    %414 = arith.negf %402 : vector<8x64xf32>
    %415 = math.exp %414 : vector<8x64xf32>
    %cst_108 = arith.constant 1.000000e+00 : f32
    %416 = vector.broadcast %cst_108 : f32 to vector<8x64xf32>
    %417 = arith.addf %416, %415 : vector<8x64xf32>
    %418 = arith.divf %416, %417 : vector<8x64xf32>
    %419 = arith.mulf %412, %390 : vector<8x64xf32>
    %420 = arith.mulf %407, %413 : vector<8x64xf32>
    %421 = arith.addf %419, %420 : vector<8x64xf32>
    %422 = math.tanh %421 : vector<8x64xf32>
    %423 = arith.mulf %418, %422 : vector<8x64xf32>
    %424 = vector.extract_strided_slice %357 {offsets = [8, 0], sizes = [8, 64], strides = [1, 1]} : vector<56x64xf32> to vector<8x64xf32>
    %425 = vector.extract_strided_slice %364 {offsets = [8, 0], sizes = [8, 64], strides = [1, 1]} : vector<56x64xf32> to vector<8x64xf32>
    %426 = vector.extract_strided_slice %371 {offsets = [8, 0], sizes = [8, 64], strides = [1, 1]} : vector<56x64xf32> to vector<8x64xf32>
    %427 = vector.extract_strided_slice %378 {offsets = [8, 0], sizes = [8, 64], strides = [1, 1]} : vector<56x64xf32> to vector<8x64xf32>
    %cst_109 = arith.constant dense<0.000000e+00> : vector<8x64xf32>
    %428 = tpu.matmul %423, %380, %cst_109 {dimension_numbers = #tpu.dot_dimension_numbers<[1], [0], [0], [1], [0, 0, 1, 1], [], []>} : vector<8x64xf32>, vector<64x64xf32>, vector<8x64xf32> -> vector<8x64xf32>
    %429 = arith.addf %424, %428 : vector<8x64xf32>
    %cst_110 = arith.constant dense<0.000000e+00> : vector<8x64xf32>
    %430 = tpu.matmul %423, %382, %cst_110 {dimension_numbers = #tpu.dot_dimension_numbers<[1], [0], [0], [1], [0, 0, 1, 1], [], []>} : vector<8x64xf32>, vector<64x64xf32>, vector<8x64xf32> -> vector<8x64xf32>
    %431 = arith.addf %425, %430 : vector<8x64xf32>
    %cst_111 = arith.constant dense<0.000000e+00> : vector<8x64xf32>
    %432 = tpu.matmul %423, %384, %cst_111 {dimension_numbers = #tpu.dot_dimension_numbers<[1], [0], [0], [1], [0, 0, 1, 1], [], []>} : vector<8x64xf32>, vector<64x64xf32>, vector<8x64xf32> -> vector<8x64xf32>
    %433 = arith.addf %426, %432 : vector<8x64xf32>
    %cst_112 = arith.constant dense<0.000000e+00> : vector<8x64xf32>
    %434 = tpu.matmul %423, %386, %cst_112 {dimension_numbers = #tpu.dot_dimension_numbers<[1], [0], [0], [1], [0, 0, 1, 1], [], []>} : vector<8x64xf32>, vector<64x64xf32>, vector<8x64xf32> -> vector<8x64xf32>
    %435 = arith.addf %427, %434 : vector<8x64xf32>
    %436 = arith.negf %429 : vector<8x64xf32>
    %437 = math.exp %436 : vector<8x64xf32>
    %cst_113 = arith.constant 1.000000e+00 : f32
    %438 = vector.broadcast %cst_113 : f32 to vector<8x64xf32>
    %439 = arith.addf %438, %437 : vector<8x64xf32>
    %440 = arith.divf %438, %439 : vector<8x64xf32>
    %441 = arith.negf %431 : vector<8x64xf32>
    %442 = math.exp %441 : vector<8x64xf32>
    %cst_114 = arith.constant 1.000000e+00 : f32
    %443 = vector.broadcast %cst_114 : f32 to vector<8x64xf32>
    %444 = arith.addf %443, %442 : vector<8x64xf32>
    %445 = arith.divf %443, %444 : vector<8x64xf32>
    %446 = math.tanh %433 : vector<8x64xf32>
    %447 = arith.negf %435 : vector<8x64xf32>
    %448 = math.exp %447 : vector<8x64xf32>
    %cst_115 = arith.constant 1.000000e+00 : f32
    %449 = vector.broadcast %cst_115 : f32 to vector<8x64xf32>
    %450 = arith.addf %449, %448 : vector<8x64xf32>
    %451 = arith.divf %449, %450 : vector<8x64xf32>
    %452 = arith.mulf %445, %421 : vector<8x64xf32>
    %453 = arith.mulf %440, %446 : vector<8x64xf32>
    %454 = arith.addf %452, %453 : vector<8x64xf32>
    %455 = math.tanh %454 : vector<8x64xf32>
    %456 = arith.mulf %451, %455 : vector<8x64xf32>
    %457 = vector.extract_strided_slice %357 {offsets = [16, 0], sizes = [8, 64], strides = [1, 1]} : vector<56x64xf32> to vector<8x64xf32>
    %458 = vector.extract_strided_slice %364 {offsets = [16, 0], sizes = [8, 64], strides = [1, 1]} : vector<56x64xf32> to vector<8x64xf32>
    %459 = vector.extract_strided_slice %371 {offsets = [16, 0], sizes = [8, 64], strides = [1, 1]} : vector<56x64xf32> to vector<8x64xf32>
    %460 = vector.extract_strided_slice %378 {offsets = [16, 0], sizes = [8, 64], strides = [1, 1]} : vector<56x64xf32> to vector<8x64xf32>
    %cst_116 = arith.constant dense<0.000000e+00> : vector<8x64xf32>
    %461 = tpu.matmul %456, %380, %cst_116 {dimension_numbers = #tpu.dot_dimension_numbers<[1], [0], [0], [1], [0, 0, 1, 1], [], []>} : vector<8x64xf32>, vector<64x64xf32>, vector<8x64xf32> -> vector<8x64xf32>
    %462 = arith.addf %457, %461 : vector<8x64xf32>
    %cst_117 = arith.constant dense<0.000000e+00> : vector<8x64xf32>
    %463 = tpu.matmul %456, %382, %cst_117 {dimension_numbers = #tpu.dot_dimension_numbers<[1], [0], [0], [1], [0, 0, 1, 1], [], []>} : vector<8x64xf32>, vector<64x64xf32>, vector<8x64xf32> -> vector<8x64xf32>
    %464 = arith.addf %458, %463 : vector<8x64xf32>
    %cst_118 = arith.constant dense<0.000000e+00> : vector<8x64xf32>
    %465 = tpu.matmul %456, %384, %cst_118 {dimension_numbers = #tpu.dot_dimension_numbers<[1], [0], [0], [1], [0, 0, 1, 1], [], []>} : vector<8x64xf32>, vector<64x64xf32>, vector<8x64xf32> -> vector<8x64xf32>
    %466 = arith.addf %459, %465 : vector<8x64xf32>
    %cst_119 = arith.constant dense<0.000000e+00> : vector<8x64xf32>
    %467 = tpu.matmul %456, %386, %cst_119 {dimension_numbers = #tpu.dot_dimension_numbers<[1], [0], [0], [1], [0, 0, 1, 1], [], []>} : vector<8x64xf32>, vector<64x64xf32>, vector<8x64xf32> -> vector<8x64xf32>
    %468 = arith.addf %460, %467 : vector<8x64xf32>
    %469 = arith.negf %462 : vector<8x64xf32>
    %470 = math.exp %469 : vector<8x64xf32>
    %cst_120 = arith.constant 1.000000e+00 : f32
    %471 = vector.broadcast %cst_120 : f32 to vector<8x64xf32>
    %472 = arith.addf %471, %470 : vector<8x64xf32>
    %473 = arith.divf %471, %472 : vector<8x64xf32>
    %474 = arith.negf %464 : vector<8x64xf32>
    %475 = math.exp %474 : vector<8x64xf32>
    %cst_121 = arith.constant 1.000000e+00 : f32
    %476 = vector.broadcast %cst_121 : f32 to vector<8x64xf32>
    %477 = arith.addf %476, %475 : vector<8x64xf32>
    %478 = arith.divf %476, %477 : vector<8x64xf32>
    %479 = math.tanh %466 : vector<8x64xf32>
    %480 = arith.negf %468 : vector<8x64xf32>
    %481 = math.exp %480 : vector<8x64xf32>
    %cst_122 = arith.constant 1.000000e+00 : f32
    %482 = vector.broadcast %cst_122 : f32 to vector<8x64xf32>
    %483 = arith.addf %482, %481 : vector<8x64xf32>
    %484 = arith.divf %482, %483 : vector<8x64xf32>
    %485 = arith.mulf %478, %454 : vector<8x64xf32>
    %486 = arith.mulf %473, %479 : vector<8x64xf32>
    %487 = arith.addf %485, %486 : vector<8x64xf32>
    %488 = math.tanh %487 : vector<8x64xf32>
    %489 = arith.mulf %484, %488 : vector<8x64xf32>
    %490 = vector.extract_strided_slice %357 {offsets = [24, 0], sizes = [8, 64], strides = [1, 1]} : vector<56x64xf32> to vector<8x64xf32>
    %491 = vector.extract_strided_slice %364 {offsets = [24, 0], sizes = [8, 64], strides = [1, 1]} : vector<56x64xf32> to vector<8x64xf32>
    %492 = vector.extract_strided_slice %371 {offsets = [24, 0], sizes = [8, 64], strides = [1, 1]} : vector<56x64xf32> to vector<8x64xf32>
    %493 = vector.extract_strided_slice %378 {offsets = [24, 0], sizes = [8, 64], strides = [1, 1]} : vector<56x64xf32> to vector<8x64xf32>
    %cst_123 = arith.constant dense<0.000000e+00> : vector<8x64xf32>
    %494 = tpu.matmul %489, %380, %cst_123 {dimension_numbers = #tpu.dot_dimension_numbers<[1], [0], [0], [1], [0, 0, 1, 1], [], []>} : vector<8x64xf32>, vector<64x64xf32>, vector<8x64xf32> -> vector<8x64xf32>
    %495 = arith.addf %490, %494 : vector<8x64xf32>
    %cst_124 = arith.constant dense<0.000000e+00> : vector<8x64xf32>
    %496 = tpu.matmul %489, %382, %cst_124 {dimension_numbers = #tpu.dot_dimension_numbers<[1], [0], [0], [1], [0, 0, 1, 1], [], []>} : vector<8x64xf32>, vector<64x64xf32>, vector<8x64xf32> -> vector<8x64xf32>
    %497 = arith.addf %491, %496 : vector<8x64xf32>
    %cst_125 = arith.constant dense<0.000000e+00> : vector<8x64xf32>
    %498 = tpu.matmul %489, %384, %cst_125 {dimension_numbers = #tpu.dot_dimension_numbers<[1], [0], [0], [1], [0, 0, 1, 1], [], []>} : vector<8x64xf32>, vector<64x64xf32>, vector<8x64xf32> -> vector<8x64xf32>
    %499 = arith.addf %492, %498 : vector<8x64xf32>
    %cst_126 = arith.constant dense<0.000000e+00> : vector<8x64xf32>
    %500 = tpu.matmul %489, %386, %cst_126 {dimension_numbers = #tpu.dot_dimension_numbers<[1], [0], [0], [1], [0, 0, 1, 1], [], []>} : vector<8x64xf32>, vector<64x64xf32>, vector<8x64xf32> -> vector<8x64xf32>
    %501 = arith.addf %493, %500 : vector<8x64xf32>
    %502 = arith.negf %495 : vector<8x64xf32>
    %503 = math.exp %502 : vector<8x64xf32>
    %cst_127 = arith.constant 1.000000e+00 : f32
    %504 = vector.broadcast %cst_127 : f32 to vector<8x64xf32>
    %505 = arith.addf %504, %503 : vector<8x64xf32>
    %506 = arith.divf %504, %505 : vector<8x64xf32>
    %507 = arith.negf %497 : vector<8x64xf32>
    %508 = math.exp %507 : vector<8x64xf32>
    %cst_128 = arith.constant 1.000000e+00 : f32
    %509 = vector.broadcast %cst_128 : f32 to vector<8x64xf32>
    %510 = arith.addf %509, %508 : vector<8x64xf32>
    %511 = arith.divf %509, %510 : vector<8x64xf32>
    %512 = math.tanh %499 : vector<8x64xf32>
    %513 = arith.negf %501 : vector<8x64xf32>
    %514 = math.exp %513 : vector<8x64xf32>
    %cst_129 = arith.constant 1.000000e+00 : f32
    %515 = vector.broadcast %cst_129 : f32 to vector<8x64xf32>
    %516 = arith.addf %515, %514 : vector<8x64xf32>
    %517 = arith.divf %515, %516 : vector<8x64xf32>
    %518 = arith.mulf %511, %487 : vector<8x64xf32>
    %519 = arith.mulf %506, %512 : vector<8x64xf32>
    %520 = arith.addf %518, %519 : vector<8x64xf32>
    %521 = math.tanh %520 : vector<8x64xf32>
    %522 = arith.mulf %517, %521 : vector<8x64xf32>
    %523 = vector.extract_strided_slice %357 {offsets = [32, 0], sizes = [8, 64], strides = [1, 1]} : vector<56x64xf32> to vector<8x64xf32>
    %524 = vector.extract_strided_slice %364 {offsets = [32, 0], sizes = [8, 64], strides = [1, 1]} : vector<56x64xf32> to vector<8x64xf32>
    %525 = vector.extract_strided_slice %371 {offsets = [32, 0], sizes = [8, 64], strides = [1, 1]} : vector<56x64xf32> to vector<8x64xf32>
    %526 = vector.extract_strided_slice %378 {offsets = [32, 0], sizes = [8, 64], strides = [1, 1]} : vector<56x64xf32> to vector<8x64xf32>
    %cst_130 = arith.constant dense<0.000000e+00> : vector<8x64xf32>
    %527 = tpu.matmul %522, %380, %cst_130 {dimension_numbers = #tpu.dot_dimension_numbers<[1], [0], [0], [1], [0, 0, 1, 1], [], []>} : vector<8x64xf32>, vector<64x64xf32>, vector<8x64xf32> -> vector<8x64xf32>
    %528 = arith.addf %523, %527 : vector<8x64xf32>
    %cst_131 = arith.constant dense<0.000000e+00> : vector<8x64xf32>
    %529 = tpu.matmul %522, %382, %cst_131 {dimension_numbers = #tpu.dot_dimension_numbers<[1], [0], [0], [1], [0, 0, 1, 1], [], []>} : vector<8x64xf32>, vector<64x64xf32>, vector<8x64xf32> -> vector<8x64xf32>
    %530 = arith.addf %524, %529 : vector<8x64xf32>
    %cst_132 = arith.constant dense<0.000000e+00> : vector<8x64xf32>
    %531 = tpu.matmul %522, %384, %cst_132 {dimension_numbers = #tpu.dot_dimension_numbers<[1], [0], [0], [1], [0, 0, 1, 1], [], []>} : vector<8x64xf32>, vector<64x64xf32>, vector<8x64xf32> -> vector<8x64xf32>
    %532 = arith.addf %525, %531 : vector<8x64xf32>
    %cst_133 = arith.constant dense<0.000000e+00> : vector<8x64xf32>
    %533 = tpu.matmul %522, %386, %cst_133 {dimension_numbers = #tpu.dot_dimension_numbers<[1], [0], [0], [1], [0, 0, 1, 1], [], []>} : vector<8x64xf32>, vector<64x64xf32>, vector<8x64xf32> -> vector<8x64xf32>
    %534 = arith.addf %526, %533 : vector<8x64xf32>
    %535 = arith.negf %528 : vector<8x64xf32>
    %536 = math.exp %535 : vector<8x64xf32>
    %cst_134 = arith.constant 1.000000e+00 : f32
    %537 = vector.broadcast %cst_134 : f32 to vector<8x64xf32>
    %538 = arith.addf %537, %536 : vector<8x64xf32>
    %539 = arith.divf %537, %538 : vector<8x64xf32>
    %540 = arith.negf %530 : vector<8x64xf32>
    %541 = math.exp %540 : vector<8x64xf32>
    %cst_135 = arith.constant 1.000000e+00 : f32
    %542 = vector.broadcast %cst_135 : f32 to vector<8x64xf32>
    %543 = arith.addf %542, %541 : vector<8x64xf32>
    %544 = arith.divf %542, %543 : vector<8x64xf32>
    %545 = math.tanh %532 : vector<8x64xf32>
    %546 = arith.negf %534 : vector<8x64xf32>
    %547 = math.exp %546 : vector<8x64xf32>
    %cst_136 = arith.constant 1.000000e+00 : f32
    %548 = vector.broadcast %cst_136 : f32 to vector<8x64xf32>
    %549 = arith.addf %548, %547 : vector<8x64xf32>
    %550 = arith.divf %548, %549 : vector<8x64xf32>
    %551 = arith.mulf %544, %520 : vector<8x64xf32>
    %552 = arith.mulf %539, %545 : vector<8x64xf32>
    %553 = arith.addf %551, %552 : vector<8x64xf32>
    %554 = math.tanh %553 : vector<8x64xf32>
    %555 = arith.mulf %550, %554 : vector<8x64xf32>
    %556 = vector.extract_strided_slice %357 {offsets = [40, 0], sizes = [8, 64], strides = [1, 1]} : vector<56x64xf32> to vector<8x64xf32>
    %557 = vector.extract_strided_slice %364 {offsets = [40, 0], sizes = [8, 64], strides = [1, 1]} : vector<56x64xf32> to vector<8x64xf32>
    %558 = vector.extract_strided_slice %371 {offsets = [40, 0], sizes = [8, 64], strides = [1, 1]} : vector<56x64xf32> to vector<8x64xf32>
    %559 = vector.extract_strided_slice %378 {offsets = [40, 0], sizes = [8, 64], strides = [1, 1]} : vector<56x64xf32> to vector<8x64xf32>
    %cst_137 = arith.constant dense<0.000000e+00> : vector<8x64xf32>
    %560 = tpu.matmul %555, %380, %cst_137 {dimension_numbers = #tpu.dot_dimension_numbers<[1], [0], [0], [1], [0, 0, 1, 1], [], []>} : vector<8x64xf32>, vector<64x64xf32>, vector<8x64xf32> -> vector<8x64xf32>
    %561 = arith.addf %556, %560 : vector<8x64xf32>
    %cst_138 = arith.constant dense<0.000000e+00> : vector<8x64xf32>
    %562 = tpu.matmul %555, %382, %cst_138 {dimension_numbers = #tpu.dot_dimension_numbers<[1], [0], [0], [1], [0, 0, 1, 1], [], []>} : vector<8x64xf32>, vector<64x64xf32>, vector<8x64xf32> -> vector<8x64xf32>
    %563 = arith.addf %557, %562 : vector<8x64xf32>
    %cst_139 = arith.constant dense<0.000000e+00> : vector<8x64xf32>
    %564 = tpu.matmul %555, %384, %cst_139 {dimension_numbers = #tpu.dot_dimension_numbers<[1], [0], [0], [1], [0, 0, 1, 1], [], []>} : vector<8x64xf32>, vector<64x64xf32>, vector<8x64xf32> -> vector<8x64xf32>
    %565 = arith.addf %558, %564 : vector<8x64xf32>
    %cst_140 = arith.constant dense<0.000000e+00> : vector<8x64xf32>
    %566 = tpu.matmul %555, %386, %cst_140 {dimension_numbers = #tpu.dot_dimension_numbers<[1], [0], [0], [1], [0, 0, 1, 1], [], []>} : vector<8x64xf32>, vector<64x64xf32>, vector<8x64xf32> -> vector<8x64xf32>
    %567 = arith.addf %559, %566 : vector<8x64xf32>
    %568 = arith.negf %561 : vector<8x64xf32>
    %569 = math.exp %568 : vector<8x64xf32>
    %cst_141 = arith.constant 1.000000e+00 : f32
    %570 = vector.broadcast %cst_141 : f32 to vector<8x64xf32>
    %571 = arith.addf %570, %569 : vector<8x64xf32>
    %572 = arith.divf %570, %571 : vector<8x64xf32>
    %573 = arith.negf %563 : vector<8x64xf32>
    %574 = math.exp %573 : vector<8x64xf32>
    %cst_142 = arith.constant 1.000000e+00 : f32
    %575 = vector.broadcast %cst_142 : f32 to vector<8x64xf32>
    %576 = arith.addf %575, %574 : vector<8x64xf32>
    %577 = arith.divf %575, %576 : vector<8x64xf32>
    %578 = math.tanh %565 : vector<8x64xf32>
    %579 = arith.negf %567 : vector<8x64xf32>
    %580 = math.exp %579 : vector<8x64xf32>
    %cst_143 = arith.constant 1.000000e+00 : f32
    %581 = vector.broadcast %cst_143 : f32 to vector<8x64xf32>
    %582 = arith.addf %581, %580 : vector<8x64xf32>
    %583 = arith.divf %581, %582 : vector<8x64xf32>
    %584 = arith.mulf %577, %553 : vector<8x64xf32>
    %585 = arith.mulf %572, %578 : vector<8x64xf32>
    %586 = arith.addf %584, %585 : vector<8x64xf32>
    %587 = math.tanh %586 : vector<8x64xf32>
    %588 = arith.mulf %583, %587 : vector<8x64xf32>
    %589 = vector.extract_strided_slice %357 {offsets = [48, 0], sizes = [8, 64], strides = [1, 1]} : vector<56x64xf32> to vector<8x64xf32>
    %590 = vector.extract_strided_slice %364 {offsets = [48, 0], sizes = [8, 64], strides = [1, 1]} : vector<56x64xf32> to vector<8x64xf32>
    %591 = vector.extract_strided_slice %371 {offsets = [48, 0], sizes = [8, 64], strides = [1, 1]} : vector<56x64xf32> to vector<8x64xf32>
    %592 = vector.extract_strided_slice %378 {offsets = [48, 0], sizes = [8, 64], strides = [1, 1]} : vector<56x64xf32> to vector<8x64xf32>
    %cst_144 = arith.constant dense<0.000000e+00> : vector<8x64xf32>
    %593 = tpu.matmul %588, %380, %cst_144 {dimension_numbers = #tpu.dot_dimension_numbers<[1], [0], [0], [1], [0, 0, 1, 1], [], []>} : vector<8x64xf32>, vector<64x64xf32>, vector<8x64xf32> -> vector<8x64xf32>
    %594 = arith.addf %589, %593 : vector<8x64xf32>
    %cst_145 = arith.constant dense<0.000000e+00> : vector<8x64xf32>
    %595 = tpu.matmul %588, %382, %cst_145 {dimension_numbers = #tpu.dot_dimension_numbers<[1], [0], [0], [1], [0, 0, 1, 1], [], []>} : vector<8x64xf32>, vector<64x64xf32>, vector<8x64xf32> -> vector<8x64xf32>
    %596 = arith.addf %590, %595 : vector<8x64xf32>
    %cst_146 = arith.constant dense<0.000000e+00> : vector<8x64xf32>
    %597 = tpu.matmul %588, %384, %cst_146 {dimension_numbers = #tpu.dot_dimension_numbers<[1], [0], [0], [1], [0, 0, 1, 1], [], []>} : vector<8x64xf32>, vector<64x64xf32>, vector<8x64xf32> -> vector<8x64xf32>
    %598 = arith.addf %591, %597 : vector<8x64xf32>
    %cst_147 = arith.constant dense<0.000000e+00> : vector<8x64xf32>
    %599 = tpu.matmul %588, %386, %cst_147 {dimension_numbers = #tpu.dot_dimension_numbers<[1], [0], [0], [1], [0, 0, 1, 1], [], []>} : vector<8x64xf32>, vector<64x64xf32>, vector<8x64xf32> -> vector<8x64xf32>
    %600 = arith.addf %592, %599 : vector<8x64xf32>
    %601 = arith.negf %594 : vector<8x64xf32>
    %602 = math.exp %601 : vector<8x64xf32>
    %cst_148 = arith.constant 1.000000e+00 : f32
    %603 = vector.broadcast %cst_148 : f32 to vector<8x64xf32>
    %604 = arith.addf %603, %602 : vector<8x64xf32>
    %605 = arith.divf %603, %604 : vector<8x64xf32>
    %606 = arith.negf %596 : vector<8x64xf32>
    %607 = math.exp %606 : vector<8x64xf32>
    %cst_149 = arith.constant 1.000000e+00 : f32
    %608 = vector.broadcast %cst_149 : f32 to vector<8x64xf32>
    %609 = arith.addf %608, %607 : vector<8x64xf32>
    %610 = arith.divf %608, %609 : vector<8x64xf32>
    %611 = math.tanh %598 : vector<8x64xf32>
    %612 = arith.negf %600 : vector<8x64xf32>
    %613 = math.exp %612 : vector<8x64xf32>
    %cst_150 = arith.constant 1.000000e+00 : f32
    %614 = vector.broadcast %cst_150 : f32 to vector<8x64xf32>
    %615 = arith.addf %614, %613 : vector<8x64xf32>
    %616 = arith.divf %614, %615 : vector<8x64xf32>
    %617 = arith.mulf %610, %586 : vector<8x64xf32>
    %618 = arith.mulf %605, %611 : vector<8x64xf32>
    %619 = arith.addf %617, %618 : vector<8x64xf32>
    %620 = math.tanh %619 : vector<8x64xf32>
    %621 = arith.mulf %616, %620 : vector<8x64xf32>
    %622 = vector.extract_strided_slice %346 {offsets = [48, 0], sizes = [8, 64], strides = [1, 1]} : vector<56x64xf32> to vector<8x64xf32>
    %623 = vector.extract_strided_slice %347 {offsets = [1, 0, 0, 0], sizes = [1, 1, 64, 64], strides = [1, 1, 1, 1]} : vector<2x4x64x64xf32> to vector<1x1x64x64xf32>
    %624 = vector.shape_cast %623 : vector<1x1x64x64xf32> to vector<64x64xf32>
    %cst_151 = arith.constant dense<0.000000e+00> : vector<8x64xf32>
    %625 = tpu.matmul %622, %624, %cst_151 {dimension_numbers = #tpu.dot_dimension_numbers<[1], [0], [0], [1], [0, 0, 1, 1], [], []>} : vector<8x64xf32>, vector<64x64xf32>, vector<8x64xf32> -> vector<8x64xf32>
    %626 = vector.extract_strided_slice %349 {offsets = [1, 0, 0, 0], sizes = [1, 1, 1, 64], strides = [1, 1, 1, 1]} : vector<2x4x1x64xf32> to vector<1x1x1x64xf32>
    %627 = vector.shape_cast %626 : vector<1x1x1x64xf32> to vector<1x64xf32>
    %628 = vector.broadcast %627 : vector<1x64xf32> to vector<8x64xf32>
    %629 = arith.addf %625, %628 : vector<8x64xf32>
    %630 = vector.extract_strided_slice %347 {offsets = [1, 1, 0, 0], sizes = [1, 1, 64, 64], strides = [1, 1, 1, 1]} : vector<2x4x64x64xf32> to vector<1x1x64x64xf32>
    %631 = vector.shape_cast %630 : vector<1x1x64x64xf32> to vector<64x64xf32>
    %cst_152 = arith.constant dense<0.000000e+00> : vector<8x64xf32>
    %632 = tpu.matmul %622, %631, %cst_152 {dimension_numbers = #tpu.dot_dimension_numbers<[1], [0], [0], [1], [0, 0, 1, 1], [], []>} : vector<8x64xf32>, vector<64x64xf32>, vector<8x64xf32> -> vector<8x64xf32>
    %633 = vector.extract_strided_slice %349 {offsets = [1, 1, 0, 0], sizes = [1, 1, 1, 64], strides = [1, 1, 1, 1]} : vector<2x4x1x64xf32> to vector<1x1x1x64xf32>
    %634 = vector.shape_cast %633 : vector<1x1x1x64xf32> to vector<1x64xf32>
    %635 = vector.broadcast %634 : vector<1x64xf32> to vector<8x64xf32>
    %636 = arith.addf %632, %635 : vector<8x64xf32>
    %637 = vector.extract_strided_slice %347 {offsets = [1, 2, 0, 0], sizes = [1, 1, 64, 64], strides = [1, 1, 1, 1]} : vector<2x4x64x64xf32> to vector<1x1x64x64xf32>
    %638 = vector.shape_cast %637 : vector<1x1x64x64xf32> to vector<64x64xf32>
    %cst_153 = arith.constant dense<0.000000e+00> : vector<8x64xf32>
    %639 = tpu.matmul %622, %638, %cst_153 {dimension_numbers = #tpu.dot_dimension_numbers<[1], [0], [0], [1], [0, 0, 1, 1], [], []>} : vector<8x64xf32>, vector<64x64xf32>, vector<8x64xf32> -> vector<8x64xf32>
    %640 = vector.extract_strided_slice %349 {offsets = [1, 2, 0, 0], sizes = [1, 1, 1, 64], strides = [1, 1, 1, 1]} : vector<2x4x1x64xf32> to vector<1x1x1x64xf32>
    %641 = vector.shape_cast %640 : vector<1x1x1x64xf32> to vector<1x64xf32>
    %642 = vector.broadcast %641 : vector<1x64xf32> to vector<8x64xf32>
    %643 = arith.addf %639, %642 : vector<8x64xf32>
    %644 = vector.extract_strided_slice %347 {offsets = [1, 3, 0, 0], sizes = [1, 1, 64, 64], strides = [1, 1, 1, 1]} : vector<2x4x64x64xf32> to vector<1x1x64x64xf32>
    %645 = vector.shape_cast %644 : vector<1x1x64x64xf32> to vector<64x64xf32>
    %cst_154 = arith.constant dense<0.000000e+00> : vector<8x64xf32>
    %646 = tpu.matmul %622, %645, %cst_154 {dimension_numbers = #tpu.dot_dimension_numbers<[1], [0], [0], [1], [0, 0, 1, 1], [], []>} : vector<8x64xf32>, vector<64x64xf32>, vector<8x64xf32> -> vector<8x64xf32>
    %647 = vector.extract_strided_slice %349 {offsets = [1, 3, 0, 0], sizes = [1, 1, 1, 64], strides = [1, 1, 1, 1]} : vector<2x4x1x64xf32> to vector<1x1x1x64xf32>
    %648 = vector.shape_cast %647 : vector<1x1x1x64xf32> to vector<1x64xf32>
    %649 = vector.broadcast %648 : vector<1x64xf32> to vector<8x64xf32>
    %650 = arith.addf %646, %649 : vector<8x64xf32>
    %651 = vector.extract_strided_slice %348 {offsets = [1, 0, 0, 0], sizes = [1, 1, 64, 64], strides = [1, 1, 1, 1]} : vector<2x4x64x64xf32> to vector<1x1x64x64xf32>
    %652 = vector.shape_cast %651 : vector<1x1x64x64xf32> to vector<64x64xf32>
    %653 = vector.extract_strided_slice %348 {offsets = [1, 1, 0, 0], sizes = [1, 1, 64, 64], strides = [1, 1, 1, 1]} : vector<2x4x64x64xf32> to vector<1x1x64x64xf32>
    %654 = vector.shape_cast %653 : vector<1x1x64x64xf32> to vector<64x64xf32>
    %655 = vector.extract_strided_slice %348 {offsets = [1, 2, 0, 0], sizes = [1, 1, 64, 64], strides = [1, 1, 1, 1]} : vector<2x4x64x64xf32> to vector<1x1x64x64xf32>
    %656 = vector.shape_cast %655 : vector<1x1x64x64xf32> to vector<64x64xf32>
    %657 = vector.extract_strided_slice %348 {offsets = [1, 3, 0, 0], sizes = [1, 1, 64, 64], strides = [1, 1, 1, 1]} : vector<2x4x64x64xf32> to vector<1x1x64x64xf32>
    %658 = vector.shape_cast %657 : vector<1x1x64x64xf32> to vector<64x64xf32>
    %659 = vector.extract_strided_slice %350 {offsets = [0, 1, 0, 0], sizes = [1, 1, 8, 64], strides = [1, 1, 1, 1]} : vector<2x2x8x64xf32> to vector<1x1x8x64xf32>
    %660 = vector.shape_cast %659 : vector<1x1x8x64xf32> to vector<8x64xf32>
    %661 = vector.extract_strided_slice %350 {offsets = [1, 1, 0, 0], sizes = [1, 1, 8, 64], strides = [1, 1, 1, 1]} : vector<2x2x8x64xf32> to vector<1x1x8x64xf32>
    %662 = vector.shape_cast %661 : vector<1x1x8x64xf32> to vector<8x64xf32>
    %cst_155 = arith.constant dense<0.000000e+00> : vector<8x64xf32>
    %663 = tpu.matmul %660, %652, %cst_155 {dimension_numbers = #tpu.dot_dimension_numbers<[1], [0], [0], [1], [0, 0, 1, 1], [], []>} : vector<8x64xf32>, vector<64x64xf32>, vector<8x64xf32> -> vector<8x64xf32>
    %664 = arith.addf %629, %663 : vector<8x64xf32>
    %cst_156 = arith.constant dense<0.000000e+00> : vector<8x64xf32>
    %665 = tpu.matmul %660, %654, %cst_156 {dimension_numbers = #tpu.dot_dimension_numbers<[1], [0], [0], [1], [0, 0, 1, 1], [], []>} : vector<8x64xf32>, vector<64x64xf32>, vector<8x64xf32> -> vector<8x64xf32>
    %666 = arith.addf %636, %665 : vector<8x64xf32>
    %cst_157 = arith.constant dense<0.000000e+00> : vector<8x64xf32>
    %667 = tpu.matmul %660, %656, %cst_157 {dimension_numbers = #tpu.dot_dimension_numbers<[1], [0], [0], [1], [0, 0, 1, 1], [], []>} : vector<8x64xf32>, vector<64x64xf32>, vector<8x64xf32> -> vector<8x64xf32>
    %668 = arith.addf %643, %667 : vector<8x64xf32>
    %cst_158 = arith.constant dense<0.000000e+00> : vector<8x64xf32>
    %669 = tpu.matmul %660, %658, %cst_158 {dimension_numbers = #tpu.dot_dimension_numbers<[1], [0], [0], [1], [0, 0, 1, 1], [], []>} : vector<8x64xf32>, vector<64x64xf32>, vector<8x64xf32> -> vector<8x64xf32>
    %670 = arith.addf %650, %669 : vector<8x64xf32>
    %671 = arith.negf %664 : vector<8x64xf32>
    %672 = math.exp %671 : vector<8x64xf32>
    %cst_159 = arith.constant 1.000000e+00 : f32
    %673 = vector.broadcast %cst_159 : f32 to vector<8x64xf32>
    %674 = arith.addf %673, %672 : vector<8x64xf32>
    %675 = arith.divf %673, %674 : vector<8x64xf32>
    %676 = arith.negf %666 : vector<8x64xf32>
    %677 = math.exp %676 : vector<8x64xf32>
    %cst_160 = arith.constant 1.000000e+00 : f32
    %678 = vector.broadcast %cst_160 : f32 to vector<8x64xf32>
    %679 = arith.addf %678, %677 : vector<8x64xf32>
    %680 = arith.divf %678, %679 : vector<8x64xf32>
    %681 = math.tanh %668 : vector<8x64xf32>
    %682 = arith.negf %670 : vector<8x64xf32>
    %683 = math.exp %682 : vector<8x64xf32>
    %cst_161 = arith.constant 1.000000e+00 : f32
    %684 = vector.broadcast %cst_161 : f32 to vector<8x64xf32>
    %685 = arith.addf %684, %683 : vector<8x64xf32>
    %686 = arith.divf %684, %685 : vector<8x64xf32>
    %687 = arith.mulf %680, %662 : vector<8x64xf32>
    %688 = arith.mulf %675, %681 : vector<8x64xf32>
    %689 = arith.addf %687, %688 : vector<8x64xf32>
    %690 = math.tanh %689 : vector<8x64xf32>
    %691 = arith.mulf %686, %690 : vector<8x64xf32>
    %c0_162 = arith.constant 0 : index
    %c0_163 = arith.constant 0 : index
    %c0_164 = arith.constant 0 : index
    %692 = vector.load %arg12[%c0_162, %c0_163, %c0_164] : memref<2x32x128xf32, #tpu.memory_space<vmem>>, vector<2x32x128xf32>
    %c0_165 = arith.constant 0 : index
    %c0_166 = arith.constant 0 : index
    %c0_167 = arith.constant 0 : index
    %693 = vector.load %arg14[%c0_165, %c0_166, %c0_167] : memref<2x64x128xf32, #tpu.memory_space<vmem>>, vector<2x64x128xf32>
    %694 = vector.extract_strided_slice %692 {offsets = [0, 0, 0], sizes = [1, 32, 128], strides = [1, 1, 1]} : vector<2x32x128xf32> to vector<1x32x128xf32>
    %695 = vector.shape_cast %694 : vector<1x32x128xf32> to vector<32x128xf32>
    %cst_168 = arith.constant dense<0.000000e+00> : vector<8x128xf32>
    %696 = tpu.matmul %275, %695, %cst_168 {dimension_numbers = #tpu.dot_dimension_numbers<[1], [0], [0], [1], [0, 0, 1, 1], [], []>} : vector<8x32xf32>, vector<32x128xf32>, vector<8x128xf32> -> vector<8x128xf32>
    %697 = vector.extract_strided_slice %692 {offsets = [1, 0, 0], sizes = [1, 32, 128], strides = [1, 1, 1]} : vector<2x32x128xf32> to vector<1x32x128xf32>
    %698 = vector.shape_cast %697 : vector<1x32x128xf32> to vector<32x128xf32>
    %cst_169 = arith.constant dense<0.000000e+00> : vector<8x128xf32>
    %699 = tpu.matmul %345, %698, %cst_169 {dimension_numbers = #tpu.dot_dimension_numbers<[1], [0], [0], [1], [0, 0, 1, 1], [], []>} : vector<8x32xf32>, vector<32x128xf32>, vector<8x128xf32> -> vector<8x128xf32>
    %700 = arith.addf %696, %699 : vector<8x128xf32>
    %c0_170 = arith.constant 0 : index
    %c0_171 = arith.constant 0 : index
    %701 = vector.load %arg2[%c0_170, %c0_171] : memref<8x64xf32, #tpu.memory_space<vmem>>, vector<8x64xf32>
    %c0_172 = arith.constant 0 : index
    %c0_173 = arith.constant 0 : index
    %702 = vector.load %arg13[%c0_172, %c0_173] : memref<64x128xf32, #tpu.memory_space<vmem>>, vector<64x128xf32>
    %cst_174 = arith.constant dense<0.000000e+00> : vector<8x128xf32>
    %703 = tpu.matmul %701, %702, %cst_174 {dimension_numbers = #tpu.dot_dimension_numbers<[1], [0], [0], [1], [0, 0, 1, 1], [], []>} : vector<8x64xf32>, vector<64x128xf32>, vector<8x128xf32> -> vector<8x128xf32>
    %704 = arith.addf %700, %703 : vector<8x128xf32>
    %705 = vector.extract_strided_slice %693 {offsets = [0, 0, 0], sizes = [1, 64, 128], strides = [1, 1, 1]} : vector<2x64x128xf32> to vector<1x64x128xf32>
    %706 = vector.shape_cast %705 : vector<1x64x128xf32> to vector<64x128xf32>
    %cst_175 = arith.constant dense<0.000000e+00> : vector<8x128xf32>
    %707 = tpu.matmul %621, %706, %cst_175 {dimension_numbers = #tpu.dot_dimension_numbers<[1], [0], [0], [1], [0, 0, 1, 1], [], []>} : vector<8x64xf32>, vector<64x128xf32>, vector<8x128xf32> -> vector<8x128xf32>
    %708 = arith.addf %704, %707 : vector<8x128xf32>
    %709 = vector.extract_strided_slice %693 {offsets = [1, 0, 0], sizes = [1, 64, 128], strides = [1, 1, 1]} : vector<2x64x128xf32> to vector<1x64x128xf32>
    %710 = vector.shape_cast %709 : vector<1x64x128xf32> to vector<64x128xf32>
    %cst_176 = arith.constant dense<0.000000e+00> : vector<8x128xf32>
    %711 = tpu.matmul %691, %710, %cst_176 {dimension_numbers = #tpu.dot_dimension_numbers<[1], [0], [0], [1], [0, 0, 1, 1], [], []>} : vector<8x64xf32>, vector<64x128xf32>, vector<8x128xf32> -> vector<8x128xf32>
    %712 = arith.addf %708, %711 : vector<8x128xf32>
    %c0_177 = arith.constant 0 : index
    %c0_178 = arith.constant 0 : index
    %713 = vector.load %arg15[%c0_177, %c0_178] : memref<1x128xf32, #tpu.memory_space<vmem>>, vector<1x128xf32>
    %714 = vector.broadcast %713 : vector<1x128xf32> to vector<8x128xf32>
    %715 = arith.addf %712, %714 : vector<8x128xf32>
    %c0_179 = arith.constant 0 : index
    %c0_180 = arith.constant 0 : index
    %716 = vector.load %arg16[%c0_179, %c0_180] : memref<8x128xf32, #tpu.memory_space<vmem>>, vector<8x128xf32>
    tpu.vector_store %arg16[%c0_179, %c0_180], %715 {strides = array<i32>} : memref<8x128xf32, #tpu.memory_space<vmem>>, vector<8x128xf32>,
    return
  }
  func.func @transform_0(%arg0: i32) -> (i32, i32) {
    %c0_i32 = arith.constant 0 : i32
    %c0_i32_0 = arith.constant 0 : i32
    %c0_i32_1 = arith.constant 0 : i32
    return %c0_i32, %c0_i32_0 : i32, i32
  }
  func.func @transform_1(%arg0: i32) -> (i32, i32) {
    %c0_i32 = arith.constant 0 : i32
    %c0_i32_0 = arith.constant 0 : i32
    %c0_i32_1 = arith.constant 0 : i32
    return %c0_i32, %c0_i32_0 : i32, i32
  }
  func.func @transform_2(%arg0: i32) -> (i32, i32) {
    %c0_i32 = arith.constant 0 : i32
    %c0_i32_0 = arith.constant 0 : i32
    %c0_i32_1 = arith.constant 0 : i32
    return %c0_i32, %c0_i32_0 : i32, i32
  }
  func.func @transform_3(%arg0: i32) -> (i32, i32, i32, i32) {
    %c0_i32 = arith.constant 0 : i32
    %c0_i32_0 = arith.constant 0 : i32
    %c0_i32_1 = arith.constant 0 : i32
    %c0_i32_2 = arith.constant 0 : i32
    %c0_i32_3 = arith.constant 0 : i32
    return %c0_i32, %c0_i32_0, %c0_i32_1, %c0_i32_2 : i32, i32, i32, i32
  }
  func.func @transform_4(%arg0: i32) -> (i32, i32, i32, i32) {
    %c0_i32 = arith.constant 0 : i32
    %c0_i32_0 = arith.constant 0 : i32
    %c0_i32_1 = arith.constant 0 : i32
    %c0_i32_2 = arith.constant 0 : i32
    %c0_i32_3 = arith.constant 0 : i32
    return %c0_i32, %c0_i32_0, %c0_i32_1, %c0_i32_2 : i32, i32, i32, i32
  }
  func.func @transform_5(%arg0: i32) -> (i32, i32, i32, i32) {
    %c0_i32 = arith.constant 0 : i32
    %c0_i32_0 = arith.constant 0 : i32
    %c0_i32_1 = arith.constant 0 : i32
    %c0_i32_2 = arith.constant 0 : i32
    %c0_i32_3 = arith.constant 0 : i32
    return %c0_i32, %c0_i32_0, %c0_i32_1, %c0_i32_2 : i32, i32, i32, i32
  }
  func.func @transform_6(%arg0: i32) -> (i32, i32, i32, i32) {
    %c0_i32 = arith.constant 0 : i32
    %c0_i32_0 = arith.constant 0 : i32
    %c0_i32_1 = arith.constant 0 : i32
    %c0_i32_2 = arith.constant 0 : i32
    %c0_i32_3 = arith.constant 0 : i32
    return %c0_i32, %c0_i32_0, %c0_i32_1, %c0_i32_2 : i32, i32, i32, i32
  }
  func.func @transform_7(%arg0: i32) -> (i32, i32, i32, i32) {
    %c0_i32 = arith.constant 0 : i32
    %c0_i32_0 = arith.constant 0 : i32
    %c0_i32_1 = arith.constant 0 : i32
    %c0_i32_2 = arith.constant 0 : i32
    %c0_i32_3 = arith.constant 0 : i32
    return %c0_i32, %c0_i32_0, %c0_i32_1, %c0_i32_2 : i32, i32, i32, i32
  }
  func.func @transform_8(%arg0: i32) -> (i32, i32, i32, i32) {
    %c0_i32 = arith.constant 0 : i32
    %c0_i32_0 = arith.constant 0 : i32
    %c0_i32_1 = arith.constant 0 : i32
    %c0_i32_2 = arith.constant 0 : i32
    %c0_i32_3 = arith.constant 0 : i32
    return %c0_i32, %c0_i32_0, %c0_i32_1, %c0_i32_2 : i32, i32, i32, i32
  }
  func.func @transform_9(%arg0: i32) -> (i32, i32, i32, i32) {
    %c0_i32 = arith.constant 0 : i32
    %c0_i32_0 = arith.constant 0 : i32
    %c0_i32_1 = arith.constant 0 : i32
    %c0_i32_2 = arith.constant 0 : i32
    %c0_i32_3 = arith.constant 0 : i32
    return %c0_i32, %c0_i32_0, %c0_i32_1, %c0_i32_2 : i32, i32, i32, i32
  }
  func.func @transform_10(%arg0: i32) -> (i32, i32, i32, i32) {
    %c0_i32 = arith.constant 0 : i32
    %c0_i32_0 = arith.constant 0 : i32
    %c0_i32_1 = arith.constant 0 : i32
    %c0_i32_2 = arith.constant 0 : i32
    %c0_i32_3 = arith.constant 0 : i32
    return %c0_i32, %c0_i32_0, %c0_i32_1, %c0_i32_2 : i32, i32, i32, i32
  }
  func.func @transform_11(%arg0: i32) -> (i32, i32, i32) {
    %c0_i32 = arith.constant 0 : i32
    %c0_i32_0 = arith.constant 0 : i32
    %c0_i32_1 = arith.constant 0 : i32
    %c0_i32_2 = arith.constant 0 : i32
    return %c0_i32, %c0_i32_0, %c0_i32_1 : i32, i32, i32
  }
  func.func @transform_12(%arg0: i32) -> (i32, i32) {
    %c0_i32 = arith.constant 0 : i32
    %c0_i32_0 = arith.constant 0 : i32
    %c0_i32_1 = arith.constant 0 : i32
    return %c0_i32, %c0_i32_0 : i32, i32
  }
  func.func @transform_13(%arg0: i32) -> (i32, i32, i32) {
    %c0_i32 = arith.constant 0 : i32
    %c0_i32_0 = arith.constant 0 : i32
    %c0_i32_1 = arith.constant 0 : i32
    %c0_i32_2 = arith.constant 0 : i32
    return %c0_i32, %c0_i32_0, %c0_i32_1 : i32, i32, i32
  }
  func.func @transform_14(%arg0: i32) -> (i32, i32) {
    %c0_i32 = arith.constant 0 : i32
    %c0_i32_0 = arith.constant 0 : i32
    %c0_i32_1 = arith.constant 0 : i32
    return %c0_i32, %c0_i32_0 : i32, i32
  }
  func.func @transform_15(%arg0: i32) -> (i32, i32) {
    %c0_i32 = arith.constant 0 : i32
    %c0_i32_0 = arith.constant 0 : i32
    %c0_i32_1 = arith.constant 0 : i32
    return %c0_i32, %c0_i32_0 : i32, i32
  }
}

</mosaic_0001>

<bundles_post_ra>
// kernel: tpu_custom_call.1
= control target key start
LH: loop header
LB: loop body
LE: loop exit
PB: predicated region body
PF: predicated region fallthrough
CT: control target
= control target key end

     0   :  { %20 = vsyncpa [#allocation3], 0  ;;  %s5562_s0 = inlined_call_operand.vmem [shape: f32[56,16], index: 0, kind: input, shape index: {}]   ;;  %s5563_s1 = inlined_call_operand.vmem [shape: f32[8,64], index: 1, kind: input, shape index: {}]   ;;  %s5564_s2 = inlined_call_operand.hbm [shape: f32[56,64], index: 2, kind: input, shape index: {}]   ;;  %s5565_s3 = inlined_call_operand.hbm [shape: f32[2,4,16,32], index: 3, kind: input, shape index: {}]   ;;  %s5566_s4 = inlined_call_operand.hbm [shape: f32[2,4,32,32], index: 4, kind: input, shape index: {}]   ;;  %s5567_s5 = inlined_call_operand.vmem [shape: f32[2,4,1,32], index: 5, kind: input, shape index: {}]   ;;  %s5568_s6 = inlined_call_operand.hbm [shape: f32[2,2,8,32], index: 6, kind: input, shape index: {}]   ;;  %s5569_s7 = inlined_call_operand.hbm [shape: f32[2,4,64,64], index: 7, kind: input, shape index: {}]   ;;  %s5570_s8 = inlined_call_operand.hbm [shape: f32[2,4,64,64], index: 8, kind: input, shape index: {}]   ;;  %s5571_s9 = inlined_call_operand.hbm [shape: f32[2,4,1,64], index: 9, kind: input, shape index: {}]   ;;  %s5572_s10 = inlined_call_operand.hbm [shape: f32[2,2,8,64], index: 10, kind: input, shape index: {}]   ;;  %s5573_s11 = inlined_call_operand.vmem [shape: f32[2,32,128], index: 11, kind: input, shape index: {}]   ;;  %s5574_s12 = inlined_call_operand.hbm [shape: f32[64,128], index: 12, kind: input, shape index: {}]   ;;  %s5575_s13 = inlined_call_operand.hbm [shape: f32[2,64,128], index: 13, kind: input, shape index: {}]   ;;  %s5576_s14 = inlined_call_operand.vmem [shape: f32[1,128], index: 14, kind: input, shape index: {}]   ;;  %s5577_s15 = inlined_call_operand.hbm [shape: f32[8,128], index: 15, kind: output, shape index: {}]  }
   0x1   :  { %21 = vsyncpa [#allocation6], 0 }
   0x2   :  { %22 = vsyncpa [#allocation9], 0 }
   0x3   :  { %23 = vsyncpa [#allocation12], 0 }
   0x4   :  { %24 = vsyncpa [#allocation15], 0 }
   0x5   :  { %25 = vsyncpa [#allocation18], 0 }
   0x6   :  { %26 = vsyncpa [#allocation4], 0  ;;  %s48_s20 = sshll.u32 %s5565_s3, 4  ;;  %s4353_s21 = smov [#allocation5]   ;;  %s49_s20 = int_to_ptr.hbm [resolvable:$true] %s48_s20 }
   0x7   :  { %s50_s22 = sshll.u32 %s4353_s21, 4  ;;  %s76_s25 = sshll.u32 %s5568_s6, 4  ;;  %s51_s22 = int_to_ptr.vmem [resolvable:$true] %s50_s22  ;;  %s77_s25 = int_to_ptr.hbm [resolvable:$true] %s76_s25 }
   0x8   :  { %s4354_s26 = smov 128   ;;  %s4355_s27 = smov 8  }
   0x9   :  { %56 = dma.hbm_to_vmem [thread:$0]  %s49_s20, 2048, %s51_s22, [#allocation6], %s4354_s26, %s4354_s26, %s4355_s27  }
   0xa   :  { %s4356_s28 = smov [#allocation8]   ;;  %s102_s3 = sshll.u32 %s5570_s8, 4  ;;  %s103_s3 = int_to_ptr.hbm [resolvable:$true] %s102_s3 }
   0xb   :  { %s78_s29 = sshll.u32 %s4356_s28, 4  ;;  %s128_s18 = sshll.u32 %s5572_s10, 4  ;;  %s79_s29 = int_to_ptr.vmem [resolvable:$true] %s78_s29  ;;  %s129_s18 = int_to_ptr.hbm [resolvable:$true] %s128_s18 }
   0xc   :  { %84 = dma.hbm_to_vmem [thread:$0]  %s77_s25, 512, %s79_s29, [#allocation9], %s4354_s26, %s4354_s26, %s4355_s27  }
   0xd   :  { %s4357_s19 = smov [#allocation11]   ;;  %s4358_s20 = smov [#allocation14]  }
   0xe   :  { %s104_s21 = sshll.u32 %s4357_s19, 4  ;;  %s130_s8 = sshll.u32 %s4358_s20, 4  ;;  %s105_s21 = int_to_ptr.vmem [resolvable:$true] %s104_s21  ;;  %s131_s8 = int_to_ptr.vmem [resolvable:$true] %s130_s8 }
   0xf   :  { %110 = dma.hbm_to_vmem [thread:$0]  %s103_s3, 8192, %s105_s21, [#allocation12], %s4354_s26, %s4354_s26, %s4355_s27  }
  0x10   :  { %s35_s24 = sshll.u32 %s5564_s2, 4  ;;  %s61_s28 = sshll.u32 %s5566_s4, 4  ;;  %s36_s24 = int_to_ptr.hbm [resolvable:$true] %s35_s24  ;;  %s62_s28 = int_to_ptr.hbm [resolvable:$true] %s61_s28 }
  0x11   :  { %136 = dma.hbm_to_vmem [thread:$0]  %s129_s18, 512, %s131_s8, [#allocation15], %s4354_s26, %s4354_s26, %s4355_s27  }
  0x12   :  { %s4359_s29 = smov [#allocation2]   ;;  %s4360_s16 = smov [#allocation7]  }
  0x13   :  { %s37_s30 = sshll.u32 %s4359_s29, 4  ;;  %s63_s2 = sshll.u32 %s4360_s16, 4  ;;  %s38_s30 = int_to_ptr.vmem [resolvable:$true] %s37_s30  ;;  %s64_s2 = int_to_ptr.vmem [resolvable:$true] %s63_s2 }
  0x14   :  { %43 = dma.hbm_to_vmem [thread:$0]  %s36_s24, 896, %s38_s30, [#allocation3], %s4354_s26, %s4354_s26, %s4355_s27  }
  0x15   :  { %s89_s17 = sshll.u32 %s5569_s7, 4  ;;  %s115_s19 = sshll.u32 %s5571_s9, 4  ;;  %s90_s17 = int_to_ptr.hbm [resolvable:$true] %s89_s17  ;;  %s116_s19 = int_to_ptr.hbm [resolvable:$true] %s115_s19 }
  0x16   :  { %69 = dma.hbm_to_vmem [thread:$0]  %s62_s28, 4096, %s64_s2, [#allocation6], %s4354_s26, %s4354_s26, %s4355_s27  }
  0x17   :  { %s4361_s21 = smov [#allocation10]   ;;  %s4362_s8 = smov [#allocation13]  }
  0x18   :  { %s91_s20 = sshll.u32 %s4361_s21, 4  ;;  %s117_s7 = sshll.u32 %s4362_s8, 4  ;;  %s92_s20 = int_to_ptr.vmem [resolvable:$true] %s91_s20  ;;  %s118_s7 = int_to_ptr.vmem [resolvable:$true] %s117_s7 }
  0x19   :  { %97 = dma.hbm_to_vmem [thread:$0]  %s90_s17, 8192, %s92_s20, [#allocation9], %s4354_s26, %s4354_s26, %s4355_s27  }
  0x1a   :  { %s4363_s22 = smov 16   ;;  %s4364_s23 = smov 1  }
  0x1b   :  { %123 = dma.hbm_to_vmem [thread:$0]  %s116_s19, 128, %s118_s7, [#allocation12], %s4363_s22, %s4363_s22, %s4364_s23  }
  0x1c   :  { %s143_s25 = sshll.u32 %s5574_s12, 4  ;;  %s4365_s9 = smov [#allocation16]   ;;  %s144_s25 = int_to_ptr.hbm [resolvable:$true] %s143_s25 }
  0x1d   :  { %s145_s28 = sshll.u32 %s4365_s9, 4  ;;  %s156_s16 = sshll.u32 %s5575_s13, 4  ;;  %s146_s28 = int_to_ptr.vmem [resolvable:$true] %s145_s28  ;;  %s157_s16 = int_to_ptr.hbm [resolvable:$true] %s156_s16 }
  0x1e   :  { %151 = dma.hbm_to_vmem [thread:$0]  %s144_s25, 1024, %s146_s28, [#allocation15], %s4354_s26, %s4354_s26, %s4355_s27  }
  0x1f   :  { %s4366_s2 = smov [#allocation17]  }
  0x20   :  { %s158_s3 = sshll.u32 %s4366_s2, 4  ;;  %s159_s3 = int_to_ptr.vmem [resolvable:$true] %s158_s3 }
  0x21   :  { %164 = dma.hbm_to_vmem [thread:$0]  %s157_s16, 2048, %s159_s3, [#allocation18], %s4354_s26, %s4354_s26, %s4355_s27  }
  0x22   :  { %4339 = dma.done.wait [#allocation3], 896  }
  0x23   :  { %4340 = vsyncadd [#allocation3], 4294966400 }
  0x24   :  { %4341 = dma.done.wait [#allocation6], 6144  }
  0x25   :  { %4342 = vsyncadd [#allocation6], 4294961152 }
  0x26   :  { %4343 = dma.done.wait [#allocation9], 8704  }
  0x27   :  { %4344 = vsyncadd [#allocation9], 4294958592 }
  0x28   :  { %4345 = dma.done.wait [#allocation12], 8320  }
  0x29   :  { %4346 = vsyncadd [#allocation12], 4294958976 }
  0x2a   :  { %4347 = dma.done.wait [#allocation15], 1536  }
  0x2b   :  { %4348 = vsyncadd [#allocation15], 4294965760 }
  0x2c   :  { %4349 = dma.done.wait [#allocation18], 2048  }
  0x2d   :  { %4350 = vsyncadd [#allocation18], 4294965248  ;;  %v215_v0 = vld [vmem:[#allocation5 + $0x8] sm:$0xff]  ;;  %v221_v2 = vld [vmem:[#allocation5 + $0x38] sm:$0xff]  ;;  %vm277_vm0 = vcmask 130048   ;;  %vm460_vm1 = vcmask 261120  }
  0x2e   :  { %v219_v1 = vld [vmem:[#allocation5 + $0x28] sm:$0xff]  ;;  %313 = vmatpush.msra.mxu0 %v215_v0  ;;  %3738 = vmatpush.msra.mxu1 %v215_v0  ;;  %v214_v3 = vld [vmem:[#allocation5] sm:$0xff]  ;;  %v220_v5 = vld [vmem:[#allocation5 + $0x30] sm:$0xff]  ;;  %s4367_s17 = smov [#allocation19]   ;;  %s3542_s21 = sshll.u32 %s5577_s15, 4  ;;  %s3543_s21 = int_to_ptr.hbm [resolvable:$true] %s3542_s21 }
  0x2f   :  { %v218_v4 = vld [vmem:[#allocation5 + $0x20] sm:$0xff]  ;;  %395 = vmatpush.msra.mxu2 %v219_v1  ;;  %436 = vmatpush.msra.mxu3 %v221_v2  ;;  %v207_v6 = vld [vmem:[%s5562_s0] sm:$0xff]  ;;  %v4511_v7 = vld [vmem:[%s5562_s0 + $0x30] sm:$0xff]  ;;  %s3540_s4 = sshll.u32 %s4367_s17, 4  ;;  %s3541_s4 = int_to_ptr.vmem [resolvable:$true] %s3540_s4 }
  0x30   :  { %314 = vmatpush.msra.mxu0 %v214_v3  ;;  %3739 = vmatpush.msra.mxu1 %v214_v3  ;;  %v217_v8 = vld [vmem:[#allocation5 + $0x18] sm:$0xff]  ;;  %v216_v10 = vld [vmem:[#allocation5 + $0x10] sm:$0xff]  ;;  %v4541_v19 = vld [vmem:[#allocation7 + $0x28] sm:$0xff] }
  0x31   :  { %396 = vmatpush.msra.mxu2 %v218_v4  ;;  %437 = vmatpush.msra.mxu3 %v220_v5  ;;  %v4513_v9 = vld [vmem:[#allocation7 + $0x18] sm:$0xff]  ;;  %v4523_v13 = vld [vmem:[#allocation7 + $0x30] sm:$0xff]  ;;  %v4552_v20 = vld [vmem:[#allocation7 + $0x8] sm:$0xff] }
  0x32   :  { %3557 = vmatmul.msk.f32.vlgmr.msra.gmra.mxu0 %vm277_vm0, %v207_v6  ;;  %3563 = vmatmul.msk.f32.vlgmr.msra.gmra.mxu1 %vm277_vm0, %v4511_v7  ;;  %v4518_v11 = vld [vmem:[#allocation7 + $0x78] sm:$0xff]  ;;  %v4529_v15 = vld [vmem:[#allocation7 + $0x70] sm:$0xff]  ;;  %v4554_v21 = vld [vmem:[#allocation7 + $0x68] sm:$0xff] }
  0x33   :  { %354 = vmatpush.msrb.mxu1 %v217_v8  ;;  %3571 = vmatmul.msk.f32.vlgmr.msra.gmra.mxu2 %vm277_vm0, %v207_v6  ;;  %v4521_v12 = vld [vmem:[#allocation7 + $0x38] sm:$0xff]  ;;  %v4531_v16 = vld [vmem:[#allocation7 + $0x10] sm:$0xff]  ;;  %v4556_v22 = vld [vmem:[#allocation7] sm:$0xff] }
  0x34   :  { %v4525_v14 = vld [vmem:[#allocation7 + $0x58] sm:$0xff]  ;;  %3578 = vmatmul.msk.f32.vlgmr.msra.gmra.mxu3 %vm277_vm0, %v207_v6  ;;  %476 = vmatpush.msrb.mxu0 %v4513_v9  ;;  %v4533_v17 = vld [vmem:[#allocation7 + $0x50] sm:$0xff]  ;;  %v4570_v24 = vld [vmem:[#allocation7 + $0x20] sm:$0xff] }
  0x35   :  { %355 = vmatpush.msrb.mxu1 %v216_v10  ;;  %v208_v18 = vld [vmem:[%s5562_s0 + $0x8] sm:$0xff]  ;;  %539 = vmatpush.msrb.mxu3 %v4518_v11  ;;  %v209_v23 = vld [vmem:[%s5562_s0 + $0x10] sm:$0xff]  ;;  %v4572_v25 = vld [vmem:[#allocation7 + $0x48] sm:$0xff] }
  0x36   :  { %518 = vmatpush.msrb.mxu2 %v4525_v14  ;;  %477 = vmatpush.msrb.mxu0 %v4531_v16  ;;  %v4574_v26 = vld [vmem:[#allocation7 + $0x40] sm:$0xff]  ;;  %v211_v29 = vld [vmem:[%s5562_s0 + $0x20] sm:$0xff]  ;;  %v212_v30 = vld [vmem:[%s5562_s0 + $0x28] sm:$0xff] }
  0x37   :  { %497 = vmatpush.msra.mxu1 %v4521_v12  ;;  %540 = vmatpush.msrb.mxu3 %v4529_v15  ;;  %v4578_v27 = vld [vmem:[#allocation7 + $0x60] sm:$0xff]  ;;  %v4681_v53 = vld [vmem:[%s5567_s5] ss:$0 sm:$0xff]  ;;  %v4697_v0 = vld [vmem:[%s5567_s5 + $0x3] ss:$0 sm:$0xff] }
  0x38   :  { %519 = vmatpush.msrb.mxu2 %v4533_v17  ;;  %478 = vmatpush.msrb.mxu0 %v4552_v20  ;;  %v210_v28 = vld [vmem:[%s5562_s0 + $0x18] sm:$0xff]  ;;  %v4702_v1 = vld [vmem:[%s5567_s5 + $0x1] ss:$0 sm:$0xff] }
  0x39   :  { %498 = vmatpush.msra.mxu1 %v4523_v13  ;;  %541 = vmatpush.msrb.mxu3 %v4554_v21  ;;  %v270_v31 = vld [vmem:[#allocation8] sm:$0xff] }
  0x3a   :  { %3558 = vmatmul.msk.f32.gmra.mxu0 %vm277_vm0, %v208_v18  ;;  %3564 = vmatmul.msk.f32.vlgmr.msrb.gmra.mxu1 %vm277_vm0, %v207_v6 }
  0x3b   :  { %3572 = vmatmul.msk.f32.gmra.mxu2 %vm277_vm0, %v208_v18  ;;  %499 = vmatpush.msra.mxu1 %v4541_v19 }
  0x3c   :  { %3579 = vmatmul.msk.f32.gmra.mxu3 %vm277_vm0, %v208_v18  ;;  %479 = vmatpush.msrb.mxu0 %v4556_v22 }
  0x3d   :  { %500 = vmatpush.msra.mxu1 %v4570_v24  ;;  %520 = vmatpush.msrb.mxu2 %v4572_v25 }
  0x3e   :  { %626 = vmatpush.msra.mxu0 %v4513_v9  ;;  %542 = vmatpush.msrb.mxu3 %v4578_v27 }
  0x3f   :  { %647 = vmatpush.msrb.mxu1 %v4521_v12  ;;  %521 = vmatpush.msrb.mxu2 %v4574_v26 }
  0x40   :  { %627 = vmatpush.msra.mxu0 %v4531_v16  ;;  %689 = vmatpush.msra.mxu3 %v4518_v11 }
  0x41   :  { %668 = vmatpush.msra.mxu2 %v4525_v14  ;;  %648 = vmatpush.msrb.mxu1 %v4523_v13 }
  0x42   :  { %3559 = vmatmul.msk.f32.gmra.mxu0 %vm277_vm0, %v209_v23  ;;  %3565 = vmatmul.msk.f32.gmra.mxu1 %vm277_vm0, %v208_v18 }
  0x43   :  { %3573 = vmatmul.msk.f32.gmra.mxu2 %vm277_vm0, %v209_v23  ;;  %690 = vmatpush.msra.mxu3 %v4529_v15 }
  0x44   :  { %3580 = vmatmul.msk.f32.gmra.mxu3 %vm277_vm0, %v209_v23  ;;  %628 = vmatpush.msra.mxu0 %v4552_v20 }
  0x45   :  { %649 = vmatpush.msrb.mxu1 %v4541_v19  ;;  %669 = vmatpush.msra.mxu2 %v4533_v17 }
  0x46   :  { %691 = vmatpush.msra.mxu3 %v4554_v21  ;;  %629 = vmatpush.msra.mxu0 %v4556_v22 }
  0x47   :  { %670 = vmatpush.msra.mxu2 %v4572_v25  ;;  %650 = vmatpush.msrb.mxu1 %v4570_v24 }
  0x48   :  { %692 = vmatpush.msra.mxu3 %v4578_v27 }
  0x49   :  { %671 = vmatpush.msra.mxu2 %v4574_v26 }
  0x4a   :  { %3560 = vmatmul.msk.f32.gmra.mxu0 %vm277_vm0, %v210_v28  ;;  %3566 = vmatmul.msk.f32.gmra.mxu1 %vm277_vm0, %v209_v23 }
  0x4b   :  { %3574 = vmatmul.msk.f32.gmra.mxu2 %vm277_vm0, %v210_v28 }
  0x4c   :  { %3581 = vmatmul.msk.f32.gmra.mxu3 %vm277_vm0, %v210_v28 }
  0x52   :  { %3561 = vmatmul.msk.f32.gmra.mxu0 %vm277_vm0, %v211_v29  ;;  %3567 = vmatmul.msk.f32.gmra.mxu1 %vm277_vm0, %v210_v28 }
  0x53   :  { %3575 = vmatmul.msk.f32.gmra.mxu2 %vm277_vm0, %v211_v29 }
  0x54   :  { %3582 = vmatmul.msk.f32.gmra.mxu3 %vm277_vm0, %v211_v29 }
  0x5a   :  { %3562 = vmatmul.msk.f32.gmra.mxu0 %vm277_vm0, %v212_v30  ;;  %3568 = vmatmul.msk.f32.gmra.mxu1 %vm277_vm0, %v211_v29 }
  0x5b   :  { %3576 = vmatmul.msk.f32.gmra.mxu2 %vm277_vm0, %v212_v30 }
  0x5c   :  { %3583 = vmatmul.msk.f32.gmra.mxu3 %vm277_vm0, %v212_v30 }
  0x62   :  { %3569 = vmatmul.msk.f32.gmra.mxu1 %vm277_vm0, %v212_v30  ;;  %3585 = vmatmul.msk.f32.vlgmr.msrb.gmra.mxu0 %vm460_vm1, %v270_v31 }
  0x63   :  { %3577 = vmatmul.msk.f32.gmra.mxu2 %vm277_vm0, %v4511_v7  ;;  %776 = vmatpush.msrb.mxu0 %v4513_v9 }
  0x64   :  { %3584 = vmatmul.msk.f32.gmra.mxu3 %vm277_vm0, %v4511_v7 }
  0x65   :  { %777 = vmatpush.msrb.mxu0 %v4531_v16 }
  0x67   :  { %778 = vmatpush.msrb.mxu0 %v4552_v20 }
  0x69   :  { %779 = vmatpush.msrb.mxu0 %v4556_v22 }
  0x6a   :  { %3570 = vmatmul.msk.f32.gmra.mxu1 %vm277_vm0, %v4511_v7 }
  0x6b   :  { %3587 = vmatmul.msk.f32.vlgmr.msrb.gmra.mxu2 %vm460_vm1, %v270_v31 }
  0x6c   :  { %3588 = vmatmul.msk.f32.vlgmr.msrb.gmra.mxu3 %vm460_vm1, %v270_v31  ;;  %818 = vmatpush.msrb.mxu2 %v4525_v14 }
  0x6d   :  { %839 = vmatpush.msrb.mxu3 %v4518_v11 }
  0x6e   :  { %819 = vmatpush.msrb.mxu2 %v4533_v17 }
  0x6f   :  { %840 = vmatpush.msrb.mxu3 %v4529_v15 }
  0x70   :  { %820 = vmatpush.msrb.mxu2 %v4572_v25 }
  0x71   :  { %841 = vmatpush.msrb.mxu3 %v4554_v21 }
  0x72   :  { %3586 = vmatmul.msk.f32.vlgmr.msra.gmra.mxu1 %vm460_vm1, %v270_v31  ;;  %821 = vmatpush.msrb.mxu2 %v4574_v26 }
  0x73   :  { %797 = vmatpush.msra.mxu1 %v4521_v12  ;;  %842 = vmatpush.msrb.mxu3 %v4578_v27 }
  0x75   :  { %798 = vmatpush.msra.mxu1 %v4523_v13 }
  0x77   :  { %799 = vmatpush.msra.mxu1 %v4541_v19 }
  0x79   :  { %800 = vmatpush.msra.mxu1 %v4570_v24 }
  0xaf   :  { %v316_v32 = vpop.f32.mrf.mxu0  ;;  %v4644_v33 = vpop.f32.mrf.mxu1 }
  0xb0   :  { %5580 = vst [vmem:[#allocation27_spill] sm:$0xff] %v4644_v33  ;;  %v317_v54 = vadd.f32 %v4681_v53, %v316_v32 }
  0xb6   :  { %v398_v37 = vpop.f32.mrf.mxu2 }
  0xb7   :  { %v439_v34 = vpop.f32.mrf.mxu3  ;;  %v4646_v35 = vpop.f32.mrf.mxu0 }
  0xb8   :  { %v357_v36 = vpop.f32.mrf.mxu1  ;;  %v440_v4 = vadd.f32 %v4697_v0, %v439_v34 }
  0xb9   :  { %v358_v5 = vadd.f32 %v4702_v1, %v357_v36  ;;  %v4713_v36 = vld [vmem:[%s5567_s5 + $0x2] ss:$0 sm:$0xff] }
  0xbe   :  { %v4654_v41 = vpop.f32.mrf.mxu2 }
  0xbf   :  { %v4648_v38 = vpop.f32.mrf.mxu3  ;;  %v4650_v39 = vpop.f32.mrf.mxu0 }
  0xc0   :  { %v4652_v40 = vpop.f32.mrf.mxu1 }
  0xc6   :  { %v4662_v45 = vpop.f32.mrf.mxu2 }
  0xc7   :  { %v4656_v42 = vpop.f32.mrf.mxu3  ;;  %v4658_v43 = vpop.f32.mrf.mxu0 }
  0xc8   :  { %v4660_v44 = vpop.f32.mrf.mxu1 }
  0xce   :  { %v4676_v52 = vpop.f32.mrf.mxu2 }
  0xcf   :  { %v4664_v46 = vpop.f32.mrf.mxu3  ;;  %v4666_v47 = vpop.f32.mrf.mxu0 }
  0xd0   :  { %v4668_v48 = vpop.f32.mrf.mxu1 }
  0xd6   :  { %v4688_v60 = vpop.f32.mrf.mxu2 }
  0xd7   :  { %v4670_v49 = vpop.f32.mrf.mxu3  ;;  %v4672_v50 = vpop.f32.mrf.mxu0 }
  0xd8   :  { %v4674_v51 = vpop.f32.mrf.mxu1 }
  0xde   :  { %v4704_v3 = vpop.f32.mrf.mxu2 }
  0xdf   :  { %v4684_v55 = vpop.f32.mrf.mxu3  ;;  %v481_v56 = vpop.f32.mrf.mxu0  ;;  %5584 = vst [vmem:[#allocation31_spill] sm:$0xff] %v4704_v3 }
  0xe0   :  { %5581 = vst [vmem:[#allocation28_spill] sm:$0xff] %v4684_v55  ;;  %v4686_v57 = vpop.f32.mrf.mxu1  ;;  %v484_v58 = vadd.f32 %v481_v56, %v317_v54 }
  0xe2   :  { %v3589_v59 = vmul.f32 -1.442695, %v484_v58 }
  0xe4   :  { %3772 = vpow2.f32 %v3589_v59 }
  0xe6   :  { %v4708_v29 = vpop.f32.mrf.mxu2 }
  0xe7   :  { %v4690_v61 = vpop.f32.mrf.mxu3  ;;  %5585 = vst [vmem:[#allocation32_spill] sm:$0xff] %v4708_v29 }
  0xe8   :  { %5582 = vst [vmem:[#allocation29_spill] sm:$0xff] %v4690_v61  ;;  %v4692_v62 = vpop.f32.mrf.mxu1 }
  0xe9   :  { %5583 = vst [vmem:[#allocation30_spill] sm:$0xff] %v4692_v62 }
  0xea   :  { %v3773_v63 = vpop.eup %3772 }
  0xeb   :  { %v551_v2 = vadd.f32 1.0, %v3773_v63  ;;  %v399_v63 = vadd.f32 %v4713_v36, %v398_v37 }
  0xed   :  { %3774 = vrcp.f32 %v551_v2  ;;  %vm557_vm3 = vweird.f32 %v551_v2 }
  0xee   :  { %v523_v58 = vpop.f32.mrf.mxu2 }
  0xef   :  { %v544_v6 = vpop.f32.mrf.mxu3 }
  0xf0   :  { %v547_v7 = vadd.f32 %v544_v6, %v440_v4  ;;  %v502_v8 = vpop.f32.mrf.mxu1  ;;  %v526_v6 = vadd.f32 %v523_v58, %v399_v63 }
  0xf1   :  { %v505_v10 = vadd.f32 %v502_v8, %v358_v5 }
  0xf2   :  { %v3591_v18 = vmul.f32 -1.442695, %v547_v7 }
  0xf3   :  { %v3590_v23 = vmul.f32 -1.442695, %v505_v10  ;;  %v3775_v28 = vpop.eup %3774  ;;  %v563_v10 = vand.u32 2147483648, %v551_v2 }
  0xf4   :  { %3776 = vpow2.f32 %v3591_v18  ;;  %v553_v30 = vmul.f32 %v3775_v28, %v551_v2  ;;  %vm558_vm2 = vweird.f32 %v3775_v28 }
  0xf5   :  { %3778 = vpow2.f32 %v3590_v23  ;;  %v561_v23 = vand.u32 2147483647, %v551_v2  ;;  %vm559_vm4 = vmor %vm557_vm3, %vm558_vm2  ;;  %v564_v29 = vor.u32 1.1754944e-38, %v563_v10 }
  0xf6   :  { %v554_v34 = vsub.f32 1.0, %v553_v30 }
  0xf7   :  { %vm562_vm6 = vcmp.eq.f32.partialorder %v561_v23, 8.507059e+37 }
  0xf8   :  { %v555_v59 = vmul.f32 %v3775_v28, %v554_v34 }
  0xfa   :  { %v3777_v31 = vpop.eup %3776  ;;  %v556_v7 = vadd.f32 %v3775_v28, %v555_v59  ;;  %v272_v59 = vld [vmem:[#allocation8 + $0x10] sm:$0xff] }
  0xfb   :  { %v3779_v32 = vpop.eup %3778  ;;  %v590_v54 = vadd.f32 1.0, %v3777_v31 }
  0xfc   :  { %v570_v56 = vadd.f32 1.0, %v3779_v32  ;;  %v560_v32 = vsel %vm559_vm4, %v3775_v28, %v556_v7 }
  0xfd   :  { %3780 = vrcp.f32 %v590_v54  ;;  %v565_v58 = vsel %vm562_vm6, %v564_v29, %v560_v32  ;;  %v602_v10 = vand.u32 2147483648, %v590_v54  ;;  %vm596_vm11 = vweird.f32 %v590_v54 }
  0xfe   :  { %3782 = vrcp.f32 %v570_v56  ;;  %v582_v31 = vand.u32 2147483648, %v570_v56  ;;  %v580_v34 = vand.u32 2147483647, %v570_v56  ;;  %vm576_vm7 = vweird.f32 %v570_v56 }
  0xff   :  { %3784 = vtanh.f32 %v526_v6  ;;  %v443_v32 = vadd.f32 %v4697_v0, %v4648_v38 }
 0x100   :  { %v583_v63 = vor.u32 1.1754944e-38, %v582_v31  ;;  %vm581_vm9 = vcmp.eq.f32.partialorder %v580_v34, 8.507059e+37 }
 0x103   :  { %v3781_v4 = vpop.eup %3780 }
 0x104   :  { %v3783_v5 = vpop.eup %3782  ;;  %v592_v18 = vmul.f32 %v3781_v4, %v590_v54  ;;  %vm597_vm10 = vweird.f32 %v3781_v4 }
 0x105   :  { %v572_v8 = vmul.f32 %v3783_v5, %v570_v56  ;;  %vm577_vm5 = vweird.f32 %v3783_v5  ;;  %v3785_v2 = vpop.eup %3784  ;;  %vm598_vm12 = vmor %vm596_vm11, %vm597_vm10  ;;  %v603_v56 = vor.u32 1.1754944e-38, %v602_v10 }
 0x106   :  { %v593_v37 = vsub.f32 1.0, %v592_v18  ;;  %vm578_vm8 = vmor %vm576_vm7, %vm577_vm5  ;;  %v607_v6 = vmul.f32 %v3785_v2, %v565_v58 }
 0x107   :  { %v573_v30 = vsub.f32 1.0, %v572_v8 }
 0x108   :  { %v594_v8 = vmul.f32 %v3781_v4, %v593_v37 }
 0x109   :  { %v574_v61 = vmul.f32 %v3783_v5, %v573_v30 }
 0x10a   :  { %v595_v7 = vadd.f32 %v3781_v4, %v594_v8 }
 0x10b   :  { %v575_v62 = vadd.f32 %v3783_v5, %v574_v61  ;;  %v600_v61 = vand.u32 2147483647, %v590_v54 }
 0x10c   :  { %v599_v29 = vsel %vm598_vm12, %v3781_v4, %v595_v7 }
 0x10d   :  { %v579_v33 = vsel %vm578_vm8, %v3783_v5, %v575_v62  ;;  %vm601_vm13 = vcmp.eq.f32.partialorder %v600_v61, 8.507059e+37 }
 0x10e   :  { %v584_v3 = vsel %vm581_vm9, %v583_v63, %v579_v33  ;;  %v604_v5 = vsel %vm601_vm13, %v603_v56, %v599_v29  ;;  %v320_v33 = vadd.f32 %v4681_v53, %v4646_v35 }
 0x10f   :  { %v606_v55 = vmul.f32 %v584_v3, %v272_v59 }
 0x111   :  { %v4716_v28 = vadd.f32 %v607_v6, %v606_v55  ;;  %v361_v55 = vadd.f32 %v4702_v1, %v4652_v40  ;;  %v402_v6 = vadd.f32 %v4713_v36, %v4654_v41 }
 0x113   :  { %3786 = vtanh.f32 %v4716_v28 }
 0x119   :  { %v3787_v62 = vpop.eup %3786 }
 0x11a   :  { %v610_v18 = vmul.f32 %v3787_v62, %v604_v5 }
 0x11c   :  { %3592 = vmatmul.msk.f32.vlgmr.msra.gmra.mxu0 %vm460_vm1, %v610_v18  ;;  %3593 = vmatmul.msk.f32.vlgmr.msrb.gmra.mxu1 %vm460_vm1, %v610_v18 }
 0x11d   :  { %3594 = vmatmul.msk.f32.vlgmr.msra.gmra.mxu2 %vm460_vm1, %v610_v18  ;;  %3595 = vmatmul.msk.f32.vlgmr.msra.gmra.mxu3 %vm460_vm1, %v610_v18 }
 0x11e   :  { %926 = vmatpush.msra.mxu0 %v4513_v9  ;;  %947 = vmatpush.msrb.mxu1 %v4521_v12 }
 0x11f   :  { %968 = vmatpush.msra.mxu2 %v4525_v14  ;;  %989 = vmatpush.msra.mxu3 %v4518_v11 }
 0x120   :  { %927 = vmatpush.msra.mxu0 %v4531_v16  ;;  %948 = vmatpush.msrb.mxu1 %v4523_v13 }
 0x121   :  { %969 = vmatpush.msra.mxu2 %v4533_v17  ;;  %990 = vmatpush.msra.mxu3 %v4529_v15 }
 0x122   :  { %928 = vmatpush.msra.mxu0 %v4552_v20  ;;  %949 = vmatpush.msrb.mxu1 %v4541_v19 }
 0x123   :  { %970 = vmatpush.msra.mxu2 %v4572_v25  ;;  %991 = vmatpush.msra.mxu3 %v4554_v21 }
 0x124   :  { %929 = vmatpush.msra.mxu0 %v4556_v22  ;;  %950 = vmatpush.msrb.mxu1 %v4570_v24 }
 0x125   :  { %971 = vmatpush.msra.mxu2 %v4574_v26  ;;  %992 = vmatpush.msra.mxu3 %v4578_v27 }
 0x199   :  { %v631_v3 = vpop.f32.mrf.mxu0  ;;  %v652_v54 = vpop.f32.mrf.mxu1 }
 0x19a   :  { %v634_v4 = vadd.f32 %v631_v3, %v320_v33  ;;  %v655_v23 = vadd.f32 %v652_v54, %v361_v55 }
 0x19c   :  { %v3596_v30 = vmul.f32 -1.442695, %v634_v4  ;;  %v3597_v31 = vmul.f32 -1.442695, %v655_v23 }
 0x19e   :  { %3788 = vpow2.f32 %v3596_v30 }
 0x19f   :  { %3790 = vpow2.f32 %v3597_v31 }
 0x1a0   :  { %v694_v34 = vpop.f32.mrf.mxu3  ;;  %v673_v40 = vpop.f32.mrf.mxu2 }
 0x1a1   :  { %v697_v37 = vadd.f32 %v694_v34, %v443_v32  ;;  %v676_v61 = vadd.f32 %v673_v40, %v402_v6 }
 0x1a3   :  { %v3598_v58 = vmul.f32 -1.442695, %v697_v37 }
 0x1a4   :  { %v3789_v59 = vpop.eup %3788 }
 0x1a5   :  { %v3791_v63 = vpop.eup %3790  ;;  %v701_v35 = vadd.f32 1.0, %v3789_v59  ;;  %3792 = vpow2.f32 %v3598_v58 }
 0x1a6   :  { %v720_v2 = vadd.f32 1.0, %v3791_v63 }
 0x1a7   :  { %3794 = vrcp.f32 %v701_v35  ;;  %v713_v18 = vand.u32 2147483648, %v701_v35  ;;  %v711_v3 = vand.u32 2147483647, %v701_v35  ;;  %vm707_vm2 = vweird.f32 %v701_v35 }
 0x1a8   :  { %3796 = vrcp.f32 %v720_v2  ;;  %v732_v33 = vand.u32 2147483648, %v720_v2  ;;  %v730_v4 = vand.u32 2147483647, %v720_v2  ;;  %vm726_vm3 = vweird.f32 %v720_v2 }
 0x1a9   :  { %v714_v30 = vor.u32 1.1754944e-38, %v713_v18  ;;  %vm712_vm6 = vcmp.eq.f32.partialorder %v711_v3, 8.507059e+37 }
 0x1aa   :  { %v733_v34 = vor.u32 1.1754944e-38, %v732_v33  ;;  %vm731_vm7 = vcmp.eq.f32.partialorder %v730_v4, 8.507059e+37 }
 0x1ab   :  { %v3793_v8 = vpop.eup %3792 }
 0x1ac   :  { %v740_v7 = vadd.f32 1.0, %v3793_v8 }
 0x1ad   :  { %v3795_v10 = vpop.eup %3794 }
 0x1ae   :  { %v3797_v38 = vpop.eup %3796  ;;  %v703_v29 = vmul.f32 %v3795_v10, %v701_v35  ;;  %3798 = vrcp.f32 %v740_v7  ;;  %vm708_vm14 = vweird.f32 %v3795_v10  ;;  %vm746_vm9 = vweird.f32 %v740_v7 }
 0x1af   :  { %v722_v56 = vmul.f32 %v3797_v38, %v720_v2  ;;  %3800 = vtanh.f32 %v676_v61  ;;  %vm727_vm15 = vweird.f32 %v3797_v38  ;;  %vm709_vm4 = vmor %vm707_vm2, %vm708_vm14 }
 0x1b0   :  { %v704_v62 = vsub.f32 1.0, %v703_v29  ;;  %vm728_vm5 = vmor %vm726_vm3, %vm727_vm15 }
 0x1b1   :  { %v723_v5 = vsub.f32 1.0, %v722_v56  ;;  %v752_v56 = vand.u32 2147483648, %v740_v7 }
 0x1b2   :  { %v705_v55 = vmul.f32 %v3795_v10, %v704_v62 }
 0x1b3   :  { %v724_v54 = vmul.f32 %v3797_v38, %v723_v5  ;;  %v753_v5 = vor.u32 1.1754944e-38, %v752_v56 }
 0x1b4   :  { %v3799_v23 = vpop.eup %3798  ;;  %v706_v41 = vadd.f32 %v3795_v10, %v705_v55 }
 0x1b5   :  { %v725_v31 = vadd.f32 %v3797_v38, %v724_v54  ;;  %v742_v32 = vmul.f32 %v3799_v23, %v740_v7  ;;  %v3801_v58 = vpop.eup %3800  ;;  %vm747_vm8 = vweird.f32 %v3799_v23 }
 0x1b6   :  { %v710_v37 = vsel %vm709_vm4, %v3795_v10, %v706_v41  ;;  %v750_v10 = vand.u32 2147483647, %v740_v7  ;;  %vm748_vm10 = vmor %vm746_vm9, %vm747_vm8  ;;  %v364_v7 = vadd.f32 %v4702_v1, %v4660_v44 }
 0x1b7   :  { %v715_v59 = vsel %vm712_vm6, %v714_v30, %v710_v37  ;;  %v729_v63 = vsel %vm728_vm5, %v3797_v38, %v725_v31  ;;  %v743_v40 = vsub.f32 1.0, %v742_v32  ;;  %v446_v30 = vadd.f32 %v4697_v0, %v4656_v42 }
 0x1b8   :  { %v734_v8 = vsel %vm731_vm7, %v733_v34, %v729_v63  ;;  %v757_v6 = vmul.f32 %v3801_v58, %v715_v59  ;;  %vm751_vm11 = vcmp.eq.f32.partialorder %v750_v10, 8.507059e+37 }
 0x1b9   :  { %v756_v61 = vmul.f32 %v734_v8, %v4716_v28  ;;  %v744_v29 = vmul.f32 %v3799_v23, %v743_v40  ;;  %v323_v28 = vadd.f32 %v4681_v53, %v4650_v39  ;;  %v405_v40 = vadd.f32 %v4713_v36, %v4662_v45 }
 0x1bb   :  { %v4748_v35 = vadd.f32 %v757_v6, %v756_v61  ;;  %v745_v2 = vadd.f32 %v3799_v23, %v744_v29 }
 0x1bd   :  { %3802 = vtanh.f32 %v4748_v35  ;;  %v749_v62 = vsel %vm748_vm10, %v3799_v23, %v745_v2 }
 0x1be   :  { %v754_v18 = vsel %vm751_vm11, %v753_v5, %v749_v62 }
 0x1c3   :  { %v3803_v38 = vpop.eup %3802 }
 0x1c4   :  { %v760_v33 = vmul.f32 %v3803_v38, %v754_v18 }
 0x1c6   :  { %3599 = vmatmul.msk.f32.vlgmr.msrb.gmra.mxu0 %vm460_vm1, %v760_v33  ;;  %3600 = vmatmul.msk.f32.vlgmr.msra.gmra.mxu1 %vm460_vm1, %v760_v33 }
 0x1c7   :  { %3601 = vmatmul.msk.f32.vlgmr.msrb.gmra.mxu2 %vm460_vm1, %v760_v33  ;;  %3602 = vmatmul.msk.f32.vlgmr.msrb.gmra.mxu3 %vm460_vm1, %v760_v33 }
 0x1c8   :  { %1076 = vmatpush.msrb.mxu0 %v4513_v9  ;;  %1097 = vmatpush.msra.mxu1 %v4521_v12 }
 0x1c9   :  { %1118 = vmatpush.msrb.mxu2 %v4525_v14  ;;  %1139 = vmatpush.msrb.mxu3 %v4518_v11 }
 0x1ca   :  { %1077 = vmatpush.msrb.mxu0 %v4531_v16  ;;  %1098 = vmatpush.msra.mxu1 %v4523_v13 }
 0x1cb   :  { %1119 = vmatpush.msrb.mxu2 %v4533_v17  ;;  %1140 = vmatpush.msrb.mxu3 %v4529_v15 }
 0x1cc   :  { %1078 = vmatpush.msrb.mxu0 %v4552_v20  ;;  %1099 = vmatpush.msra.mxu1 %v4541_v19 }
 0x1cd   :  { %1120 = vmatpush.msrb.mxu2 %v4572_v25  ;;  %1141 = vmatpush.msrb.mxu3 %v4554_v21 }
 0x1ce   :  { %1079 = vmatpush.msrb.mxu0 %v4556_v22  ;;  %1100 = vmatpush.msra.mxu1 %v4570_v24 }
 0x1cf   :  { %1121 = vmatpush.msrb.mxu2 %v4574_v26  ;;  %1142 = vmatpush.msrb.mxu3 %v4578_v27 }
 0x243   :  { %v781_v55 = vpop.f32.mrf.mxu0  ;;  %v802_v3 = vpop.f32.mrf.mxu1 }
 0x244   :  { %v784_v54 = vadd.f32 %v781_v55, %v323_v28  ;;  %v805_v4 = vadd.f32 %v802_v3, %v364_v7 }
 0x246   :  { %v3603_v23 = vmul.f32 -1.442695, %v784_v54  ;;  %v3604_v41 = vmul.f32 -1.442695, %v805_v4 }
 0x248   :  { %3804 = vpow2.f32 %v3603_v23 }
 0x249   :  { %3806 = vpow2.f32 %v3604_v41 }
 0x24a   :  { %v844_v31 = vpop.f32.mrf.mxu3  ;;  %v823_v44 = vpop.f32.mrf.mxu2 }
 0x24b   :  { %v847_v32 = vadd.f32 %v844_v31, %v446_v30  ;;  %v826_v61 = vadd.f32 %v823_v44, %v405_v40 }
 0x24d   :  { %v3605_v34 = vmul.f32 -1.442695, %v847_v32 }
 0x24e   :  { %v3805_v37 = vpop.eup %3804 }
 0x24f   :  { %v3807_v58 = vpop.eup %3806  ;;  %v851_v39 = vadd.f32 1.0, %v3805_v37  ;;  %3808 = vpow2.f32 %v3605_v34 }
 0x250   :  { %v870_v59 = vadd.f32 1.0, %v3807_v58 }
 0x251   :  { %3810 = vrcp.f32 %v851_v39  ;;  %v863_v62 = vand.u32 2147483648, %v851_v39  ;;  %v861_v18 = vand.u32 2147483647, %v851_v39  ;;  %vm857_vm14 = vweird.f32 %v851_v39 }
 0x252   :  { %3812 = vrcp.f32 %v870_v59  ;;  %v882_v5 = vand.u32 2147483648, %v870_v59  ;;  %v880_v28 = vand.u32 2147483647, %v870_v59  ;;  %vm876_vm15 = vweird.f32 %v870_v59 }
 0x253   :  { %v864_v55 = vor.u32 1.1754944e-38, %v863_v62  ;;  %vm862_vm4 = vcmp.eq.f32.partialorder %v861_v18, 8.507059e+37  ;;  %v408_v18 = vadd.f32 %v4713_v36, %v4676_v52 }
 0x254   :  { %v883_v4 = vor.u32 1.1754944e-38, %v882_v5  ;;  %vm881_vm5 = vcmp.eq.f32.partialorder %v880_v28, 8.507059e+37 }
 0x255   :  { %v3809_v63 = vpop.eup %3808 }
 0x256   :  { %v890_v8 = vadd.f32 1.0, %v3809_v63 }
 0x257   :  { %v3811_v6 = vpop.eup %3810 }
 0x258   :  { %v3813_v42 = vpop.eup %3812  ;;  %v853_v29 = vmul.f32 %v3811_v6, %v851_v39  ;;  %3814 = vrcp.f32 %v890_v8  ;;  %vm858_vm12 = vweird.f32 %v3811_v6  ;;  %v902_v63 = vand.u32 2147483648, %v890_v8 }
 0x259   :  { %v872_v2 = vmul.f32 %v3813_v42, %v870_v59  ;;  %3816 = vtanh.f32 %v826_v61  ;;  %vm877_vm13 = vweird.f32 %v3813_v42  ;;  %vm859_vm2 = vmor %vm857_vm14, %vm858_vm12  ;;  %vm896_vm7 = vweird.f32 %v890_v8 }
 0x25a   :  { %v854_v56 = vsub.f32 1.0, %v853_v29  ;;  %vm878_vm3 = vmor %vm876_vm15, %vm877_vm13  ;;  %v900_v40 = vand.u32 2147483647, %v890_v8  ;;  %v903_v61 = vor.u32 1.1754944e-38, %v902_v63 }
 0x25b   :  { %v873_v10 = vsub.f32 1.0, %v872_v2 }
 0x25c   :  { %v855_v38 = vmul.f32 %v3811_v6, %v854_v56  ;;  %vm901_vm9 = vcmp.eq.f32.partialorder %v900_v40, 8.507059e+37 }
 0x25d   :  { %v874_v33 = vmul.f32 %v3813_v42, %v873_v10 }
 0x25e   :  { %v3815_v7 = vpop.eup %3814  ;;  %v856_v45 = vadd.f32 %v3811_v6, %v855_v38 }
 0x25f   :  { %v875_v3 = vadd.f32 %v3813_v42, %v874_v33  ;;  %v892_v54 = vmul.f32 %v3815_v7, %v890_v8  ;;  %v3817_v41 = vpop.eup %3816  ;;  %vm897_vm6 = vweird.f32 %v3815_v7 }
 0x260   :  { %v860_v23 = vsel %vm859_vm2, %v3811_v6, %v856_v45  ;;  %vm898_vm8 = vmor %vm896_vm7, %vm897_vm6 }
 0x261   :  { %v865_v30 = vsel %vm862_vm4, %v864_v55, %v860_v23  ;;  %v879_v31 = vsel %vm878_vm3, %v3813_v42, %v875_v3  ;;  %v893_v32 = vsub.f32 1.0, %v892_v54 }
 0x262   :  { %v884_v34 = vsel %vm881_vm5, %v883_v4, %v879_v31  ;;  %v907_v37 = vmul.f32 %v3817_v41, %v865_v30 }
 0x263   :  { %v906_v58 = vmul.f32 %v884_v34, %v4748_v35  ;;  %v894_v44 = vmul.f32 %v3815_v7, %v893_v32 }
 0x265   :  { %v4780_v39 = vadd.f32 %v907_v37, %v906_v58  ;;  %v895_v59 = vadd.f32 %v3815_v7, %v894_v44 }
 0x267   :  { %3818 = vtanh.f32 %v4780_v39  ;;  %v899_v6 = vsel %vm898_vm8, %v3815_v7, %v895_v59 }
 0x268   :  { %v904_v29 = vsel %vm901_vm9, %v903_v61, %v899_v6 }
 0x26d   :  { %v3819_v42 = vpop.eup %3818 }
 0x26e   :  { %v910_v2 = vmul.f32 %v3819_v42, %v904_v29 }
 0x270   :  { %3606 = vmatmul.msk.f32.vlgmr.msra.gmra.mxu0 %vm460_vm1, %v910_v2  ;;  %3607 = vmatmul.msk.f32.vlgmr.msrb.gmra.mxu1 %vm460_vm1, %v910_v2 }
 0x271   :  { %3608 = vmatmul.msk.f32.vlgmr.msra.gmra.mxu2 %vm460_vm1, %v910_v2  ;;  %3609 = vmatmul.msk.f32.vlgmr.msra.gmra.mxu3 %vm460_vm1, %v910_v2 }
 0x272   :  { %1226 = vmatpush.msra.mxu0 %v4513_v9  ;;  %1247 = vmatpush.msrb.mxu1 %v4521_v12  ;;  %v326_v9 = vadd.f32 %v4681_v53, %v4658_v43 }
 0x273   :  { %1268 = vmatpush.msra.mxu2 %v4525_v14  ;;  %1289 = vmatpush.msra.mxu3 %v4518_v11  ;;  %v367_v11 = vadd.f32 %v4702_v1, %v4668_v48 }
 0x274   :  { %1227 = vmatpush.msra.mxu0 %v4531_v16  ;;  %1248 = vmatpush.msrb.mxu1 %v4523_v13 }
 0x275   :  { %1269 = vmatpush.msra.mxu2 %v4533_v17  ;;  %1290 = vmatpush.msra.mxu3 %v4529_v15 }
 0x276   :  { %1228 = vmatpush.msra.mxu0 %v4552_v20  ;;  %1249 = vmatpush.msrb.mxu1 %v4541_v19  ;;  %v449_v19 = vadd.f32 %v4697_v0, %v4664_v46 }
 0x277   :  { %1270 = vmatpush.msra.mxu2 %v4572_v25  ;;  %1291 = vmatpush.msra.mxu3 %v4554_v21 }
 0x278   :  { %1229 = vmatpush.msra.mxu0 %v4556_v22  ;;  %1250 = vmatpush.msrb.mxu1 %v4570_v24 }
 0x279   :  { %1271 = vmatpush.msra.mxu2 %v4574_v26  ;;  %1292 = vmatpush.msra.mxu3 %v4578_v27 }
 0x2ed   :  { %v931_v12 = vpop.f32.mrf.mxu0  ;;  %v952_v13 = vpop.f32.mrf.mxu1 }
 0x2ee   :  { %v934_v14 = vadd.f32 %v931_v12, %v326_v9  ;;  %v955_v15 = vadd.f32 %v952_v13, %v367_v11 }
 0x2f0   :  { %v3610_v16 = vmul.f32 -1.442695, %v934_v14  ;;  %v3611_v17 = vmul.f32 -1.442695, %v955_v15 }
 0x2f2   :  { %3820 = vpow2.f32 %v3610_v16 }
 0x2f3   :  { %3822 = vpow2.f32 %v3611_v17 }
 0x2f4   :  { %v994_v35 = vpop.f32.mrf.mxu3  ;;  %v973_v48 = vpop.f32.mrf.mxu2 }
 0x2f5   :  { %v997_v8 = vadd.f32 %v994_v35, %v449_v19  ;;  %v976_v7 = vadd.f32 %v973_v48, %v408_v18  ;;  %v4034_v48 = vld [vmem:[#allocation7 + $0x50] sm:$0xff]  ;;  %v4036_v18 = vld [vmem:[#allocation7 + $0x28] sm:$0xff] }
 0x2f7   :  { %v3612_v56 = vmul.f32 -1.442695, %v997_v8 }
 0x2f8   :  { %v3821_v10 = vpop.eup %3820 }
 0x2f9   :  { %v3823_v62 = vpop.eup %3822  ;;  %v1001_v43 = vadd.f32 1.0, %v3821_v10  ;;  %3824 = vpow2.f32 %v3612_v56  ;;  %v4029_v56 = vld [vmem:[#allocation7 + $0x38] sm:$0xff] }
 0x2fa   :  { %v1020_v5 = vadd.f32 1.0, %v3823_v62  ;;  %v4030_v10 = vld [vmem:[#allocation7 + $0x58] sm:$0xff] }
 0x2fb   :  { %3826 = vrcp.f32 %v1001_v43  ;;  %v1013_v4 = vand.u32 2147483648, %v1001_v43  ;;  %v1011_v30 = vand.u32 2147483647, %v1001_v43  ;;  %vm1007_vm12 = vweird.f32 %v1001_v43  ;;  %v4031_v62 = vld [vmem:[#allocation7 + $0x78] sm:$0xff] }
 0x2fc   :  { %3828 = vrcp.f32 %v1020_v5  ;;  %v1032_v23 = vand.u32 2147483648, %v1020_v5  ;;  %v1030_v32 = vand.u32 2147483647, %v1020_v5  ;;  %vm1026_vm13 = vweird.f32 %v1020_v5 }
 0x2fd   :  { %v1014_v37 = vor.u32 1.1754944e-38, %v1013_v4  ;;  %vm1012_vm2 = vcmp.eq.f32.partialorder %v1011_v30, 8.507059e+37 }
 0x2fe   :  { %v1033_v59 = vor.u32 1.1754944e-38, %v1032_v23  ;;  %vm1031_vm3 = vcmp.eq.f32.partialorder %v1030_v32, 8.507059e+37  ;;  %v411_v23 = vadd.f32 %v4713_v36, %v4688_v60 }
 0x2ff   :  { %v3825_v38 = vpop.eup %3824 }
 0x300   :  { %v1040_v33 = vadd.f32 1.0, %v3825_v38  ;;  %v4035_v38 = vld [vmem:[#allocation7 + $0x70] sm:$0xff] }
 0x301   :  { %v3827_v28 = vpop.eup %3826 }
 0x302   :  { %v3829_v46 = vpop.eup %3828  ;;  %v1003_v45 = vmul.f32 %v3827_v28, %v1001_v43  ;;  %3830 = vrcp.f32 %v1040_v33  ;;  %vm1008_vm10 = vweird.f32 %v3827_v28  ;;  %v1052_v14 = vand.u32 2147483648, %v1040_v33  ;;  %v4032_v43 = vld [vmem:[#allocation7 + $0x10] sm:$0xff] }
 0x303   :  { %v1022_v55 = vmul.f32 %v3829_v46, %v1020_v5  ;;  %3832 = vtanh.f32 %v976_v7  ;;  %vm1027_vm11 = vweird.f32 %v3829_v46  ;;  %vm1009_vm14 = vmor %vm1007_vm12, %vm1008_vm10  ;;  %vm1046_vm5 = vweird.f32 %v1040_v33  ;;  %v4033_v5 = vld [vmem:[#allocation7 + $0x30] sm:$0xff] }
 0x304   :  { %v1004_v3 = vsub.f32 1.0, %v1003_v45  ;;  %vm1028_vm15 = vmor %vm1026_vm13, %vm1027_vm11  ;;  %v1050_v15 = vand.u32 2147483647, %v1040_v33  ;;  %v1053_v17 = vor.u32 1.1754944e-38, %v1052_v14 }
 0x305   :  { %v1023_v54 = vsub.f32 1.0, %v1022_v55 }
 0x306   :  { %v1005_v41 = vmul.f32 %v3827_v28, %v1004_v3  ;;  %vm1051_vm7 = vcmp.eq.f32.partialorder %v1050_v15, 8.507059e+37 }
 0x307   :  { %v1024_v31 = vmul.f32 %v3829_v46, %v1023_v54 }
 0x308   :  { %v3831_v34 = vpop.eup %3830  ;;  %v1006_v52 = vadd.f32 %v3827_v28, %v1005_v41 }
 0x309   :  { %v1025_v58 = vadd.f32 %v3829_v46, %v1024_v31  ;;  %v1042_v44 = vmul.f32 %v3831_v34, %v1040_v33  ;;  %v3833_v40 = vpop.eup %3832  ;;  %vm1047_vm4 = vweird.f32 %v3831_v34  ;;  %v329_v33 = vadd.f32 %v4681_v53, %v4666_v47 }
 0x30a   :  { %v1010_v63 = vsel %vm1009_vm14, %v3827_v28, %v1006_v52  ;;  %vm1048_vm6 = vmor %vm1046_vm5, %vm1047_vm4 }
 0x30b   :  { %v1015_v6 = vsel %vm1012_vm2, %v1014_v37, %v1010_v63  ;;  %v1029_v61 = vsel %vm1028_vm15, %v3829_v46, %v1025_v58  ;;  %v1043_v42 = vsub.f32 1.0, %v1042_v44 }
 0x30c   :  { %v1034_v29 = vsel %vm1031_vm3, %v1033_v59, %v1029_v61  ;;  %v1057_v2 = vmul.f32 %v3833_v40, %v1015_v6 }
 0x30d   :  { %v1056_v9 = vmul.f32 %v1034_v29, %v4780_v39  ;;  %v1044_v11 = vmul.f32 %v3831_v34, %v1043_v42  ;;  %v4028_v39 = vld [vmem:[#allocation7 + $0x18] sm:$0xff] }
 0x30f   :  { %v4812_v12 = vadd.f32 %v1057_v2, %v1056_v9  ;;  %v1045_v13 = vadd.f32 %v3831_v34, %v1044_v11 }
 0x311   :  { %3834 = vtanh.f32 %v4812_v12  ;;  %v1049_v16 = vsel %vm1048_vm6, %v3831_v34, %v1045_v13 }
 0x312   :  { %v1054_v35 = vsel %vm1051_vm7, %v1053_v17, %v1049_v16 }
 0x317   :  { %v3835_v19 = vpop.eup %3834 }
 0x318   :  { %v1060_v8 = vmul.f32 %v3835_v19, %v1054_v35 }
 0x31a   :  { %3613 = vmatmul.msk.f32.vlgmr.msrb.gmra.mxu0 %vm460_vm1, %v1060_v8  ;;  %3614 = vmatmul.msk.f32.vlgmr.msra.gmra.mxu1 %vm460_vm1, %v1060_v8 }
 0x31b   :  { %3615 = vmatmul.msk.f32.vlgmr.msrb.gmra.mxu2 %vm460_vm1, %v1060_v8  ;;  %3616 = vmatmul.msk.f32.vlgmr.msrb.gmra.mxu3 %vm460_vm1, %v1060_v8 }
 0x31c   :  { %1376 = vmatpush.msrb.mxu0 %v4028_v39  ;;  %1397 = vmatpush.msra.mxu1 %v4029_v56 }
 0x31d   :  { %1418 = vmatpush.msrb.mxu2 %v4030_v10  ;;  %1439 = vmatpush.msrb.mxu3 %v4031_v62 }
 0x31e   :  { %1377 = vmatpush.msrb.mxu0 %v4032_v43  ;;  %1398 = vmatpush.msra.mxu1 %v4033_v5 }
 0x31f   :  { %1419 = vmatpush.msrb.mxu2 %v4034_v48  ;;  %1440 = vmatpush.msrb.mxu3 %v4035_v38 }
 0x320   :  { %1378 = vmatpush.msrb.mxu0 %v4552_v20  ;;  %1399 = vmatpush.msra.mxu1 %v4036_v18  ;;  %v370_v20 = vadd.f32 %v4702_v1, %v4674_v51 }
 0x321   :  { %1420 = vmatpush.msrb.mxu2 %v4572_v25  ;;  %1441 = vmatpush.msrb.mxu3 %v4554_v21 }
 0x322   :  { %1379 = vmatpush.msrb.mxu0 %v4556_v22  ;;  %1400 = vmatpush.msra.mxu1 %v4570_v24  ;;  %v452_v22 = vadd.f32 %v4697_v0, %v4670_v49 }
 0x323   :  { %1421 = vmatpush.msrb.mxu2 %v4574_v26  ;;  %1442 = vmatpush.msrb.mxu3 %v4578_v27 }
 0x397   :  { %v1081_v28 = vpop.f32.mrf.mxu0  ;;  %v1102_v7 = vpop.f32.mrf.mxu1 }
 0x398   :  { %v1084_v46 = vadd.f32 %v1081_v28, %v329_v33  ;;  %v1105_v25 = vadd.f32 %v1102_v7, %v370_v20  ;;  %v373_v33 = vadd.f32 %v4702_v1, %v4686_v57 }
 0x39a   :  { %v3617_v45 = vmul.f32 -1.442695, %v1084_v46  ;;  %v3618_v21 = vmul.f32 -1.442695, %v1105_v25 }
 0x39c   :  { %3836 = vpow2.f32 %v3617_v45 }
 0x39d   :  { %3838 = vpow2.f32 %v3618_v21  ;;  %v223_v21 = vld [vmem:[#allocation5 + $0x48] sm:$0xff] }
 0x39e   :  { %v1144_v24 = vpop.f32.mrf.mxu3  ;;  %v1123_v51 = vpop.f32.mrf.mxu2 }
 0x39f   :  { %v1147_v26 = vadd.f32 %v1144_v24, %v452_v22  ;;  %v1126_v31 = vadd.f32 %v1123_v51, %v411_v23  ;;  %v225_v22 = vld [vmem:[#allocation5 + $0x58] sm:$0xff]  ;;  %v227_v24 = vld [vmem:[#allocation5 + $0x68] sm:$0xff]  ;;  %v222_v51 = vld [vmem:[#allocation5 + $0x40] sm:$0xff] }
 0x3a0   :  { %v226_v23 = vld [vmem:[#allocation5 + $0x60] sm:$0xff] }
 0x3a1   :  { %v3619_v27 = vmul.f32 -1.442695, %v1147_v26  ;;  %v229_v26 = vld [vmem:[#allocation5 + $0x78] sm:$0xff] }
 0x3a2   :  { %v3837_v55 = vpop.eup %3836 }
 0x3a3   :  { %v3839_v3 = vpop.eup %3838  ;;  %v1151_v47 = vadd.f32 1.0, %v3837_v55  ;;  %3840 = vpow2.f32 %v3619_v27  ;;  %v5586_v27 = vld [vmem:[#allocation28_spill] sm:$0xff] }
 0x3a4   :  { %v1170_v54 = vadd.f32 1.0, %v3839_v3  ;;  %v455_v55 = vadd.f32 %v4697_v0, %v5586_v27  ;;  %v251_v27 = vld [vmem:[#allocation7 + $0xa8] sm:$0xff] }
 0x3a5   :  { %3842 = vrcp.f32 %v1151_v47  ;;  %v1163_v58 = vand.u32 2147483648, %v1151_v47  ;;  %v1161_v63 = vand.u32 2147483647, %v1151_v47  ;;  %vm1157_vm10 = vweird.f32 %v1151_v47 }
 0x3a6   :  { %3844 = vrcp.f32 %v1170_v54  ;;  %v1182_v44 = vand.u32 2147483648, %v1170_v54  ;;  %v1180_v6 = vand.u32 2147483647, %v1170_v54  ;;  %vm1176_vm11 = vweird.f32 %v1170_v54 }
 0x3a7   :  { %v1164_v42 = vor.u32 1.1754944e-38, %v1163_v58  ;;  %vm1162_vm14 = vcmp.eq.f32.partialorder %v1161_v63, 8.507059e+37 }
 0x3a8   :  { %v1183_v9 = vor.u32 1.1754944e-38, %v1182_v44  ;;  %vm1181_vm15 = vcmp.eq.f32.partialorder %v1180_v6, 8.507059e+37 }
 0x3a9   :  { %v3841_v4 = vpop.eup %3840 }
 0x3aa   :  { %v1190_v41 = vadd.f32 1.0, %v3841_v4  ;;  %v224_v4 = vld [vmem:[#allocation5 + $0x50] sm:$0xff] }
 0x3ab   :  { %v3843_v30 = vpop.eup %3842 }
 0x3ac   :  { %v3845_v49 = vpop.eup %3844  ;;  %v1153_v32 = vmul.f32 %v3843_v30, %v1151_v47  ;;  %3846 = vrcp.f32 %v1190_v41  ;;  %vm1158_vm8 = vweird.f32 %v3843_v30  ;;  %v1202_v10 = vand.u32 2147483648, %v1190_v41 }
 0x3ad   :  { %v1172_v34 = vmul.f32 %v3845_v49, %v1170_v54  ;;  %3848 = vtanh.f32 %v1126_v31  ;;  %vm1177_vm9 = vweird.f32 %v3845_v49  ;;  %vm1159_vm12 = vmor %vm1157_vm10, %vm1158_vm8  ;;  %vm1196_vm3 = vweird.f32 %v1190_v41  ;;  %v5587_v31 = vld [vmem:[#allocation31_spill] sm:$0xff] }
 0x3ae   :  { %v1154_v52 = vsub.f32 1.0, %v1153_v32  ;;  %vm1178_vm13 = vmor %vm1176_vm11, %vm1177_vm9  ;;  %v1200_v62 = vand.u32 2147483647, %v1190_v41  ;;  %v1203_v5 = vor.u32 1.1754944e-38, %v1202_v10 }
 0x3af   :  { %v1173_v37 = vsub.f32 1.0, %v1172_v34 }
 0x3b0   :  { %v1155_v59 = vmul.f32 %v3843_v30, %v1154_v52  ;;  %vm1201_vm5 = vcmp.eq.f32.partialorder %v1200_v62, 8.507059e+37 }
 0x3b1   :  { %v1174_v40 = vmul.f32 %v3845_v49, %v1173_v37 }
 0x3b2   :  { %v3847_v61 = vpop.eup %3846  ;;  %v1156_v60 = vadd.f32 %v3843_v30, %v1155_v59 }
 0x3b3   :  { %v1175_v29 = vadd.f32 %v3845_v49, %v1174_v40  ;;  %v1192_v2 = vmul.f32 %v3847_v61, %v1190_v41  ;;  %v3849_v13 = vpop.eup %3848  ;;  %vm1197_vm2 = vweird.f32 %v3847_v61  ;;  %v228_v41 = vld [vmem:[#allocation5 + $0x70] sm:$0xff] }
 0x3b4   :  { %v1160_v11 = vsel %vm1159_vm12, %v3843_v30, %v1156_v60  ;;  %vm1198_vm4 = vmor %vm1196_vm3, %vm1197_vm2 }
 0x3b5   :  { %v1165_v14 = vsel %vm1162_vm14, %v1164_v42, %v1160_v11  ;;  %v1179_v15 = vsel %vm1178_vm13, %v3845_v49, %v1175_v29  ;;  %v1193_v16 = vsub.f32 1.0, %v1192_v2  ;;  %v414_v49 = vadd.f32 %v4713_v36, %v5587_v31  ;;  %v1790_v31 = vld [vmem:[#allocation10 + $0xf0] sm:$0xff] }
 0x3b6   :  { %v1184_v17 = vsel %vm1181_vm15, %v1183_v9, %v1179_v15  ;;  %v1207_v19 = vmul.f32 %v3849_v13, %v1165_v14 }
 0x3b7   :  { %v1206_v35 = vmul.f32 %v1184_v17, %v4812_v12  ;;  %v1194_v8 = vmul.f32 %v3847_v61, %v1193_v16  ;;  %v332_v12 = vadd.f32 %v4681_v53, %v4672_v50 }
 0x3b9   :  { %v4835_v39 = vadd.f32 %v1207_v19, %v1206_v35  ;;  %v1195_v56 = vadd.f32 %v3847_v61, %v1194_v8 }
 0x3bb   :  { %3850 = vtanh.f32 %v4835_v39  ;;  %v1199_v43 = vsel %vm1198_vm4, %v3847_v61, %v1195_v56 }
 0x3bc   :  { %v1204_v38 = vsel %vm1201_vm5, %v1203_v5, %v1199_v43 }
 0x3c1   :  { %v3851_v48 = vpop.eup %3850 }
 0x3c2   :  { %v1210_v18 = vmul.f32 %v3851_v48, %v1204_v38 }
 0x3c4   :  { %3620 = vmatmul.msk.f32.vlgmr.msra.gmra.mxu0 %vm460_vm1, %v1210_v18  ;;  %3621 = vmatmul.msk.f32.vlgmr.msrb.gmra.mxu1 %vm460_vm1, %v1210_v18 }
 0x3c5   :  { %3622 = vmatmul.msk.f32.vlgmr.msra.gmra.mxu2 %vm460_vm1, %v1210_v18  ;;  %3623 = vmatmul.msk.f32.vlgmr.msra.gmra.mxu3 %vm460_vm1, %v1210_v18 }
 0x3c6   :  { %1528 = vmatpush.msra.mxu0 %v223_v21  ;;  %1551 = vmatpush.msrb.mxu1 %v225_v22  ;;  %v252_v21 = vld [vmem:[#allocation7 + $0xb0] sm:$0xff] }
 0x3c7   :  { %1574 = vmatpush.msra.mxu2 %v227_v24  ;;  %1597 = vmatpush.msra.mxu3 %v229_v26  ;;  %v256_v22 = vld [vmem:[#allocation7 + $0xd0] sm:$0xff]  ;;  %v247_v26 = vld [vmem:[#allocation7 + $0x88] sm:$0xff] }
 0x3c8   :  { %1529 = vmatpush.msra.mxu0 %v222_v51  ;;  %1552 = vmatpush.msrb.mxu1 %v224_v4  ;;  %v260_v24 = vld [vmem:[#allocation7 + $0xf0] sm:$0xff]  ;;  %v1775_v51 = vld [vmem:[#allocation10 + $0x78] sm:$0xff] }
 0x3c9   :  { %1575 = vmatpush.msra.mxu2 %v226_v23  ;;  %1598 = vmatpush.msra.mxu3 %v228_v41  ;;  %v1783_v4 = vld [vmem:[#allocation10 + $0xb8] sm:$0xff]  ;;  %v1766_v41 = vld [vmem:[#allocation10 + $0x30] sm:$0xff] }
 0x3ca   :  { %v1791_v23 = vld [vmem:[#allocation10 + $0xf8] sm:$0xff] }
 0x441   :  { %v1231_v20 = vpop.f32.mrf.mxu0  ;;  %v1252_v28 = vpop.f32.mrf.mxu1 }
 0x442   :  { %v1234_v7 = vadd.f32 %v1231_v20, %v332_v12  ;;  %v1255_v46 = vadd.f32 %v1252_v28, %v373_v33 }
 0x444   :  { %v3624_v25 = vmul.f32 -1.442695, %v1234_v7  ;;  %v3625_v45 = vmul.f32 -1.442695, %v1255_v46  ;;  %v249_v7 = vld [vmem:[#allocation7 + $0x98] sm:$0xff] }
 0x445   :  { %v253_v46 = vld [vmem:[#allocation7 + $0xb8] sm:$0xff] }
 0x446   :  { %3852 = vpow2.f32 %v3624_v25  ;;  %v261_v25 = vld [vmem:[#allocation7 + $0xf8] sm:$0xff] }
 0x447   :  { %3854 = vpow2.f32 %v3625_v45  ;;  %v248_v45 = vld [vmem:[#allocation7 + $0x90] sm:$0xff] }
 0x448   :  { %v1294_v50 = vpop.f32.mrf.mxu3  ;;  %v1273_v0 = vpop.f32.mrf.mxu2 }
 0x449   :  { %v1297_v53 = vadd.f32 %v1294_v50, %v455_v55  ;;  %v1276_v52 = vadd.f32 %v1273_v0, %v414_v49  ;;  %v255_v55 = vld [vmem:[#allocation7 + $0xc8] sm:$0xff]  ;;  %v1774_v0 = vld [vmem:[#allocation10 + $0x70] sm:$0xff] }
 0x44a   :  { %v259_v50 = vld [vmem:[#allocation7 + $0xe8] sm:$0xff] }
 0x44b   :  { %v3626_v57 = vmul.f32 -1.442695, %v1297_v53  ;;  %v246_v53 = vld [vmem:[#allocation7 + $0x80] sm:$0xff]  ;;  %v1765_v49 = vld [vmem:[#allocation10 + $0x28] sm:$0xff] }
 0x44c   :  { %v3853_v1 = vpop.eup %3852 }
 0x44d   :  { %v3855_v3 = vpop.eup %3854  ;;  %v1301_v47 = vadd.f32 1.0, %v3853_v1  ;;  %3856 = vpow2.f32 %v3626_v57  ;;  %v250_v57 = vld [vmem:[#allocation7 + $0xa0] sm:$0xff]  ;;  %v4037_v1 = vld [vmem:[%s5562_s0 + $0x30] sm:$0xff] }
 0x44e   :  { %v1320_v54 = vadd.f32 1.0, %v3855_v3  ;;  %v254_v3 = vld [vmem:[#allocation7 + $0xc0] sm:$0xff] }
 0x44f   :  { %3858 = vrcp.f32 %v1301_v47  ;;  %v1313_v40 = vand.u32 2147483648, %v1301_v47  ;;  %v1311_v60 = vand.u32 2147483647, %v1301_v47  ;;  %vm1307_vm8 = vweird.f32 %v1301_v47 }
 0x450   :  { %3860 = vrcp.f32 %v1320_v54  ;;  %v1332_v6 = vand.u32 2147483648, %v1320_v54  ;;  %v1330_v29 = vand.u32 2147483647, %v1320_v54  ;;  %vm1326_vm9 = vweird.f32 %v1320_v54 }
 0x451   :  { %v1314_v9 = vor.u32 1.1754944e-38, %v1313_v40  ;;  %vm1312_vm12 = vcmp.eq.f32.partialorder %v1311_v60, 8.507059e+37  ;;  %v1763_v40 = vld [vmem:[#allocation10 + $0x18] sm:$0xff] }
 0x452   :  { %v1333_v14 = vor.u32 1.1754944e-38, %v1332_v6  ;;  %vm1331_vm13 = vcmp.eq.f32.partialorder %v1330_v29, 8.507059e+37  ;;  %v1771_v6 = vld [vmem:[#allocation10 + $0x58] sm:$0xff]  ;;  %v1770_v29 = vld [vmem:[#allocation10 + $0x50] sm:$0xff] }
 0x453   :  { %v3857_v30 = vpop.eup %3856  ;;  %v1787_v60 = vld [vmem:[#allocation10 + $0xd8] sm:$0xff] }
 0x454   :  { %v1340_v32 = vadd.f32 1.0, %v3857_v30  ;;  %v1782_v30 = vld [vmem:[#allocation10 + $0xb0] sm:$0xff] }
 0x455   :  { %v3859_v34 = vpop.eup %3858 }
 0x456   :  { %v3861_v37 = vpop.eup %3860  ;;  %v1303_v58 = vmul.f32 %v3859_v34, %v1301_v47  ;;  %3862 = vrcp.f32 %v1340_v32  ;;  %vm1308_vm6 = vweird.f32 %v3859_v34  ;;  %v1352_v48 = vand.u32 2147483648, %v1340_v32  ;;  %v258_v47 = vld [vmem:[#allocation7 + $0xe0] sm:$0xff] }
 0x457   :  { %v1322_v44 = vmul.f32 %v3861_v37, %v1320_v54  ;;  %3864 = vtanh.f32 %v1276_v52  ;;  %vm1327_vm7 = vweird.f32 %v3861_v37  ;;  %vm1309_vm10 = vmor %vm1307_vm8, %vm1308_vm6  ;;  %vm1346_vm15 = vweird.f32 %v1340_v32  ;;  %v1767_v54 = vld [vmem:[#allocation10 + $0x38] sm:$0xff]  ;;  %v1789_v52 = vld [vmem:[#allocation10 + $0xe8] sm:$0xff] }
 0x458   :  { %v1304_v59 = vsub.f32 1.0, %v1303_v58  ;;  %vm1328_vm11 = vmor %vm1326_vm9, %vm1327_vm7  ;;  %v1350_v38 = vand.u32 2147483647, %v1340_v32  ;;  %v1353_v12 = vor.u32 1.1754944e-38, %v1352_v48  ;;  %v1772_v58 = vld [vmem:[#allocation10 + $0x60] sm:$0xff]  ;;  %v4883_v48 = vld [vmem:[#allocation11 + $0x70] sm:$0xff] }
 0x459   :  { %v1323_v63 = vsub.f32 1.0, %v1322_v44  ;;  %v1780_v44 = vld [vmem:[#allocation10 + $0xa0] sm:$0xff] }
 0x45a   :  { %v1305_v61 = vmul.f32 %v3859_v34, %v1304_v59  ;;  %vm1351_vm3 = vcmp.eq.f32.partialorder %v1350_v38, 8.507059e+37  ;;  %v1788_v59 = vld [vmem:[#allocation10 + $0xe0] sm:$0xff]  ;;  %v4887_v38 = vld [vmem:[#allocation11 + $0xf0] sm:$0xff] }
 0x45b   :  { %v1324_v42 = vmul.f32 %v3861_v37, %v1323_v63  ;;  %v271_v63 = vld [vmem:[#allocation8 + $0x8] sm:$0xff] }
 0x45c   :  { %v3863_v2 = vpop.eup %3862  ;;  %v1306_v36 = vadd.f32 %v3859_v34, %v1305_v61  ;;  %v1779_v61 = vld [vmem:[#allocation10 + $0x98] sm:$0xff] }
 0x45d   :  { %v1325_v11 = vadd.f32 %v3861_v37, %v1324_v42  ;;  %v1342_v13 = vmul.f32 %v3863_v2, %v1340_v32  ;;  %v3865_v16 = vpop.eup %3864  ;;  %vm1347_vm14 = vweird.f32 %v3863_v2  ;;  %v1773_v32 = vld [vmem:[#allocation10 + $0x68] sm:$0xff]  ;;  %v1762_v42 = vld [vmem:[#allocation10 + $0x10] sm:$0xff] }
 0x45e   :  { %v1310_v15 = vsel %vm1309_vm10, %v3859_v34, %v1306_v36  ;;  %vm1348_vm2 = vmor %vm1346_vm15, %vm1347_vm14  ;;  %v1781_v34 = vld [vmem:[#allocation10 + $0xa8] sm:$0xff]  ;;  %v1786_v36 = vld [vmem:[#allocation10 + $0xd0] sm:$0xff] }
 0x45f   :  { %v1315_v17 = vsel %vm1312_vm12, %v1314_v9, %v1310_v15  ;;  %v1329_v19 = vsel %vm1328_vm11, %v3861_v37, %v1325_v11  ;;  %v1343_v35 = vsub.f32 1.0, %v1342_v13  ;;  %v1764_v37 = vld [vmem:[#allocation10 + $0x20] sm:$0xff]  ;;  %v1761_v9 = vld [vmem:[#allocation10 + $0x8] sm:$0xff] }
 0x460   :  { %v1334_v8 = vsel %vm1331_vm13, %v1333_v14, %v1329_v19  ;;  %v1357_v56 = vmul.f32 %v3865_v16, %v1315_v17  ;;  %v1769_v11 = vld [vmem:[#allocation10 + $0x48] sm:$0xff]  ;;  %v1760_v15 = vld [vmem:[#allocation10] sm:$0xff] }
 0x461   :  { %v1356_v10 = vmul.f32 %v1334_v8, %v4835_v39  ;;  %v1344_v62 = vmul.f32 %v3863_v2, %v1343_v35  ;;  %v257_v39 = vld [vmem:[#allocation7 + $0xd8] sm:$0xff]  ;;  %v1777_v13 = vld [vmem:[#allocation10 + $0x88] sm:$0xff]  ;;  %v1768_v16 = vld [vmem:[#allocation10 + $0x40] sm:$0xff] }
 0x462   :  { %v1785_v14 = vld [vmem:[#allocation10 + $0xc8] sm:$0xff]  ;;  %v1776_v17 = vld [vmem:[#allocation10 + $0x80] sm:$0xff]  ;;  %v4869_v8 = vld [vmem:[#allocation11 + $0x38] sm:$0xff] }
 0x463   :  { %v4851_v43 = vadd.f32 %v1357_v56, %v1356_v10  ;;  %v1345_v5 = vadd.f32 %v3863_v2, %v1344_v62  ;;  %v1784_v19 = vld [vmem:[#allocation10 + $0xc0] sm:$0xff]  ;;  %v1753_v35 = vld [vmem:[#allocation2] sm:$0xff]  ;;  %v4871_v56 = vld [vmem:[#allocation11 + $0x78] sm:$0xff] }
 0x464   :  { %v4875_v10 = vld [vmem:[#allocation11 + $0xf8] sm:$0xff] }
 0x465   :  { %3866 = vtanh.f32 %v4851_v43  ;;  %v1349_v18 = vsel %vm1348_vm2, %v3863_v2, %v1345_v5  ;;  %v1778_v2 = vld [vmem:[#allocation10 + $0x90] sm:$0xff]  ;;  %v4877_v62 = vld [vmem:[#allocation11 + $0xb8] sm:$0xff] }
 0x466   :  { %v1354_v20 = vsel %vm1351_vm3, %v1353_v12, %v1349_v18  ;;  %v4881_v5 = vld [vmem:[#allocation11 + $0x30] sm:$0xff]  ;;  %v4892_v12 = vld [vmem:[#allocation11 + $0x28] sm:$0xff] }
 0x467   :  { %v4889_v18 = vld [vmem:[#allocation11 + $0xb0] sm:$0xff] }
 0x46b   :  { %v3867_v33 = vpop.eup %3866 }
 0x46c   :  { %v1360_v28 = vmul.f32 %v3867_v33, %v1354_v20  ;;  %v4894_v33 = vld [vmem:[#allocation11 + $0x68] sm:$0xff] }
 0x46d   :  { %v4899_v20 = vld [vmem:[#allocation11 + $0xe8] sm:$0xff] }
 0x46e   :  { %3627 = vmatmul.msk.f32.vlgmr.msrb.gmra.mxu0 %vm460_vm1, %v1360_v28  ;;  %3628 = vmatmul.msk.f32.vlgmr.msra.gmra.mxu1 %vm460_vm1, %v1360_v28 }
 0x46f   :  { %3629 = vmatmul.msk.f32.vlgmr.msrb.gmra.mxu2 %vm460_vm1, %v1360_v28  ;;  %3630 = vmatmul.msk.f32.vlgmr.msrb.gmra.mxu3 %vm460_vm1, %v1360_v28  ;;  %v4901_v28 = vld [vmem:[#allocation11 + $0xa8] sm:$0xff] }
 0x470   :  { %1618 = vmatpush.msrb.mxu0 %v249_v7  ;;  %1639 = vmatpush.msra.mxu1 %v253_v46  ;;  %v1754_v7 = vld [vmem:[#allocation2 + $0x8] sm:$0xff]  ;;  %v4908_v46 = vld [vmem:[#allocation11 + $0x20] sm:$0xff] }
 0x471   :  { %1660 = vmatpush.msrb.mxu2 %v257_v39  ;;  %1681 = vmatpush.msrb.mxu3 %v261_v25  ;;  %v4910_v39 = vld [vmem:[#allocation11 + $0x60] sm:$0xff] }
 0x472   :  { %1619 = vmatpush.msrb.mxu0 %v248_v45  ;;  %1640 = vmatpush.msra.mxu1 %v252_v21  ;;  %v4915_v25 = vld [vmem:[#allocation11 + $0xe0] sm:$0xff]  ;;  %v4921_v21 = vld [vmem:[#allocation11 + $0x18] sm:$0xff] }
 0x473   :  { %1661 = vmatpush.msrb.mxu2 %v256_v22  ;;  %1682 = vmatpush.msrb.mxu3 %v260_v24  ;;  %v4917_v45 = vld [vmem:[#allocation11 + $0xa0] sm:$0xff]  ;;  %v4923_v22 = vld [vmem:[#allocation11 + $0x58] sm:$0xff] }
 0x474   :  { %1620 = vmatpush.msrb.mxu0 %v247_v26  ;;  %1641 = vmatpush.msra.mxu1 %v251_v27  ;;  %v4927_v24 = vld [vmem:[#allocation11 + $0xd8] sm:$0xff]  ;;  %v4932_v27 = vld [vmem:[#allocation11 + $0x10] sm:$0xff] }
 0x475   :  { %1662 = vmatpush.msrb.mxu2 %v255_v55  ;;  %1683 = vmatpush.msrb.mxu3 %v259_v50  ;;  %v4929_v26 = vld [vmem:[#allocation11 + $0x98] sm:$0xff]  ;;  %v4934_v55 = vld [vmem:[#allocation11 + $0x50] sm:$0xff] }
 0x476   :  { %3634 = vmatmul.msk.f32.vlgmr.msra.gmra.mxu0 %vm277_vm0, %v4037_v1  ;;  %3635 = vmatmul.msk.f32.vlgmr.msrb.gmra.mxu1 %vm277_vm0, %v4037_v1  ;;  %v4939_v50 = vld [vmem:[#allocation11 + $0xd0] sm:$0xff] }
 0x477   :  { %3636 = vmatmul.msk.f32.vlgmr.msra.gmra.mxu2 %vm277_vm0, %v4037_v1  ;;  %3637 = vmatmul.msk.f32.vlgmr.msra.gmra.mxu3 %vm277_vm0, %v4037_v1  ;;  %vm1903_vm0 = vcmask 523264   ;;  %v4948_v1 = vld [vmem:[#allocation11 + $0x48] sm:$0xff] }
 0x478   :  { %1621 = vmatpush.msrb.mxu0 %v246_v53  ;;  %1642 = vmatpush.msra.mxu1 %v250_v57  ;;  %v1755_v53 = vld [vmem:[#allocation2 + $0x10] sm:$0xff]  ;;  %v4946_v57 = vld [vmem:[#allocation11 + $0x8] sm:$0xff] }
 0x479   :  { %1663 = vmatpush.msrb.mxu2 %v254_v3  ;;  %1684 = vmatpush.msrb.mxu3 %v258_v47  ;;  %v4952_v3 = vld [vmem:[#allocation11 + $0xc8] sm:$0xff]  ;;  %v4956_v47 = vld [vmem:[#allocation11] sm:$0xff] }
 0x47a   :  { %1933 = vmatpush.msra.mxu0 %v1767_v54  ;;  %1974 = vmatpush.msrb.mxu1 %v1775_v51  ;;  %v4958_v54 = vld [vmem:[#allocation11 + $0x40] sm:$0xff]  ;;  %v4960_v51 = vld [vmem:[#allocation11 + $0x90] sm:$0xff] }
 0x47b   :  { %2015 = vmatpush.msra.mxu2 %v1783_v4  ;;  %2056 = vmatpush.msra.mxu3 %v1791_v23  ;;  %v4964_v4 = vld [vmem:[#allocation11 + $0x88] sm:$0xff]  ;;  %v4966_v23 = vld [vmem:[#allocation11 + $0xc0] sm:$0xff] }
 0x47c   :  { %1934 = vmatpush.msra.mxu0 %v1766_v41  ;;  %1975 = vmatpush.msrb.mxu1 %v1774_v0  ;;  %5588 = vst [vmem:[#allocation28_spill] sm:$0xff] %v4966_v23  ;;  %v4972_v41 = vld [vmem:[#allocation11 + $0x80] sm:$0xff] }
 0x47d   :  { %2016 = vmatpush.msra.mxu2 %v1782_v30  ;;  %2057 = vmatpush.msra.mxu3 %v1790_v31  ;;  %5589 = vst [vmem:[#allocation31_spill] sm:$0xff] %v4972_v41  ;;  %v1756_v0 = vld [vmem:[#allocation2 + $0x18] sm:$0xff]  ;;  %v1757_v30 = vld [vmem:[#allocation2 + $0x20] sm:$0xff]  ;;  %v1758_v31 = vld [vmem:[#allocation2 + $0x28] sm:$0xff] }
 0x47e   :  { %1935 = vmatpush.msra.mxu0 %v1765_v49  ;;  %1976 = vmatpush.msrb.mxu1 %v1773_v32  ;;  %v1759_v49 = vld [vmem:[#allocation2 + $0x30] sm:$0xff]  ;;  %v1896_v32 = vld [vmem:[#allocation14] sm:$0xff] }
 0x47f   :  { %2017 = vmatpush.msra.mxu2 %v1781_v34  ;;  %2058 = vmatpush.msra.mxu3 %v1789_v52  ;;  %v4038_v34 = vld [vmem:[%s5567_s5] ss:$0 sm:$0xff]  ;;  %v5590_v52 = vld [vmem:[#allocation27_spill] sm:$0xff] }
 0x480   :  { %1936 = vmatpush.msra.mxu0 %v1764_v37  ;;  %1977 = vmatpush.msrb.mxu1 %v1772_v58  ;;  %v335_v37 = vadd.f32 %v4038_v34, %v5590_v52  ;;  %v4039_v58 = vld [vmem:[%s5567_s5 + $0x1] ss:$0 sm:$0xff] }
 0x481   :  { %2018 = vmatpush.msra.mxu2 %v1780_v44  ;;  %2059 = vmatpush.msra.mxu3 %v1788_v59  ;;  %v5591_v44 = vld [vmem:[#allocation30_spill] sm:$0xff] }
 0x482   :  { %3638 = vmatmul.msk.f32.vlgmr.msrb.gmra.mxu0 %vm460_vm1, %v271_v63  ;;  %3639 = vmatmul.msk.f32.vlgmr.msra.gmra.mxu1 %vm460_vm1, %v271_v63  ;;  %v376_v59 = vadd.f32 %v4039_v58, %v5591_v44 }
 0x483   :  { %3640 = vmatmul.msk.f32.vlgmr.msrb.gmra.mxu2 %vm460_vm1, %v271_v63  ;;  %3641 = vmatmul.msk.f32.vlgmr.msrb.gmra.mxu3 %vm460_vm1, %v271_v63 }
 0x484   :  { %1937 = vmatpush.msra.mxu0 %v1763_v40  ;;  %1978 = vmatpush.msrb.mxu1 %v1771_v6 }
 0x485   :  { %2019 = vmatpush.msra.mxu2 %v1779_v61  ;;  %2060 = vmatpush.msra.mxu3 %v1787_v60 }
 0x486   :  { %1938 = vmatpush.msra.mxu0 %v1762_v42  ;;  %1979 = vmatpush.msrb.mxu1 %v1770_v29  ;;  %v4040_v29 = vld [vmem:[%s5567_s5 + $0x2] ss:$0 sm:$0xff] }
 0x487   :  { %2020 = vmatpush.msra.mxu2 %v1778_v2  ;;  %2061 = vmatpush.msra.mxu3 %v1786_v36  ;;  %v5592_v2 = vld [vmem:[#allocation32_spill] sm:$0xff] }
 0x488   :  { %1939 = vmatpush.msra.mxu0 %v1761_v9  ;;  %1980 = vmatpush.msrb.mxu1 %v1769_v11  ;;  %v417_v36 = vadd.f32 %v4040_v29, %v5592_v2  ;;  %v4041_v9 = vld [vmem:[%s5567_s5 + $0x3] ss:$0 sm:$0xff]  ;;  %v5593_v11 = vld [vmem:[#allocation29_spill] sm:$0xff] }
 0x489   :  { %2021 = vmatpush.msra.mxu2 %v1777_v13  ;;  %2062 = vmatpush.msra.mxu3 %v1785_v14  ;;  %v458_v13 = vadd.f32 %v4041_v9, %v5593_v11 }
 0x48a   :  { %1940 = vmatpush.msra.mxu0 %v1760_v15  ;;  %1981 = vmatpush.msrb.mxu1 %v1768_v16 }
 0x48b   :  { %2022 = vmatpush.msra.mxu2 %v1776_v17  ;;  %2063 = vmatpush.msra.mxu3 %v1784_v19 }
 0x48c   :  { %3645 = vmatmul.msk.f32.vlgmr.msra.gmra.mxu0 %vm1903_vm0, %v1753_v35  ;;  %3652 = vmatmul.msk.f32.vlgmr.msrb.gmra.mxu1 %vm1903_vm0, %v1753_v35 }
 0x48d   :  { %3659 = vmatmul.msk.f32.vlgmr.msra.gmra.mxu2 %vm1903_vm0, %v1753_v35  ;;  %3666 = vmatmul.msk.f32.vlgmr.msra.gmra.mxu3 %vm1903_vm0, %v1753_v35 }
 0x48e   :  { %2097 = vmatpush.msrb.mxu0 %v4869_v8  ;;  %2118 = vmatpush.msra.mxu1 %v4871_v56 }
 0x48f   :  { %2160 = vmatpush.msrb.mxu3 %v4875_v10  ;;  %2139 = vmatpush.msrb.mxu2 %v4877_v62 }
 0x490   :  { %2098 = vmatpush.msrb.mxu0 %v4881_v5  ;;  %2119 = vmatpush.msra.mxu1 %v4883_v48 }
 0x491   :  { %2161 = vmatpush.msrb.mxu3 %v4887_v38  ;;  %2140 = vmatpush.msrb.mxu2 %v4889_v18 }
 0x492   :  { %2099 = vmatpush.msrb.mxu0 %v4892_v12  ;;  %2120 = vmatpush.msra.mxu1 %v4894_v33 }
 0x493   :  { %2162 = vmatpush.msrb.mxu3 %v4899_v20  ;;  %2141 = vmatpush.msrb.mxu2 %v4901_v28 }
 0x494   :  { %3646 = vmatmul.msk.f32.gmra.mxu0 %vm1903_vm0, %v1754_v7  ;;  %3653 = vmatmul.msk.f32.gmra.mxu1 %vm1903_vm0, %v1754_v7 }
 0x495   :  { %3660 = vmatmul.msk.f32.gmra.mxu2 %vm1903_vm0, %v1754_v7  ;;  %3667 = vmatmul.msk.f32.gmra.mxu3 %vm1903_vm0, %v1754_v7 }
 0x496   :  { %2100 = vmatpush.msrb.mxu0 %v4908_v46  ;;  %2121 = vmatpush.msra.mxu1 %v4910_v39 }
 0x497   :  { %2163 = vmatpush.msrb.mxu3 %v4915_v25  ;;  %2142 = vmatpush.msrb.mxu2 %v4917_v45 }
 0x498   :  { %2101 = vmatpush.msrb.mxu0 %v4921_v21  ;;  %2122 = vmatpush.msra.mxu1 %v4923_v22 }
 0x499   :  { %2164 = vmatpush.msrb.mxu3 %v4927_v24  ;;  %2143 = vmatpush.msrb.mxu2 %v4929_v26 }
 0x49a   :  { %2102 = vmatpush.msrb.mxu0 %v4932_v27  ;;  %2123 = vmatpush.msra.mxu1 %v4934_v55 }
 0x49b   :  { %2165 = vmatpush.msrb.mxu3 %v4939_v50  ;;  %2144 = vmatpush.msrb.mxu2 %v4960_v51 }
 0x49c   :  { %3647 = vmatmul.msk.f32.gmra.mxu0 %vm1903_vm0, %v1755_v53  ;;  %3654 = vmatmul.msk.f32.gmra.mxu1 %vm1903_vm0, %v1755_v53 }
 0x49d   :  { %3661 = vmatmul.msk.f32.gmra.mxu2 %vm1903_vm0, %v1755_v53  ;;  %3668 = vmatmul.msk.f32.gmra.mxu3 %vm1903_vm0, %v1755_v53 }
 0x49e   :  { %2103 = vmatpush.msrb.mxu0 %v4946_v57  ;;  %2124 = vmatpush.msra.mxu1 %v4948_v1 }
 0x49f   :  { %2166 = vmatpush.msrb.mxu3 %v4952_v3  ;;  %2145 = vmatpush.msrb.mxu2 %v4964_v4 }
 0x4a0   :  { %2104 = vmatpush.msrb.mxu0 %v4956_v47  ;;  %2125 = vmatpush.msra.mxu1 %v4958_v54 }
 0x4a1   :  { %2167 = vmatpush.msrb.mxu3 %v4966_v23  ;;  %2146 = vmatpush.msrb.mxu2 %v4972_v41 }
 0x4a2   :  { %2247 = vmatpush.msra.mxu0 %v4869_v8  ;;  %2268 = vmatpush.msrb.mxu1 %v4871_v56 }
 0x4a3   :  { %2310 = vmatpush.msra.mxu3 %v4875_v10  ;;  %2289 = vmatpush.msra.mxu2 %v4877_v62 }
 0x4a4   :  { %3648 = vmatmul.msk.f32.gmra.mxu0 %vm1903_vm0, %v1756_v0  ;;  %3655 = vmatmul.msk.f32.gmra.mxu1 %vm1903_vm0, %v1756_v0 }
 0x4a5   :  { %3662 = vmatmul.msk.f32.gmra.mxu2 %vm1903_vm0, %v1756_v0  ;;  %3669 = vmatmul.msk.f32.gmra.mxu3 %vm1903_vm0, %v1756_v0 }
 0x4a6   :  { %2248 = vmatpush.msra.mxu0 %v4881_v5  ;;  %2269 = vmatpush.msrb.mxu1 %v4883_v48 }
 0x4a7   :  { %2311 = vmatpush.msra.mxu3 %v4887_v38  ;;  %2290 = vmatpush.msra.mxu2 %v4889_v18 }
 0x4a8   :  { %2249 = vmatpush.msra.mxu0 %v4892_v12  ;;  %2270 = vmatpush.msrb.mxu1 %v4894_v33 }
 0x4a9   :  { %2312 = vmatpush.msra.mxu3 %v4899_v20  ;;  %2291 = vmatpush.msra.mxu2 %v4901_v28 }
 0x4aa   :  { %2250 = vmatpush.msra.mxu0 %v4908_v46  ;;  %2271 = vmatpush.msrb.mxu1 %v4910_v39 }
 0x4ab   :  { %2313 = vmatpush.msra.mxu3 %v4915_v25  ;;  %2292 = vmatpush.msra.mxu2 %v4917_v45 }
 0x4ac   :  { %3649 = vmatmul.msk.f32.gmra.mxu0 %vm1903_vm0, %v1757_v30  ;;  %3656 = vmatmul.msk.f32.gmra.mxu1 %vm1903_vm0, %v1757_v30 }
 0x4ad   :  { %3663 = vmatmul.msk.f32.gmra.mxu2 %vm1903_vm0, %v1757_v30  ;;  %3670 = vmatmul.msk.f32.gmra.mxu3 %vm1903_vm0, %v1757_v30 }
 0x4ae   :  { %2251 = vmatpush.msra.mxu0 %v4921_v21  ;;  %2272 = vmatpush.msrb.mxu1 %v4923_v22 }
 0x4af   :  { %2314 = vmatpush.msra.mxu3 %v4927_v24  ;;  %2293 = vmatpush.msra.mxu2 %v4929_v26 }
 0x4b0   :  { %2252 = vmatpush.msra.mxu0 %v4932_v27  ;;  %2273 = vmatpush.msrb.mxu1 %v4934_v55 }
 0x4b1   :  { %2315 = vmatpush.msra.mxu3 %v4939_v50  ;;  %2294 = vmatpush.msra.mxu2 %v4960_v51 }
 0x4b2   :  { %2253 = vmatpush.msra.mxu0 %v4946_v57  ;;  %2274 = vmatpush.msrb.mxu1 %v4948_v1 }
 0x4b3   :  { %2316 = vmatpush.msra.mxu3 %v4952_v3  ;;  %2295 = vmatpush.msra.mxu2 %v4964_v4 }
 0x4b4   :  { %3650 = vmatmul.msk.f32.gmra.mxu0 %vm1903_vm0, %v1758_v31  ;;  %3657 = vmatmul.msk.f32.gmra.mxu1 %vm1903_vm0, %v1758_v31 }
 0x4b5   :  { %3664 = vmatmul.msk.f32.gmra.mxu2 %vm1903_vm0, %v1758_v31  ;;  %3671 = vmatmul.msk.f32.gmra.mxu3 %vm1903_vm0, %v1758_v31 }
 0x4b6   :  { %2254 = vmatpush.msra.mxu0 %v4956_v47  ;;  %2275 = vmatpush.msrb.mxu1 %v4958_v54 }
 0x4b7   :  { %2317 = vmatpush.msra.mxu3 %v4966_v23  ;;  %2296 = vmatpush.msra.mxu2 %v4972_v41 }
 0x4bc   :  { %3651 = vmatmul.msk.f32.gmra.mxu0 %vm1903_vm0, %v1759_v49  ;;  %3658 = vmatmul.msk.f32.gmra.mxu1 %vm1903_vm0, %v1759_v49 }
 0x4bd   :  { %3665 = vmatmul.msk.f32.gmra.mxu2 %vm1903_vm0, %v1759_v49  ;;  %3672 = vmatmul.msk.f32.gmra.mxu3 %vm1903_vm0, %v1759_v49  ;;  %v3759_v49 = vld [vmem:[%s5567_s5 + $0x4] ss:$0 sm:$0xff] }
 0x4c4   :  { %3673 = vmatmul.msk.f32.vlgmr.msrb.gmra.mxu0 %vm1903_vm0, %v1896_v32  ;;  %3674 = vmatmul.msk.f32.vlgmr.msra.gmra.mxu1 %vm1903_vm0, %v1896_v32 }
 0x4c5   :  { %3675 = vmatmul.msk.f32.vlgmr.msrb.gmra.mxu2 %vm1903_vm0, %v1896_v32  ;;  %3676 = vmatmul.msk.f32.vlgmr.msrb.gmra.mxu3 %vm1903_vm0, %v1896_v32  ;;  %v3760_v32 = vld [vmem:[%s5567_s5 + $0x5] ss:$0 sm:$0xff] }
 0x4c6   :  { %2397 = vmatpush.msrb.mxu0 %v4869_v8  ;;  %2418 = vmatpush.msra.mxu1 %v4871_v56 }
 0x4c7   :  { %2439 = vmatpush.msrb.mxu2 %v4877_v62  ;;  %2460 = vmatpush.msrb.mxu3 %v4875_v10 }
 0x4c8   :  { %2398 = vmatpush.msrb.mxu0 %v4881_v5  ;;  %2419 = vmatpush.msra.mxu1 %v4883_v48 }
 0x4c9   :  { %2440 = vmatpush.msrb.mxu2 %v4889_v18  ;;  %2461 = vmatpush.msrb.mxu3 %v4887_v38 }
 0x4ca   :  { %2399 = vmatpush.msrb.mxu0 %v4892_v12  ;;  %2420 = vmatpush.msra.mxu1 %v4894_v33 }
 0x4cb   :  { %2441 = vmatpush.msrb.mxu2 %v4901_v28  ;;  %2462 = vmatpush.msrb.mxu3 %v4899_v20 }
 0x4cc   :  { %2400 = vmatpush.msrb.mxu0 %v4908_v46  ;;  %2421 = vmatpush.msra.mxu1 %v4910_v39 }
 0x4cd   :  { %2442 = vmatpush.msrb.mxu2 %v4917_v45  ;;  %2463 = vmatpush.msrb.mxu3 %v4915_v25 }
 0x4ce   :  { %2401 = vmatpush.msrb.mxu0 %v4921_v21  ;;  %2422 = vmatpush.msra.mxu1 %v4923_v22 }
 0x4cf   :  { %2443 = vmatpush.msrb.mxu2 %v4929_v26  ;;  %2464 = vmatpush.msrb.mxu3 %v4927_v24 }
 0x4d0   :  { %2402 = vmatpush.msrb.mxu0 %v4932_v27  ;;  %2423 = vmatpush.msra.mxu1 %v4934_v55 }
 0x4d1   :  { %2444 = vmatpush.msrb.mxu2 %v4960_v51  ;;  %2465 = vmatpush.msrb.mxu3 %v4939_v50 }
 0x4d2   :  { %2403 = vmatpush.msrb.mxu0 %v4946_v57  ;;  %2424 = vmatpush.msra.mxu1 %v4948_v1 }
 0x4d3   :  { %2445 = vmatpush.msrb.mxu2 %v4964_v4  ;;  %2466 = vmatpush.msrb.mxu3 %v4952_v3 }
 0x4d4   :  { %2404 = vmatpush.msrb.mxu0 %v4956_v47  ;;  %2425 = vmatpush.msra.mxu1 %v4958_v54 }
 0x4d5   :  { %2446 = vmatpush.msrb.mxu2 %v4972_v41  ;;  %2467 = vmatpush.msrb.mxu3 %v4966_v23 }
 0x4eb   :  { %v1381_v63 = vpop.f32.mrf.mxu0  ;;  %v1402_v40 = vpop.f32.mrf.mxu1 }
 0x4ec   :  { %v1384_v6 = vadd.f32 %v1381_v63, %v335_v37  ;;  %v1405_v61 = vadd.f32 %v1402_v40, %v376_v59  ;;  %v3761_v59 = vld [vmem:[%s5567_s5 + $0x6] ss:$0 sm:$0xff]  ;;  %v3762_v63 = vld [vmem:[%s5567_s5 + $0x7] ss:$0 sm:$0xff] }
 0x4ee   :  { %v3631_v60 = vmul.f32 -1.442695, %v1384_v6  ;;  %v3632_v42 = vmul.f32 -1.442695, %v1405_v61 }
 0x4f0   :  { %3868 = vpow2.f32 %v3631_v60 }
 0x4f1   :  { %3870 = vpow2.f32 %v3632_v42 }
 0x4f2   :  { %v1423_v14 = vpop.f32.mrf.mxu2  ;;  %v1444_v15 = vpop.f32.mrf.mxu3 }
 0x4f3   :  { %v1426_v16 = vadd.f32 %v1423_v14, %v417_v36  ;;  %v1447_v17 = vadd.f32 %v1444_v15, %v458_v13  ;;  %v1531_v35 = vpop.f32.mrf.mxu0  ;;  %v1554_v7 = vpop.f32.mrf.mxu1 }
 0x4f4   :  { %v1532_v42 = vadd.f32 %v3759_v49, %v1531_v35  ;;  %v1555_v29 = vadd.f32 %v3760_v32, %v1554_v7 }
 0x4f5   :  { %v3633_v19 = vmul.f32 -1.442695, %v1447_v17 }
 0x4f6   :  { %v3869_v53 = vpop.eup %3868 }
 0x4f7   :  { %v3871_v0 = vpop.eup %3870  ;;  %v1451_v30 = vadd.f32 1.0, %v3869_v53  ;;  %3872 = vpow2.f32 %v3633_v19 }
 0x4f8   :  { %v1470_v31 = vadd.f32 1.0, %v3871_v0 }
 0x4f9   :  { %3874 = vrcp.f32 %v1451_v30  ;;  %v1461_v36 = vand.u32 2147483647, %v1451_v30  ;;  %v1463_v11 = vand.u32 2147483648, %v1451_v30  ;;  %vm1457_vm6 = vweird.f32 %v1451_v30 }
 0x4fa   :  { %3876 = vrcp.f32 %v1470_v31  ;;  %v1577_v34 = vpop.f32.mrf.mxu2  ;;  %v1600_v52 = vpop.f32.mrf.mxu3  ;;  %v1482_v17 = vand.u32 2147483648, %v1470_v31  ;;  %v1480_v35 = vand.u32 2147483647, %v1470_v31  ;;  %vm1476_vm7 = vweird.f32 %v1470_v31 }
 0x4fb   :  { %v1578_v19 = vadd.f32 %v3761_v59, %v1577_v34  ;;  %v1601_v53 = vadd.f32 %v3762_v63, %v1600_v52  ;;  %vm1462_vm8 = vcmp.eq.f32.partialorder %v1461_v36, 8.507059e+37  ;;  %v1464_v34 = vor.u32 1.1754944e-38, %v1463_v11 }
 0x4fc   :  { %v1483_v63 = vor.u32 1.1754944e-38, %v1482_v17  ;;  %vm1481_vm11 = vcmp.eq.f32.partialorder %v1480_v35, 8.507059e+37 }
 0x4fd   :  { %v3873_v37 = vpop.eup %3872 }
 0x4fe   :  { %v5083_v58 = vadd.f32 1.0, %v3873_v37 }
 0x4ff   :  { %v3875_v44 = vpop.eup %3874  ;;  %v1623_v40 = vpop.f32.mrf.mxu0 }
 0x500   :  { %v1644_v6 = vpop.f32.mrf.mxu1  ;;  %v3877_v61 = vpop.eup %3876  ;;  %v1453_v60 = vmul.f32 %v3875_v44, %v1451_v30  ;;  %3878 = vrcp.f32 %v5083_v58  ;;  %v1626_v13 = vadd.f32 %v1623_v40, %v1532_v42  ;;  %vm1458_vm4 = vweird.f32 %v3875_v44 }
 0x501   :  { %v1472_v2 = vmul.f32 %v3877_v61, %v1470_v31  ;;  %3880 = vtanh.f32 %v1426_v16  ;;  %v1647_v14 = vadd.f32 %v1644_v6, %v1555_v29  ;;  %vm1477_vm5 = vweird.f32 %v3877_v61  ;;  %vm1459_vm9 = vmor %vm1457_vm6, %vm1458_vm4 }
 0x502   :  { %v1454_v9 = vsub.f32 1.0, %v1453_v60  ;;  %v3642_v37 = vmul.f32 -1.442695, %v1626_v13  ;;  %vm1478_vm10 = vmor %vm1476_vm7, %vm1477_vm5  ;;  %vm1496_vm13 = vweird.f32 %v5083_v58 }
 0x503   :  { %v1473_v15 = vsub.f32 1.0, %v1472_v2  ;;  %v3643_v23 = vmul.f32 -1.442695, %v1647_v14 }
 0x504   :  { %v1455_v0 = vmul.f32 %v3875_v44, %v1454_v9  ;;  %3882 = vpow2.f32 %v3642_v37 }
 0x505   :  { %v1474_v41 = vmul.f32 %v3877_v61, %v1473_v15  ;;  %3884 = vpow2.f32 %v3643_v23 }
 0x506   :  { %v3879_v7 = vpop.eup %3878  ;;  %v1456_v49 = vadd.f32 %v3875_v44, %v1455_v0  ;;  %v1665_v16 = vpop.f32.mrf.mxu2  ;;  %v1500_v0 = vand.u32 2147483647, %v5083_v58 }
 0x507   :  { %v1686_v32 = vpop.f32.mrf.mxu3  ;;  %v3881_v40 = vpop.eup %3880  ;;  %v1475_v52 = vadd.f32 %v3877_v61, %v1474_v41  ;;  %v1492_v59 = vmul.f32 %v3879_v7, %v5083_v58  ;;  %v1668_v6 = vadd.f32 %v1665_v16, %v1578_v19  ;;  %vm1497_vm12 = vweird.f32 %v3879_v7 }
 0x508   :  { %v1460_v30 = vsel %vm1459_vm9, %v3875_v44, %v1456_v49  ;;  %v1689_v60 = vadd.f32 %v1686_v32, %v1601_v53  ;;  %v1502_v53 = vand.u32 2147483648, %v5083_v58  ;;  %vm1498_vm14 = vmor %vm1496_vm13, %vm1497_vm12  ;;  %v5115_v49 = vld [vmem:[#allocation13 + $0x1] ss:$0 sm:$0xff]  ;;  %vm1501_vm15 = vcmp.eq.f32.partialorder %v1500_v0, 8.507059e+37 }
 0x509   :  { %v1465_v31 = vsel %vm1462_vm8, %v1464_v34, %v1460_v30  ;;  %v1479_v42 = vsel %vm1478_vm10, %v3877_v61, %v1475_v52  ;;  %v1493_v29 = vsub.f32 1.0, %v1492_v59  ;;  %v5095_v2 = vpop.f32.mrf.mxu0  ;;  %v5097_v36 = vpop.f32.mrf.mxu1 }
 0x50a   :  { %v1484_v9 = vsel %vm1481_vm11, %v1483_v63, %v1479_v42  ;;  %v1507_v11 = vmul.f32 %v3881_v40, %v1465_v31  ;;  %v3644_v41 = vmul.f32 -1.442695, %v1689_v60  ;;  %v3883_v14 = vpop.eup %3882  ;;  %v1503_v58 = vor.u32 1.1754944e-38, %v1502_v53 }
 0x50b   :  { %v1506_v13 = vmul.f32 %v1484_v9, %v4851_v43  ;;  %v1494_v23 = vmul.f32 %v3879_v7, %v1493_v29  ;;  %v3885_v15 = vpop.eup %3884  ;;  %v5100_v17 = vadd.f32 1.0, %v3883_v14  ;;  %v5108_v43 = vld [vmem:[#allocation13] ss:$0 sm:$0xff]  ;;  %v5129_v9 = vld [vmem:[#allocation13 + $0x2] ss:$0 sm:$0xff] }
 0x50c   :  { %3886 = vpow2.f32 %v3644_v41  ;;  %v5102_v61 = vadd.f32 1.0, %v3885_v15 }
 0x50d   :  { %v1508_v44 = vadd.f32 %v1507_v11, %v1506_v13  ;;  %v1495_v19 = vadd.f32 %v3879_v7, %v1494_v23  ;;  %v5131_v11 = vld [vmem:[#allocation13 + $0x3] ss:$0 sm:$0xff]  ;;  %vm1699_vm4 = vweird.f32 %v5100_v17 }
 0x50e   :  { %vm1718_vm5 = vweird.f32 %v5102_v61 }
 0x50f   :  { %3888 = vtanh.f32 %v1508_v44  ;;  %v1499_v34 = vsel %vm1498_vm14, %v3879_v7, %v1495_v19 }
 0x510   :  { %3890 = vrcp.f32 %v5100_v17  ;;  %v5110_v37 = vpop.f32.mrf.mxu2  ;;  %v5112_v35 = vpop.f32.mrf.mxu3  ;;  %v1504_v60 = vsel %vm1501_vm15, %v1503_v58, %v1499_v34 }
 0x511   :  { %3892 = vrcp.f32 %v5102_v61  ;;  %v1945_v16 = vpop.f32.mrf.mxu0  ;;  %v1986_v32 = vpop.f32.mrf.mxu1 }
 0x512   :  { %v3887_v40 = vpop.eup %3886  ;;  %v5118_v52 = vadd.f32 %v5108_v43, %v1945_v16  ;;  %v5123_v63 = vadd.f32 %v5115_v49, %v1986_v32  ;;  %v1705_v16 = vand.u32 2147483648, %v5100_v17 }
 0x513   :  { %v5120_v59 = vadd.f32 1.0, %v3887_v40 }
 0x514   :  { %5594 = vst [vmem:[#allocation27_spill] sm:$0xff] %v5118_v52 }
 0x515   :  { %5595 = vst [vmem:[#allocation30_spill] sm:$0xff] %v5123_v63  ;;  %v3889_v30 = vpop.eup %3888  ;;  %3894 = vrcp.f32 %v5120_v59  ;;  %vm1738_vm11 = vweird.f32 %v5120_v59 }
 0x516   :  { %v3891_v31 = vpop.eup %3890  ;;  %v5126_v42 = vmul.f32 %v3889_v30, %v1504_v60  ;;  %3896 = vtanh.f32 %v1668_v6  ;;  %v1724_v6 = vand.u32 2147483648, %v5102_v61  ;;  %v1703_v30 = vand.u32 2147483647, %v5100_v17 }
 0x517   :  { %v3893_v29 = vpop.eup %3892  ;;  %v1695_v7 = vmul.f32 %v3891_v31, %v5100_v17  ;;  %vm1700_vm2 = vweird.f32 %v3891_v31 }
 0x518   :  { %5596 = vst [vmem:[#allocation32_spill] sm:$0xff] %v5126_v42  ;;  %v1714_v41 = vmul.f32 %v3893_v29, %v5102_v61  ;;  %v2027_v13 = vpop.f32.mrf.mxu2  ;;  %v2068_v23 = vpop.f32.mrf.mxu3  ;;  %vm1719_vm3 = vweird.f32 %v3893_v29  ;;  %vm1701_vm6 = vmor %vm1699_vm4, %vm1700_vm2  ;;  %vm1704_vm8 = vcmp.eq.f32.partialorder %v1703_v30, 8.507059e+37 }
 0x519   :  { %v1696_v14 = vsub.f32 1.0, %v1695_v7  ;;  %v5135_v15 = vadd.f32 %v5129_v9, %v2027_v13  ;;  %v5138_v44 = vadd.f32 %v5131_v11, %v2068_v23  ;;  %v1948_v19 = vpop.f32.mrf.mxu0  ;;  %v1989_v53 = vpop.f32.mrf.mxu1  ;;  %v1722_v7 = vand.u32 2147483647, %v5102_v61  ;;  %vm1720_vm7 = vmor %vm1718_vm5, %vm1719_vm3 }
 0x51a   :  { %v1715_v0 = vsub.f32 1.0, %v1714_v41  ;;  %v5142_v32 = vadd.f32 %v5108_v43, %v1948_v19  ;;  %v5145_v40 = vadd.f32 %v5115_v49, %v1989_v53  ;;  %v1706_v23 = vor.u32 1.1754944e-38, %v1705_v16 }
 0x51b   :  { %5597 = vst [vmem:[#allocation29_spill] sm:$0xff] %v5135_v15  ;;  %v3895_v34 = vpop.eup %3894  ;;  %v1697_v58 = vmul.f32 %v3891_v31, %v1696_v14  ;;  %v1725_v14 = vor.u32 1.1754944e-38, %v1724_v6  ;;  %vm1723_vm9 = vcmp.eq.f32.partialorder %v1722_v7, 8.507059e+37 }
 0x51c   :  { %5598 = vst [vmem:[#allocation33_spill] sm:$0xff] %v5138_v44  ;;  %v1716_v60 = vmul.f32 %v3893_v29, %v1715_v0  ;;  %v1734_v41 = vmul.f32 %v3895_v34, %v5120_v59  ;;  %v3897_v42 = vpop.eup %3896  ;;  %vm1739_vm10 = vweird.f32 %v3895_v34 }
 0x51d   :  { %5599 = vst [vmem:[#allocation34_spill] sm:$0xff] %v5142_v32  ;;  %v1698_v13 = vadd.f32 %v3891_v31, %v1697_v58  ;;  %vm1740_vm12 = vmor %vm1738_vm11, %vm1739_vm10 }
 0x51e   :  { %5600 = vst [vmem:[#allocation35_spill] sm:$0xff] %v5145_v40  ;;  %v1717_v19 = vadd.f32 %v3893_v29, %v1716_v60  ;;  %v1735_v53 = vsub.f32 1.0, %v1734_v41  ;;  %v273_v40 = vld [vmem:[#allocation8 + $0x18] sm:$0xff] }
 0x51f   :  { %v1702_v32 = vsel %vm1701_vm6, %v3891_v31, %v1698_v13 }
 0x520   :  { %v1707_v0 = vsel %vm1704_vm8, %v1706_v23, %v1702_v32  ;;  %v1721_v15 = vsel %vm1720_vm7, %v3893_v29, %v1717_v19  ;;  %v1736_v44 = vmul.f32 %v3895_v34, %v1735_v53  ;;  %v2030_v63 = vpop.f32.mrf.mxu2  ;;  %v2071_v58 = vpop.f32.mrf.mxu3 }
 0x521   :  { %v1726_v52 = vsel %vm1723_vm9, %v1725_v14, %v1721_v15  ;;  %v1749_v17 = vmul.f32 %v3897_v42, %v1707_v0  ;;  %v5154_v61 = vadd.f32 %v5129_v9, %v2030_v63  ;;  %v5157_v16 = vadd.f32 %v5131_v11, %v2071_v58  ;;  %v1951_v60 = vpop.f32.mrf.mxu0  ;;  %v1992_v41 = vpop.f32.mrf.mxu1 }
 0x522   :  { %v1748_v6 = vmul.f32 %v1726_v52, %v273_v40  ;;  %v5160_v31 = vadd.f32 %v5108_v43, %v1951_v60  ;;  %v5163_v29 = vadd.f32 %v5115_v49, %v1992_v41  ;;  %v1737_v30 = vadd.f32 %v3895_v34, %v1736_v44 }
 0x523   :  { %v1744_v42 = vand.u32 2147483648, %v5120_v59  ;;  %v1742_v63 = vand.u32 2147483647, %v5120_v59 }
 0x524   :  { %v1750_v32 = vadd.f32 %v1749_v17, %v1748_v6  ;;  %v1741_v52 = vsel %vm1740_vm12, %v3895_v34, %v1737_v30 }
 0x525   :  { %v1745_v19 = vor.u32 1.1754944e-38, %v1744_v42  ;;  %vm1743_vm13 = vcmp.eq.f32.partialorder %v1742_v63, 8.507059e+37 }
 0x526   :  { %3898 = vtanh.f32 %v1750_v32 }
 0x527   :  { %v1746_v0 = vsel %vm1743_vm13, %v1745_v19, %v1741_v52 }
 0x528   :  { %v2033_v15 = vpop.f32.mrf.mxu2  ;;  %v2074_v7 = vpop.f32.mrf.mxu3 }
 0x529   :  { %v5169_v40 = vadd.f32 %v5129_v9, %v2033_v15  ;;  %v5172_v13 = vadd.f32 %v5131_v11, %v2074_v7  ;;  %v1954_v23 = vpop.f32.mrf.mxu0  ;;  %v1995_v44 = vpop.f32.mrf.mxu1 }
 0x52a   :  { %v5175_v53 = vadd.f32 %v5108_v43, %v1954_v23  ;;  %v5178_v14 = vadd.f32 %v5115_v49, %v1995_v44 }
 0x52c   :  { %v3899_v59 = vpop.eup %3898 }
 0x52d   :  { %v5180_v58 = vmul.f32 %v3899_v59, %v1746_v0  ;;  %v1943_v0 = vadd.f32 %v5108_v43, %v5095_v2  ;;  %v2066_v2 = vadd.f32 %v5131_v11, %v5112_v35 }
 0x52f   :  { %5601 = vst [vmem:[#allocation36_spill] sm:$0xff] %v5180_v58 }
 0x530   :  { %v2036_v34 = vpop.f32.mrf.mxu2  ;;  %v2077_v17 = vpop.f32.mrf.mxu3 }
 0x531   :  { %v5183_v60 = vadd.f32 %v5129_v9, %v2036_v34  ;;  %v5186_v41 = vadd.f32 %v5131_v11, %v2077_v17  ;;  %v1957_v6 = vpop.f32.mrf.mxu0  ;;  %v1998_v32 = vpop.f32.mrf.mxu1  ;;  %v1984_v34 = vadd.f32 %v5115_v49, %v5097_v36 }
 0x532   :  { %v5189_v30 = vadd.f32 %v5108_v43, %v1957_v6  ;;  %v5192_v42 = vadd.f32 %v5115_v49, %v1998_v32 }
 0x533   :  { %5602 = vst [vmem:[#allocation37_spill] sm:$0xff] %v5183_v60 }
 0x534   :  { %5603 = vst [vmem:[#allocation38_spill] sm:$0xff] %v5186_v41 }
 0x535   :  { %5604 = vst [vmem:[#allocation39_spill] sm:$0xff] %v5189_v30 }
 0x536   :  { %5605 = vst [vmem:[#allocation40_spill] sm:$0xff] %v5192_v42 }
 0x538   :  { %v2039_v63 = vpop.f32.mrf.mxu2  ;;  %v2080_v15 = vpop.f32.mrf.mxu3 }
 0x539   :  { %v5195_v7 = vadd.f32 %v5129_v9, %v2039_v63  ;;  %v5198_v52 = vadd.f32 %v5131_v11, %v2080_v15  ;;  %v1960_v23 = vpop.f32.mrf.mxu0  ;;  %v2001_v44 = vpop.f32.mrf.mxu1 }
 0x53a   :  { %v5201_v19 = vadd.f32 %v5108_v43, %v1960_v23  ;;  %v5204_v59 = vadd.f32 %v5115_v49, %v2001_v44 }
 0x53b   :  { %5606 = vst [vmem:[#allocation41_spill] sm:$0xff] %v5195_v7 }
 0x53c   :  { %5607 = vst [vmem:[#allocation42_spill] sm:$0xff] %v5198_v52 }
 0x53d   :  { %5608 = vst [vmem:[#allocation43_spill] sm:$0xff] %v5201_v19 }
 0x53e   :  { %5609 = vst [vmem:[#allocation44_spill] sm:$0xff] %v5204_v59 }
 0x540   :  { %v2042_v17 = vpop.f32.mrf.mxu2  ;;  %v2083_v6 = vpop.f32.mrf.mxu3 }
 0x541   :  { %v5211_v32 = vadd.f32 %v5129_v9, %v2042_v17  ;;  %v5214_v63 = vadd.f32 %v5131_v11, %v2083_v6  ;;  %v2106_v15 = vpop.f32.mrf.mxu0  ;;  %v2127_v23 = vpop.f32.mrf.mxu1 }
 0x542   :  { %v2109_v19 = vadd.f32 %v2106_v15, %v1943_v0  ;;  %v2130_v58 = vadd.f32 %v2127_v23, %v1984_v34 }
 0x543   :  { %5610 = vst [vmem:[#allocation45_spill] sm:$0xff] %v5211_v32 }
 0x544   :  { %5611 = vst [vmem:[#allocation46_spill] sm:$0xff] %v5214_v63  ;;  %v3677_v44 = vmul.f32 -1.442695, %v2109_v19  ;;  %v3678_v59 = vmul.f32 -1.442695, %v2130_v58  ;;  %v2025_v58 = vadd.f32 %v5129_v9, %v5110_v37 }
 0x546   :  { %3900 = vpow2.f32 %v3677_v44 }
 0x547   :  { %3902 = vpow2.f32 %v3678_v59 }
 0x548   :  { %v2169_v36 = vpop.f32.mrf.mxu3  ;;  %v2148_v63 = vpop.f32.mrf.mxu2 }
 0x549   :  { %v2172_v43 = vadd.f32 %v2169_v36, %v2066_v2  ;;  %v2151_v15 = vadd.f32 %v2148_v63, %v2025_v58 }
 0x54b   :  { %v3679_v49 = vmul.f32 -1.442695, %v2172_v43 }
 0x54c   :  { %v3901_v7 = vpop.eup %3900 }
 0x54d   :  { %v3903_v17 = vpop.eup %3902  ;;  %v2176_v32 = vadd.f32 1.0, %v3901_v7  ;;  %3904 = vpow2.f32 %v3679_v49 }
 0x54e   :  { %v2195_v6 = vadd.f32 1.0, %v3903_v17 }
 0x54f   :  { %3906 = vrcp.f32 %v2176_v32  ;;  %v2188_v2 = vand.u32 2147483648, %v2176_v32  ;;  %v2186_v43 = vand.u32 2147483647, %v2176_v32  ;;  %vm2182_vm2 = vweird.f32 %v2176_v32 }
 0x550   :  { %3908 = vrcp.f32 %v2195_v6  ;;  %v2207_v7 = vand.u32 2147483648, %v2195_v6  ;;  %v2205_v17 = vand.u32 2147483647, %v2195_v6  ;;  %vm2201_vm3 = vweird.f32 %v2195_v6 }
 0x551   :  { %v2189_v9 = vor.u32 1.1754944e-38, %v2188_v2  ;;  %vm2187_vm6 = vcmp.eq.f32.partialorder %v2186_v43, 8.507059e+37 }
 0x552   :  { %v2208_v58 = vor.u32 1.1754944e-38, %v2207_v7  ;;  %vm2206_vm7 = vcmp.eq.f32.partialorder %v2205_v17, 8.507059e+37 }
 0x553   :  { %v3905_v0 = vpop.eup %3904 }
 0x554   :  { %v2215_v19 = vadd.f32 1.0, %v3905_v0 }
 0x555   :  { %v3907_v34 = vpop.eup %3906 }
 0x556   :  { %v3909_v35 = vpop.eup %3908  ;;  %v2178_v11 = vmul.f32 %v3907_v34, %v2176_v32  ;;  %3910 = vrcp.f32 %v2215_v19  ;;  %vm2183_vm14 = vweird.f32 %v3907_v34  ;;  %v2227_v2 = vand.u32 2147483648, %v2215_v19 }
 0x557   :  { %v2197_v59 = vmul.f32 %v3909_v35, %v2195_v6  ;;  %3912 = vtanh.f32 %v2151_v15  ;;  %vm2202_vm15 = vweird.f32 %v3909_v35  ;;  %vm2184_vm4 = vmor %vm2182_vm2, %vm2183_vm14  ;;  %vm2221_vm9 = vweird.f32 %v2215_v19 }
 0x558   :  { %v2179_v23 = vsub.f32 1.0, %v2178_v11  ;;  %vm2203_vm5 = vmor %vm2201_vm3, %vm2202_vm15  ;;  %v1898_v11 = vld [vmem:[#allocation14 + $0x10] sm:$0xff]  ;;  %v2225_v7 = vand.u32 2147483647, %v2215_v19  ;;  %v2228_v43 = vor.u32 1.1754944e-38, %v2227_v2 }
 0x559   :  { %v2198_v44 = vsub.f32 1.0, %v2197_v59 }
 0x55a   :  { %v2180_v36 = vmul.f32 %v3907_v34, %v2179_v23  ;;  %vm2226_vm11 = vcmp.eq.f32.partialorder %v2225_v7, 8.507059e+37 }
 0x55b   :  { %v2199_v49 = vmul.f32 %v3909_v35, %v2198_v44 }
 0x55c   :  { %v3911_v52 = vpop.eup %3910  ;;  %v2181_v37 = vadd.f32 %v3907_v34, %v2180_v36 }
 0x55d   :  { %v2200_v63 = vadd.f32 %v3909_v35, %v2199_v49  ;;  %v2217_v0 = vmul.f32 %v3911_v52, %v2215_v19  ;;  %v3913_v15 = vpop.eup %3912  ;;  %vm2222_vm8 = vweird.f32 %v3911_v52 }
 0x55e   :  { %v2185_v59 = vsel %vm2184_vm4, %v3907_v34, %v2181_v37  ;;  %vm2223_vm10 = vmor %vm2221_vm9, %vm2222_vm8 }
 0x55f   :  { %v2190_v23 = vsel %vm2187_vm6, %v2189_v9, %v2185_v59  ;;  %v2204_v42 = vsel %vm2203_vm5, %v3909_v35, %v2200_v63  ;;  %v2218_v44 = vsub.f32 1.0, %v2217_v0 }
 0x560   :  { %v2209_v30 = vsel %vm2206_vm7, %v2208_v58, %v2204_v42  ;;  %v2232_v60 = vmul.f32 %v3913_v15, %v2190_v23 }
 0x561   :  { %v2231_v41 = vmul.f32 %v2209_v30, %v1898_v11  ;;  %v2219_v36 = vmul.f32 %v3911_v52, %v2218_v44 }
 0x563   :  { %v5220_v32 = vadd.f32 %v2232_v60, %v2231_v41  ;;  %v2220_v6 = vadd.f32 %v3911_v52, %v2219_v36 }
 0x565   :  { %3914 = vtanh.f32 %v5220_v32  ;;  %v2224_v34 = vsel %vm2223_vm10, %v3911_v52, %v2220_v6 }
 0x566   :  { %v2229_v49 = vsel %vm2226_vm11, %v2228_v43, %v2224_v34 }
 0x56b   :  { %v3915_v35 = vpop.eup %3914 }
 0x56c   :  { %v2235_v17 = vmul.f32 %v3915_v35, %v2229_v49 }
 0x56e   :  { %3680 = vmatmul.msk.f32.vlgmr.msra.gmra.mxu0 %vm1903_vm0, %v2235_v17  ;;  %3681 = vmatmul.msk.f32.vlgmr.msrb.gmra.mxu1 %vm1903_vm0, %v2235_v17 }
 0x56f   :  { %3682 = vmatmul.msk.f32.vlgmr.msra.gmra.mxu2 %vm1903_vm0, %v2235_v17  ;;  %3683 = vmatmul.msk.f32.vlgmr.msra.gmra.mxu3 %vm1903_vm0, %v2235_v17 }
 0x570   :  { %2547 = vmatpush.msra.mxu0 %v4869_v8  ;;  %2568 = vmatpush.msrb.mxu1 %v4871_v56  ;;  %v5612_v8 = vld [vmem:[#allocation31_spill] sm:$0xff]  ;;  %v5613_v56 = vld [vmem:[#allocation28_spill] sm:$0xff] }
 0x571   :  { %2589 = vmatpush.msra.mxu2 %v4877_v62  ;;  %2610 = vmatpush.msra.mxu3 %v4875_v10 }
 0x572   :  { %2548 = vmatpush.msra.mxu0 %v4881_v5  ;;  %2569 = vmatpush.msrb.mxu1 %v4883_v48  ;;  %v5614_v5 = vld [vmem:[#allocation27_spill] sm:$0xff] }
 0x573   :  { %2590 = vmatpush.msra.mxu2 %v4889_v18  ;;  %2611 = vmatpush.msra.mxu3 %v4887_v38  ;;  %v5615_v38 = vld [vmem:[#allocation30_spill] sm:$0xff] }
 0x574   :  { %2549 = vmatpush.msra.mxu0 %v4892_v12  ;;  %2570 = vmatpush.msrb.mxu1 %v4894_v33 }
 0x575   :  { %2591 = vmatpush.msra.mxu2 %v4901_v28  ;;  %2612 = vmatpush.msra.mxu3 %v4899_v20  ;;  %v5616_v28 = vld [vmem:[#allocation33_spill] sm:$0xff] }
 0x576   :  { %2550 = vmatpush.msra.mxu0 %v4908_v46  ;;  %2571 = vmatpush.msrb.mxu1 %v4910_v39 }
 0x577   :  { %2592 = vmatpush.msra.mxu2 %v4917_v45  ;;  %2613 = vmatpush.msra.mxu3 %v4915_v25 }
 0x578   :  { %2551 = vmatpush.msra.mxu0 %v4921_v21  ;;  %2572 = vmatpush.msrb.mxu1 %v4923_v22 }
 0x579   :  { %2593 = vmatpush.msra.mxu2 %v4929_v26  ;;  %2614 = vmatpush.msra.mxu3 %v4927_v24 }
 0x57a   :  { %2552 = vmatpush.msra.mxu0 %v4932_v27  ;;  %2573 = vmatpush.msrb.mxu1 %v4934_v55 }
 0x57b   :  { %2594 = vmatpush.msra.mxu2 %v4960_v51  ;;  %2615 = vmatpush.msra.mxu3 %v4939_v50  ;;  %v5617_v50 = vld [vmem:[#allocation29_spill] sm:$0xff] }
 0x57c   :  { %2553 = vmatpush.msra.mxu0 %v4946_v57  ;;  %2574 = vmatpush.msrb.mxu1 %v4948_v1 }
 0x57d   :  { %2595 = vmatpush.msra.mxu2 %v4964_v4  ;;  %2616 = vmatpush.msra.mxu3 %v4952_v3 }
 0x57e   :  { %2554 = vmatpush.msra.mxu0 %v4956_v47  ;;  %2575 = vmatpush.msrb.mxu1 %v4958_v54 }
 0x57f   :  { %2596 = vmatpush.msra.mxu2 %v5612_v8  ;;  %2617 = vmatpush.msra.mxu3 %v5613_v56 }
 0x5eb   :  { %v2256_v10 = vpop.f32.mrf.mxu0  ;;  %v2277_v62 = vpop.f32.mrf.mxu1 }
 0x5ec   :  { %v2259_v48 = vadd.f32 %v2256_v10, %v5614_v5  ;;  %v2280_v18 = vadd.f32 %v2277_v62, %v5615_v38  ;;  %v5274_v5 = vld [vmem:[#allocation11 + $0x78] sm:$0xff] }
 0x5ed   :  { %v5280_v38 = vld [vmem:[#allocation11 + $0xf8] sm:$0xff] }
 0x5ee   :  { %v3684_v12 = vmul.f32 -1.442695, %v2259_v48  ;;  %v3685_v33 = vmul.f32 -1.442695, %v2280_v18  ;;  %v5277_v48 = vld [vmem:[#allocation11 + $0xb8] sm:$0xff]  ;;  %v5283_v18 = vld [vmem:[#allocation11 + $0x30] sm:$0xff] }
 0x5f0   :  { %3916 = vpow2.f32 %v3684_v12  ;;  %v5286_v12 = vld [vmem:[#allocation11 + $0x70] sm:$0xff] }
 0x5f1   :  { %3918 = vpow2.f32 %v3685_v33  ;;  %v5289_v33 = vld [vmem:[#allocation11 + $0xb0] sm:$0xff] }
 0x5f2   :  { %v2319_v20 = vpop.f32.mrf.mxu3  ;;  %v2298_v24 = vpop.f32.mrf.mxu2 }
 0x5f3   :  { %v2322_v46 = vadd.f32 %v2319_v20, %v5616_v28  ;;  %v2301_v57 = vadd.f32 %v2298_v24, %v5617_v50  ;;  %v5292_v20 = vld [vmem:[#allocation11 + $0xf0] sm:$0xff]  ;;  %v5295_v28 = vld [vmem:[#allocation11 + $0x28] sm:$0xff]  ;;  %v5316_v24 = vld [vmem:[#allocation11 + $0xe0] sm:$0xff] }
 0x5f4   :  { %v5328_v50 = vld [vmem:[#allocation11 + $0xd8] sm:$0xff] }
 0x5f5   :  { %v3686_v39 = vmul.f32 -1.442695, %v2322_v46  ;;  %v5298_v46 = vld [vmem:[#allocation11 + $0x68] sm:$0xff] }
 0x5f6   :  { %v3917_v25 = vpop.eup %3916 }
 0x5f7   :  { %v3919_v45 = vpop.eup %3918  ;;  %v2326_v21 = vadd.f32 1.0, %v3917_v25  ;;  %3920 = vpow2.f32 %v3686_v39  ;;  %v5301_v39 = vld [vmem:[#allocation11 + $0xa8] sm:$0xff] }
 0x5f8   :  { %v2345_v22 = vadd.f32 1.0, %v3919_v45  ;;  %v5304_v25 = vld [vmem:[#allocation11 + $0xe8] sm:$0xff]  ;;  %v5307_v45 = vld [vmem:[#allocation11 + $0x20] sm:$0xff] }
 0x5f9   :  { %3922 = vrcp.f32 %v2326_v21  ;;  %v2338_v4 = vand.u32 2147483648, %v2326_v21  ;;  %v2336_v30 = vand.u32 2147483647, %v2326_v21  ;;  %vm2332_vm14 = vweird.f32 %v2326_v21 }
 0x5fa   :  { %3924 = vrcp.f32 %v2345_v22  ;;  %v2357_v60 = vand.u32 2147483648, %v2345_v22  ;;  %v2355_v52 = vand.u32 2147483647, %v2345_v22  ;;  %vm2351_vm15 = vweird.f32 %v2345_v22 }
 0x5fb   :  { %v2339_v9 = vor.u32 1.1754944e-38, %v2338_v4  ;;  %vm2337_vm4 = vcmp.eq.f32.partialorder %v2336_v30, 8.507059e+37  ;;  %v5349_v4 = vld [vmem:[#allocation11 + $0x88] sm:$0xff]  ;;  %v5358_v30 = vld [vmem:[#allocation11 + $0x40] sm:$0xff] }
 0x5fc   :  { %v2358_v58 = vor.u32 1.1754944e-38, %v2357_v60  ;;  %vm2356_vm5 = vcmp.eq.f32.partialorder %v2355_v52, 8.507059e+37  ;;  %v5352_v60 = vld [vmem:[#allocation11 + $0xc8] sm:$0xff]  ;;  %v5364_v52 = vld [vmem:[#allocation11 + $0xc0] sm:$0xff] }
 0x5fd   :  { %v3921_v26 = vpop.eup %3920 }
 0x5fe   :  { %v2365_v27 = vadd.f32 1.0, %v3921_v26  ;;  %v5319_v26 = vld [vmem:[#allocation11 + $0x18] sm:$0xff] }
 0x5ff   :  { %v3923_v55 = vpop.eup %3922 }
 0x600   :  { %v3925_v1 = vpop.eup %3924  ;;  %v2328_v3 = vmul.f32 %v3923_v55, %v2326_v21  ;;  %3926 = vrcp.f32 %v2365_v27  ;;  %vm2333_vm12 = vweird.f32 %v3923_v55  ;;  %v2377_v35 = vand.u32 2147483648, %v2365_v27  ;;  %v5310_v21 = vld [vmem:[#allocation11 + $0x60] sm:$0xff] }
 0x601   :  { %v2347_v47 = vmul.f32 %v3925_v1, %v2345_v22  ;;  %3928 = vtanh.f32 %v2301_v57  ;;  %vm2352_vm13 = vweird.f32 %v3925_v1  ;;  %vm2334_vm2 = vmor %vm2332_vm14, %vm2333_vm12  ;;  %vm2371_vm7 = vweird.f32 %v2365_v27  ;;  %v5313_v22 = vld [vmem:[#allocation11 + $0xa0] sm:$0xff]  ;;  %v5331_v57 = vld [vmem:[#allocation11 + $0x10] sm:$0xff] }
 0x602   :  { %v2329_v54 = vsub.f32 1.0, %v2328_v3  ;;  %vm2353_vm3 = vmor %vm2351_vm15, %vm2352_vm13  ;;  %v2375_v49 = vand.u32 2147483647, %v2365_v27  ;;  %v2378_v8 = vor.u32 1.1754944e-38, %v2377_v35  ;;  %v5337_v3 = vld [vmem:[#allocation11 + $0x90] sm:$0xff] }
 0x603   :  { %v2348_v51 = vsub.f32 1.0, %v2347_v47  ;;  %v5340_v47 = vld [vmem:[#allocation11 + $0xd0] sm:$0xff] }
 0x604   :  { %v2330_v41 = vmul.f32 %v3923_v55, %v2329_v54  ;;  %vm2376_vm9 = vcmp.eq.f32.partialorder %v2375_v49, 8.507059e+37  ;;  %v5343_v54 = vld [vmem:[#allocation11 + $0x8] sm:$0xff] }
 0x605   :  { %v2349_v42 = vmul.f32 %v3925_v1, %v2348_v51  ;;  %v5346_v51 = vld [vmem:[#allocation11 + $0x48] sm:$0xff] }
 0x606   :  { %v3927_v19 = vpop.eup %3926  ;;  %v2331_v37 = vadd.f32 %v3923_v55, %v2330_v41  ;;  %v5355_v41 = vld [vmem:[#allocation11] sm:$0xff] }
 0x607   :  { %v2350_v63 = vadd.f32 %v3925_v1, %v2349_v42  ;;  %v2367_v0 = vmul.f32 %v3927_v19, %v2365_v27  ;;  %v3929_v59 = vpop.eup %3928  ;;  %vm2372_vm6 = vweird.f32 %v3927_v19  ;;  %v5322_v27 = vld [vmem:[#allocation11 + $0x58] sm:$0xff]  ;;  %v5361_v42 = vld [vmem:[#allocation11 + $0x80] sm:$0xff] }
 0x608   :  { %v2335_v11 = vsel %vm2334_vm2, %v3923_v55, %v2331_v37  ;;  %vm2373_vm8 = vmor %vm2371_vm7, %vm2372_vm6  ;;  %v5325_v55 = vld [vmem:[#allocation11 + $0x98] sm:$0xff] }
 0x609   :  { %v2340_v15 = vsel %vm2337_vm4, %v2339_v9, %v2335_v11  ;;  %v2354_v23 = vsel %vm2353_vm3, %v3925_v1, %v2350_v63  ;;  %v2368_v44 = vsub.f32 1.0, %v2367_v0  ;;  %v5334_v1 = vld [vmem:[#allocation11 + $0x50] sm:$0xff]  ;;  %v5618_v9 = vld [vmem:[#allocation34_spill] sm:$0xff] }
 0x60a   :  { %v2359_v36 = vsel %vm2356_vm5, %v2358_v58, %v2354_v23  ;;  %v2382_v6 = vmul.f32 %v3929_v59, %v2340_v15  ;;  %v5619_v0 = vld [vmem:[#allocation35_spill] sm:$0xff] }
 0x60b   :  { %v2381_v2 = vmul.f32 %v2359_v36, %v5220_v32  ;;  %v2369_v7 = vmul.f32 %v3927_v19, %v2368_v44  ;;  %v5271_v32 = vld [vmem:[#allocation11 + $0x38] sm:$0xff] }
 0x60d   :  { %v5264_v34 = vadd.f32 %v2382_v6, %v2381_v2  ;;  %v2370_v43 = vadd.f32 %v3927_v19, %v2369_v7 }
 0x60f   :  { %3930 = vtanh.f32 %v5264_v34  ;;  %v2374_v17 = vsel %vm2373_vm8, %v3927_v19, %v2370_v43 }
 0x610   :  { %v2379_v10 = vsel %vm2376_vm9, %v2378_v8, %v2374_v17 }
 0x615   :  { %v3931_v56 = vpop.eup %3930 }
 0x616   :  { %v2385_v62 = vmul.f32 %v3931_v56, %v2379_v10 }
 0x618   :  { %3687 = vmatmul.msk.f32.vlgmr.msrb.gmra.mxu0 %vm1903_vm0, %v2385_v62  ;;  %3688 = vmatmul.msk.f32.vlgmr.msra.gmra.mxu1 %vm1903_vm0, %v2385_v62 }
 0x619   :  { %3689 = vmatmul.msk.f32.vlgmr.msrb.gmra.mxu2 %vm1903_vm0, %v2385_v62  ;;  %3690 = vmatmul.msk.f32.vlgmr.msrb.gmra.mxu3 %vm1903_vm0, %v2385_v62 }
 0x61a   :  { %2697 = vmatpush.msrb.mxu0 %v5271_v32  ;;  %2718 = vmatpush.msra.mxu1 %v5274_v5 }
 0x61b   :  { %2739 = vmatpush.msrb.mxu2 %v5277_v48  ;;  %2760 = vmatpush.msrb.mxu3 %v5280_v38 }
 0x61c   :  { %2698 = vmatpush.msrb.mxu0 %v5283_v18  ;;  %2719 = vmatpush.msra.mxu1 %v5286_v12 }
 0x61d   :  { %2740 = vmatpush.msrb.mxu2 %v5289_v33  ;;  %2761 = vmatpush.msrb.mxu3 %v5292_v20 }
 0x61e   :  { %2699 = vmatpush.msrb.mxu0 %v5295_v28  ;;  %2720 = vmatpush.msra.mxu1 %v5298_v46 }
 0x61f   :  { %2741 = vmatpush.msrb.mxu2 %v5301_v39  ;;  %2762 = vmatpush.msrb.mxu3 %v5304_v25 }
 0x620   :  { %2700 = vmatpush.msrb.mxu0 %v5307_v45  ;;  %2721 = vmatpush.msra.mxu1 %v5310_v21 }
 0x621   :  { %2742 = vmatpush.msrb.mxu2 %v5313_v22  ;;  %2763 = vmatpush.msrb.mxu3 %v5316_v24 }
 0x622   :  { %2701 = vmatpush.msrb.mxu0 %v5319_v26  ;;  %2722 = vmatpush.msra.mxu1 %v5322_v27 }
 0x623   :  { %2743 = vmatpush.msrb.mxu2 %v5325_v55  ;;  %2764 = vmatpush.msrb.mxu3 %v5328_v50 }
 0x624   :  { %2702 = vmatpush.msrb.mxu0 %v5331_v57  ;;  %2723 = vmatpush.msra.mxu1 %v5334_v1 }
 0x625   :  { %2744 = vmatpush.msrb.mxu2 %v5337_v3  ;;  %2765 = vmatpush.msrb.mxu3 %v5340_v47 }
 0x626   :  { %2703 = vmatpush.msrb.mxu0 %v5343_v54  ;;  %2724 = vmatpush.msra.mxu1 %v5346_v51 }
 0x627   :  { %2745 = vmatpush.msrb.mxu2 %v5349_v4  ;;  %2766 = vmatpush.msrb.mxu3 %v5352_v60 }
 0x628   :  { %2704 = vmatpush.msrb.mxu0 %v5355_v41  ;;  %2725 = vmatpush.msra.mxu1 %v5358_v30 }
 0x629   :  { %2746 = vmatpush.msrb.mxu2 %v5361_v42  ;;  %2767 = vmatpush.msrb.mxu3 %v5364_v52 }
 0x695   :  { %v2406_v19 = vpop.f32.mrf.mxu0  ;;  %v2427_v37 = vpop.f32.mrf.mxu1 }
 0x696   :  { %v2409_v63 = vadd.f32 %v2406_v19, %v5618_v9  ;;  %v2430_v58 = vadd.f32 %v2427_v37, %v5619_v0 }
 0x698   :  { %v3691_v11 = vmul.f32 -1.442695, %v2409_v63  ;;  %v3692_v59 = vmul.f32 -1.442695, %v2430_v58 }
 0x69a   :  { %3932 = vpow2.f32 %v3691_v11 }
 0x69b   :  { %3934 = vpow2.f32 %v3692_v59 }
 0x69c   :  { %v2469_v15 = vpop.f32.mrf.mxu3  ;;  %v2448_v43 = vpop.f32.mrf.mxu2 }
 0x69d   :  { %v2472_v23 = vadd.f32 %v2469_v15, %v5157_v16  ;;  %v2451_v8 = vadd.f32 %v2448_v43, %v5154_v61 }
 0x69f   :  { %v3693_v44 = vmul.f32 -1.442695, %v2472_v23 }
 0x6a0   :  { %v3933_v36 = vpop.eup %3932 }
 0x6a1   :  { %v3935_v6 = vpop.eup %3934  ;;  %v2476_v2 = vadd.f32 1.0, %v3933_v36  ;;  %3936 = vpow2.f32 %v3693_v44 }
 0x6a2   :  { %v2495_v7 = vadd.f32 1.0, %v3935_v6 }
 0x6a3   :  { %3938 = vrcp.f32 %v2476_v2  ;;  %v2488_v37 = vand.u32 2147483648, %v2476_v2  ;;  %v2486_v0 = vand.u32 2147483647, %v2476_v2  ;;  %vm2482_vm12 = vweird.f32 %v2476_v2 }
 0x6a4   :  { %3940 = vrcp.f32 %v2495_v7  ;;  %v2507_v9 = vand.u32 2147483648, %v2495_v7  ;;  %v2505_v11 = vand.u32 2147483647, %v2495_v7  ;;  %vm2501_vm13 = vweird.f32 %v2495_v7 }
 0x6a5   :  { %v2489_v61 = vor.u32 1.1754944e-38, %v2488_v37  ;;  %vm2487_vm2 = vcmp.eq.f32.partialorder %v2486_v0, 8.507059e+37 }
 0x6a6   :  { %v2508_v36 = vor.u32 1.1754944e-38, %v2507_v9  ;;  %vm2506_vm3 = vcmp.eq.f32.partialorder %v2505_v11, 8.507059e+37 }
 0x6a7   :  { %v3937_v35 = vpop.eup %3936 }
 0x6a8   :  { %v2515_v49 = vadd.f32 1.0, %v3937_v35 }
 0x6a9   :  { %v3939_v17 = vpop.eup %3938 }
 0x6aa   :  { %v3941_v56 = vpop.eup %3940  ;;  %v2478_v10 = vmul.f32 %v3939_v17, %v2476_v2  ;;  %3942 = vrcp.f32 %v2515_v49  ;;  %vm2483_vm10 = vweird.f32 %v3939_v17  ;;  %v2527_v37 = vand.u32 2147483648, %v2515_v49 }
 0x6ab   :  { %v2497_v62 = vmul.f32 %v3941_v56, %v2495_v7  ;;  %3944 = vtanh.f32 %v2451_v8  ;;  %vm2502_vm11 = vweird.f32 %v3941_v56  ;;  %vm2484_vm14 = vmor %vm2482_vm12, %vm2483_vm10  ;;  %vm2521_vm5 = vweird.f32 %v2515_v49 }
 0x6ac   :  { %v2479_v19 = vsub.f32 1.0, %v2478_v10  ;;  %vm2503_vm15 = vmor %vm2501_vm13, %vm2502_vm11  ;;  %v2528_v0 = vor.u32 1.1754944e-38, %v2527_v37 }
 0x6ad   :  { %v2498_v16 = vsub.f32 1.0, %v2497_v62 }
 0x6ae   :  { %v2480_v63 = vmul.f32 %v3939_v17, %v2479_v19 }
 0x6af   :  { %v2499_v58 = vmul.f32 %v3941_v56, %v2498_v16 }
 0x6b0   :  { %v3943_v59 = vpop.eup %3942  ;;  %v2481_v15 = vadd.f32 %v3939_v17, %v2480_v63 }
 0x6b1   :  { %v2500_v23 = vadd.f32 %v3941_v56, %v2499_v58  ;;  %v2517_v44 = vmul.f32 %v3943_v59, %v2515_v49  ;;  %v3945_v43 = vpop.eup %3944  ;;  %vm2522_vm4 = vweird.f32 %v3943_v59 }
 0x6b2   :  { %v2485_v6 = vsel %vm2484_vm14, %v3939_v17, %v2481_v15  ;;  %v2525_v17 = vand.u32 2147483647, %v2515_v49  ;;  %vm2523_vm6 = vmor %vm2521_vm5, %vm2522_vm4 }
 0x6b3   :  { %v2490_v35 = vsel %vm2487_vm2, %v2489_v61, %v2485_v6  ;;  %v2504_v8 = vsel %vm2503_vm15, %v3941_v56, %v2500_v23  ;;  %v2518_v10 = vsub.f32 1.0, %v2517_v44 }
 0x6b4   :  { %v2509_v62 = vsel %vm2506_vm3, %v2508_v36, %v2504_v8  ;;  %v2532_v19 = vmul.f32 %v3945_v43, %v2490_v35  ;;  %vm2526_vm7 = vcmp.eq.f32.partialorder %v2525_v17, 8.507059e+37 }
 0x6b5   :  { %v2531_v16 = vmul.f32 %v2509_v62, %v5264_v34  ;;  %v2519_v63 = vmul.f32 %v3943_v59, %v2518_v10 }
 0x6b7   :  { %v5372_v2 = vadd.f32 %v2532_v19, %v2531_v16  ;;  %v2520_v7 = vadd.f32 %v3943_v59, %v2519_v63 }
 0x6b9   :  { %3946 = vtanh.f32 %v5372_v2  ;;  %v2524_v9 = vsel %vm2523_vm6, %v3943_v59, %v2520_v7 }
 0x6ba   :  { %v2529_v58 = vsel %vm2526_vm7, %v2528_v0, %v2524_v9 }
 0x6bf   :  { %v3947_v56 = vpop.eup %3946 }
 0x6c0   :  { %v2535_v11 = vmul.f32 %v3947_v56, %v2529_v58 }
 0x6c2   :  { %3694 = vmatmul.msk.f32.vlgmr.msra.gmra.mxu0 %vm1903_vm0, %v2535_v11  ;;  %3695 = vmatmul.msk.f32.vlgmr.msrb.gmra.mxu1 %vm1903_vm0, %v2535_v11 }
 0x6c3   :  { %3696 = vmatmul.msk.f32.vlgmr.msra.gmra.mxu2 %vm1903_vm0, %v2535_v11  ;;  %3697 = vmatmul.msk.f32.vlgmr.msra.gmra.mxu3 %vm1903_vm0, %v2535_v11 }
 0x6c4   :  { %2847 = vmatpush.msra.mxu0 %v5271_v32  ;;  %2868 = vmatpush.msrb.mxu1 %v5274_v5 }
 0x6c5   :  { %2889 = vmatpush.msra.mxu2 %v5277_v48  ;;  %2910 = vmatpush.msra.mxu3 %v5280_v38 }
 0x6c6   :  { %2848 = vmatpush.msra.mxu0 %v5283_v18  ;;  %2869 = vmatpush.msrb.mxu1 %v5286_v12 }
 0x6c7   :  { %2890 = vmatpush.msra.mxu2 %v5289_v33  ;;  %2911 = vmatpush.msra.mxu3 %v5292_v20 }
 0x6c8   :  { %2849 = vmatpush.msra.mxu0 %v5295_v28  ;;  %2870 = vmatpush.msrb.mxu1 %v5298_v46 }
 0x6c9   :  { %2891 = vmatpush.msra.mxu2 %v5301_v39  ;;  %2912 = vmatpush.msra.mxu3 %v5304_v25 }
 0x6ca   :  { %2850 = vmatpush.msra.mxu0 %v5307_v45  ;;  %2871 = vmatpush.msrb.mxu1 %v5310_v21 }
 0x6cb   :  { %2892 = vmatpush.msra.mxu2 %v5313_v22  ;;  %2913 = vmatpush.msra.mxu3 %v5316_v24 }
 0x6cc   :  { %2851 = vmatpush.msra.mxu0 %v5319_v26  ;;  %2872 = vmatpush.msrb.mxu1 %v5322_v27 }
 0x6cd   :  { %2893 = vmatpush.msra.mxu2 %v5325_v55  ;;  %2914 = vmatpush.msra.mxu3 %v5328_v50 }
 0x6ce   :  { %2852 = vmatpush.msra.mxu0 %v5331_v57  ;;  %2873 = vmatpush.msrb.mxu1 %v5334_v1 }
 0x6cf   :  { %2894 = vmatpush.msra.mxu2 %v5337_v3  ;;  %2915 = vmatpush.msra.mxu3 %v5340_v47 }
 0x6d0   :  { %2853 = vmatpush.msra.mxu0 %v5343_v54  ;;  %2874 = vmatpush.msrb.mxu1 %v5346_v51 }
 0x6d1   :  { %2895 = vmatpush.msra.mxu2 %v5349_v4  ;;  %2916 = vmatpush.msra.mxu3 %v5352_v60 }
 0x6d2   :  { %2854 = vmatpush.msra.mxu0 %v5355_v41  ;;  %2875 = vmatpush.msrb.mxu1 %v5358_v30 }
 0x6d3   :  { %2896 = vmatpush.msra.mxu2 %v5361_v42  ;;  %2917 = vmatpush.msra.mxu3 %v5364_v52 }
 0x73f   :  { %v2556_v34 = vpop.f32.mrf.mxu0  ;;  %v2577_v49 = vpop.f32.mrf.mxu1 }
 0x740   :  { %v2559_v59 = vadd.f32 %v2556_v34, %v5160_v31  ;;  %v2580_v15 = vadd.f32 %v2577_v49, %v5163_v29 }
 0x742   :  { %v3698_v61 = vmul.f32 -1.442695, %v2559_v59  ;;  %v3699_v23 = vmul.f32 -1.442695, %v2580_v15 }
 0x744   :  { %3948 = vpow2.f32 %v3698_v61 }
 0x745   :  { %3950 = vpow2.f32 %v3699_v23 }
 0x746   :  { %v2619_v44 = vpop.f32.mrf.mxu3  ;;  %v2598_v62 = vpop.f32.mrf.mxu2 }
 0x747   :  { %v2622_v36 = vadd.f32 %v2619_v44, %v5172_v13  ;;  %v2601_v29 = vadd.f32 %v2598_v62, %v5169_v40 }
 0x749   :  { %v3700_v6 = vmul.f32 -1.442695, %v2622_v36 }
 0x74a   :  { %v3949_v43 = vpop.eup %3948 }
 0x74b   :  { %v3951_v35 = vpop.eup %3950  ;;  %v2626_v8 = vadd.f32 1.0, %v3949_v43  ;;  %3952 = vpow2.f32 %v3700_v6 }
 0x74c   :  { %v2645_v10 = vadd.f32 1.0, %v3951_v35 }
 0x74d   :  { %3954 = vrcp.f32 %v2626_v8  ;;  %v2638_v9 = vand.u32 2147483648, %v2626_v8  ;;  %v2636_v58 = vand.u32 2147483647, %v2626_v8  ;;  %vm2632_vm10 = vweird.f32 %v2626_v8 }
 0x74e   :  { %3956 = vrcp.f32 %v2645_v10  ;;  %v2657_v0 = vand.u32 2147483648, %v2645_v10  ;;  %v2655_v34 = vand.u32 2147483647, %v2645_v10  ;;  %vm2651_vm11 = vweird.f32 %v2645_v10 }
 0x74f   :  { %v2639_v40 = vor.u32 1.1754944e-38, %v2638_v9  ;;  %vm2637_vm14 = vcmp.eq.f32.partialorder %v2636_v58, 8.507059e+37 }
 0x750   :  { %v2658_v23 = vor.u32 1.1754944e-38, %v2657_v0  ;;  %vm2656_vm15 = vcmp.eq.f32.partialorder %v2655_v34, 8.507059e+37 }
 0x751   :  { %v3953_v19 = vpop.eup %3952 }
 0x752   :  { %v2665_v31 = vadd.f32 1.0, %v3953_v19 }
 0x753   :  { %v3955_v16 = vpop.eup %3954 }
 0x754   :  { %v3957_v63 = vpop.eup %3956  ;;  %v2628_v7 = vmul.f32 %v3955_v16, %v2626_v8  ;;  %3958 = vrcp.f32 %v2665_v31  ;;  %vm2633_vm8 = vweird.f32 %v3955_v16  ;;  %vm2671_vm3 = vweird.f32 %v2665_v31 }
 0x755   :  { %v2647_v37 = vmul.f32 %v3957_v63, %v2645_v10  ;;  %3960 = vtanh.f32 %v2601_v29  ;;  %vm2652_vm9 = vweird.f32 %v3957_v63  ;;  %vm2634_vm12 = vmor %vm2632_vm10, %vm2633_vm8 }
 0x756   :  { %v2629_v17 = vsub.f32 1.0, %v2628_v7  ;;  %vm2653_vm13 = vmor %vm2651_vm11, %vm2652_vm9 }
 0x757   :  { %v2648_v13 = vsub.f32 1.0, %v2647_v37  ;;  %v2677_v37 = vand.u32 2147483648, %v2665_v31 }
 0x758   :  { %v2630_v56 = vmul.f32 %v3955_v16, %v2629_v17 }
 0x759   :  { %v2649_v11 = vmul.f32 %v3957_v63, %v2648_v13  ;;  %v2678_v13 = vor.u32 1.1754944e-38, %v2677_v37  ;;  %v1807_v37 = vld [vmem:[#allocation10 + $0x178] sm:$0xff] }
 0x75a   :  { %v3959_v49 = vpop.eup %3958  ;;  %v2631_v59 = vadd.f32 %v3955_v16, %v2630_v56 }
 0x75b   :  { %v2650_v15 = vadd.f32 %v3957_v63, %v2649_v11  ;;  %v2667_v61 = vmul.f32 %v3959_v49, %v2665_v31  ;;  %v3961_v36 = vpop.eup %3960  ;;  %vm2672_vm2 = vweird.f32 %v3959_v49 }
 0x75c   :  { %v2635_v44 = vsel %vm2634_vm12, %v3955_v16, %v2631_v59  ;;  %v2675_v16 = vand.u32 2147483647, %v2665_v31  ;;  %vm2673_vm4 = vmor %vm2671_vm3, %vm2672_vm2 }
 0x75d   :  { %v2640_v6 = vsel %vm2637_vm14, %v2639_v40, %v2635_v44  ;;  %v2654_v43 = vsel %vm2653_vm13, %v3957_v63, %v2650_v15  ;;  %v2668_v35 = vsub.f32 1.0, %v2667_v61 }
 0x75e   :  { %v2659_v62 = vsel %vm2656_vm15, %v2658_v23, %v2654_v43  ;;  %v2682_v19 = vmul.f32 %v3961_v36, %v2640_v6  ;;  %vm2676_vm5 = vcmp.eq.f32.partialorder %v2675_v16, 8.507059e+37  ;;  %v1823_v16 = vld [vmem:[#allocation10 + $0x1f8] sm:$0xff] }
 0x75f   :  { %v2681_v29 = vmul.f32 %v2659_v62, %v5372_v2  ;;  %v2669_v7 = vmul.f32 %v3959_v49, %v2668_v35 }
 0x761   :  { %v5416_v8 = vadd.f32 %v2682_v19, %v2681_v29  ;;  %v2670_v10 = vadd.f32 %v3959_v49, %v2669_v7 }
 0x763   :  { %3962 = vtanh.f32 %v5416_v8  ;;  %v2674_v17 = vsel %vm2673_vm4, %v3959_v49, %v2670_v10  ;;  %v1799_v10 = vld [vmem:[#allocation10 + $0x138] sm:$0xff] }
 0x764   :  { %v2679_v9 = vsel %vm2676_vm5, %v2678_v13, %v2674_v17 }
 0x769   :  { %v3963_v63 = vpop.eup %3962 }
 0x76a   :  { %v2685_v0 = vmul.f32 %v3963_v63, %v2679_v9  ;;  %v1814_v63 = vld [vmem:[#allocation10 + $0x1b0] sm:$0xff] }
 0x76b   :  { %v5622_v9 = vld [vmem:[#allocation39_spill] sm:$0xff] }
 0x76c   :  { %3701 = vmatmul.msk.f32.vlgmr.msrb.gmra.mxu0 %vm1903_vm0, %v2685_v0  ;;  %3702 = vmatmul.msk.f32.vlgmr.msra.gmra.mxu1 %vm1903_vm0, %v2685_v0 }
 0x76d   :  { %3703 = vmatmul.msk.f32.vlgmr.msrb.gmra.mxu2 %vm1903_vm0, %v2685_v0  ;;  %3704 = vmatmul.msk.f32.vlgmr.msrb.gmra.mxu3 %vm1903_vm0, %v2685_v0 }
 0x76e   :  { %3039 = vmatpush.msrb.mxu2 %v5277_v48  ;;  %2997 = vmatpush.msrb.mxu0 %v5271_v32 }
 0x76f   :  { %3018 = vmatpush.msra.mxu1 %v5274_v5  ;;  %3060 = vmatpush.msrb.mxu3 %v5280_v38 }
 0x770   :  { %3040 = vmatpush.msrb.mxu2 %v5289_v33  ;;  %2998 = vmatpush.msrb.mxu0 %v5283_v18 }
 0x771   :  { %3019 = vmatpush.msra.mxu1 %v5286_v12  ;;  %3061 = vmatpush.msrb.mxu3 %v5292_v20  ;;  %v5620_v20 = vld [vmem:[#allocation38_spill] sm:$0xff] }
 0x772   :  { %3041 = vmatpush.msrb.mxu2 %v5301_v39  ;;  %2999 = vmatpush.msrb.mxu0 %v5295_v28 }
 0x773   :  { %3020 = vmatpush.msra.mxu1 %v5298_v46  ;;  %3062 = vmatpush.msrb.mxu3 %v5304_v25 }
 0x774   :  { %3042 = vmatpush.msrb.mxu2 %v5313_v22  ;;  %3000 = vmatpush.msrb.mxu0 %v5307_v45 }
 0x775   :  { %3021 = vmatpush.msra.mxu1 %v5310_v21  ;;  %3063 = vmatpush.msrb.mxu3 %v5316_v24 }
 0x776   :  { %3043 = vmatpush.msrb.mxu2 %v5325_v55  ;;  %3001 = vmatpush.msrb.mxu0 %v5319_v26 }
 0x777   :  { %3022 = vmatpush.msra.mxu1 %v5322_v27  ;;  %3064 = vmatpush.msrb.mxu3 %v5328_v50 }
 0x778   :  { %3044 = vmatpush.msrb.mxu2 %v5337_v3  ;;  %3002 = vmatpush.msrb.mxu0 %v5331_v57 }
 0x779   :  { %3023 = vmatpush.msra.mxu1 %v5334_v1  ;;  %3065 = vmatpush.msrb.mxu3 %v5340_v47 }
 0x77a   :  { %3045 = vmatpush.msrb.mxu2 %v5349_v4  ;;  %3003 = vmatpush.msrb.mxu0 %v5343_v54 }
 0x77b   :  { %3024 = vmatpush.msra.mxu1 %v5346_v51  ;;  %3066 = vmatpush.msrb.mxu3 %v5352_v60 }
 0x77c   :  { %3046 = vmatpush.msrb.mxu2 %v5361_v42  ;;  %3004 = vmatpush.msrb.mxu0 %v5355_v41 }
 0x77d   :  { %3025 = vmatpush.msra.mxu1 %v5358_v30  ;;  %3067 = vmatpush.msrb.mxu3 %v5364_v52 }
 0x7e9   :  { %v2706_v32 = vpop.f32.mrf.mxu0  ;;  %v2727_v5 = vpop.f32.mrf.mxu1 }
 0x7ea   :  { %v2709_v48 = vadd.f32 %v2706_v32, %v5175_v53  ;;  %v2730_v38 = vadd.f32 %v2727_v5, %v5178_v14  ;;  %v5621_v14 = vld [vmem:[#allocation37_spill] sm:$0xff]  ;;  %v5623_v32 = vld [vmem:[#allocation40_spill] sm:$0xff] }
 0x7ec   :  { %v3705_v18 = vmul.f32 -1.442695, %v2709_v48  ;;  %v3706_v12 = vmul.f32 -1.442695, %v2730_v38  ;;  %v1798_v48 = vld [vmem:[#allocation10 + $0x130] sm:$0xff] }
 0x7ed   :  { %v1806_v38 = vld [vmem:[#allocation10 + $0x170] sm:$0xff] }
 0x7ee   :  { %3964 = vpow2.f32 %v3705_v18  ;;  %v1822_v18 = vld [vmem:[#allocation10 + $0x1f0] sm:$0xff] }
 0x7ef   :  { %3966 = vpow2.f32 %v3706_v12  ;;  %v1813_v12 = vld [vmem:[#allocation10 + $0x1a8] sm:$0xff] }
 0x7f0   :  { %v2769_v33 = vpop.f32.mrf.mxu3  ;;  %v2748_v22 = vpop.f32.mrf.mxu2 }
 0x7f1   :  { %v2772_v28 = vadd.f32 %v2769_v33, %v5620_v20  ;;  %v2751_v27 = vadd.f32 %v2748_v22, %v5621_v14  ;;  %v1820_v22 = vld [vmem:[#allocation10 + $0x1e0] sm:$0xff]  ;;  %v1819_v14 = vld [vmem:[#allocation10 + $0x1d8] sm:$0xff] }
 0x7f3   :  { %v3707_v46 = vmul.f32 -1.442695, %v2772_v28  ;;  %v1797_v28 = vld [vmem:[#allocation10 + $0x128] sm:$0xff] }
 0x7f4   :  { %v3965_v39 = vpop.eup %3964 }
 0x7f5   :  { %v3967_v25 = vpop.eup %3966  ;;  %v2776_v45 = vadd.f32 1.0, %v3965_v39  ;;  %3968 = vpow2.f32 %v3707_v46  ;;  %v1805_v46 = vld [vmem:[#allocation10 + $0x168] sm:$0xff] }
 0x7f6   :  { %v2795_v21 = vadd.f32 1.0, %v3967_v25  ;;  %v1821_v39 = vld [vmem:[#allocation10 + $0x1e8] sm:$0xff]  ;;  %v1812_v25 = vld [vmem:[#allocation10 + $0x1a0] sm:$0xff] }
 0x7f7   :  { %3970 = vrcp.f32 %v2776_v45  ;;  %v2788_v47 = vand.u32 2147483648, %v2776_v45  ;;  %v2786_v4 = vand.u32 2147483647, %v2776_v45  ;;  %vm2782_vm8 = vweird.f32 %v2776_v45 }
 0x7f8   :  { %3972 = vrcp.f32 %v2795_v21  ;;  %v2807_v54 = vand.u32 2147483648, %v2795_v21  ;;  %v2805_v41 = vand.u32 2147483647, %v2795_v21  ;;  %vm2801_vm9 = vweird.f32 %v2795_v21 }
 0x7f9   :  { %v2789_v52 = vor.u32 1.1754944e-38, %v2788_v47  ;;  %vm2787_vm12 = vcmp.eq.f32.partialorder %v2786_v4, 8.507059e+37  ;;  %v1818_v47 = vld [vmem:[#allocation10 + $0x1d0] sm:$0xff]  ;;  %v1801_v4 = vld [vmem:[#allocation10 + $0x148] sm:$0xff] }
 0x7fa   :  { %v2808_v56 = vor.u32 1.1754944e-38, %v2807_v54  ;;  %vm2806_vm13 = vcmp.eq.f32.partialorder %v2805_v41, 8.507059e+37  ;;  %v1809_v54 = vld [vmem:[#allocation10 + $0x188] sm:$0xff] }
 0x7fb   :  { %v3969_v24 = vpop.eup %3968  ;;  %v1817_v41 = vld [vmem:[#allocation10 + $0x1c8] sm:$0xff] }
 0x7fc   :  { %v2815_v53 = vadd.f32 1.0, %v3969_v24  ;;  %v1811_v24 = vld [vmem:[#allocation10 + $0x198] sm:$0xff] }
 0x7fd   :  { %v3971_v26 = vpop.eup %3970 }
 0x7fe   :  { %v3973_v55 = vpop.eup %3972  ;;  %v2778_v50 = vmul.f32 %v3971_v26, %v2776_v45  ;;  %3974 = vrcp.f32 %v2815_v53  ;;  %vm2783_vm6 = vweird.f32 %v3971_v26  ;;  %v2827_v6 = vand.u32 2147483648, %v2815_v53  ;;  %v1796_v45 = vld [vmem:[#allocation10 + $0x120] sm:$0xff] }
 0x7ff   :  { %v2797_v57 = vmul.f32 %v3973_v55, %v2795_v21  ;;  %3976 = vtanh.f32 %v2751_v27  ;;  %vm2802_vm7 = vweird.f32 %v3973_v55  ;;  %vm2784_vm10 = vmor %vm2782_vm8, %vm2783_vm6  ;;  %vm2821_vm15 = vweird.f32 %v2815_v53  ;;  %v1804_v21 = vld [vmem:[#allocation10 + $0x160] sm:$0xff] }
 0x800   :  { %v2779_v1 = vsub.f32 1.0, %v2778_v50  ;;  %vm2803_vm11 = vmor %vm2801_vm9, %vm2802_vm7  ;;  %v2825_v43 = vand.u32 2147483647, %v2815_v53  ;;  %v2828_v62 = vor.u32 1.1754944e-38, %v2827_v6  ;;  %v1794_v50 = vld [vmem:[#allocation10 + $0x110] sm:$0xff] }
 0x801   :  { %v2798_v3 = vsub.f32 1.0, %v2797_v57  ;;  %v1802_v57 = vld [vmem:[#allocation10 + $0x150] sm:$0xff] }
 0x802   :  { %v2780_v51 = vmul.f32 %v3971_v26, %v2779_v1  ;;  %vm2826_vm3 = vcmp.eq.f32.partialorder %v2825_v43, 8.507059e+37  ;;  %v5624_v1 = vld [vmem:[#allocation42_spill] sm:$0xff] }
 0x803   :  { %v2799_v60 = vmul.f32 %v3973_v55, %v2798_v3 }
 0x804   :  { %v3975_v30 = vpop.eup %3974  ;;  %v2781_v42 = vadd.f32 %v3971_v26, %v2780_v51  ;;  %v1793_v51 = vld [vmem:[#allocation10 + $0x108] sm:$0xff] }
 0x805   :  { %v2800_v2 = vadd.f32 %v3973_v55, %v2799_v60  ;;  %v2817_v31 = vmul.f32 %v3975_v30, %v2815_v53  ;;  %v3977_v11 = vpop.eup %3976  ;;  %vm2822_vm14 = vweird.f32 %v3975_v30  ;;  %v1795_v53 = vld [vmem:[#allocation10 + $0x118] sm:$0xff] }
 0x806   :  { %v2785_v58 = vsel %vm2784_vm10, %v3971_v26, %v2781_v42  ;;  %vm2823_vm2 = vmor %vm2821_vm15, %vm2822_vm14  ;;  %v1803_v26 = vld [vmem:[#allocation10 + $0x158] sm:$0xff] }
 0x807   :  { %v2790_v34 = vsel %vm2787_vm12, %v2789_v52, %v2785_v58  ;;  %v2804_v49 = vsel %vm2803_vm11, %v3973_v55, %v2800_v2  ;;  %v2818_v59 = vsub.f32 1.0, %v2817_v31  ;;  %v1810_v55 = vld [vmem:[#allocation10 + $0x190] sm:$0xff]  ;;  %v1800_v58 = vld [vmem:[#allocation10 + $0x140] sm:$0xff] }
 0x808   :  { %v2809_v40 = vsel %vm2806_vm13, %v2808_v56, %v2804_v49  ;;  %v2832_v15 = vmul.f32 %v3977_v11, %v2790_v34  ;;  %v1792_v56 = vld [vmem:[#allocation10 + $0x100] sm:$0xff] }
 0x809   :  { %v2831_v61 = vmul.f32 %v2809_v40, %v5416_v8  ;;  %v2819_v23 = vmul.f32 %v3975_v30, %v2818_v59  ;;  %v1815_v8 = vld [vmem:[#allocation10 + $0x1b8] sm:$0xff]  ;;  %v1816_v11 = vld [vmem:[#allocation10 + $0x1c0] sm:$0xff] }
 0x80b   :  { %v5460_v44 = vadd.f32 %v2832_v15, %v2831_v61  ;;  %v2820_v36 = vadd.f32 %v3975_v30, %v2819_v23  ;;  %v5625_v15 = vld [vmem:[#allocation41_spill] sm:$0xff] }
 0x80d   :  { %3978 = vtanh.f32 %v5460_v44  ;;  %v2824_v35 = vsel %vm2823_vm2, %v3975_v30, %v2820_v36  ;;  %v1808_v30 = vld [vmem:[#allocation10 + $0x180] sm:$0xff] }
 0x80e   :  { %v2829_v29 = vsel %vm2826_vm3, %v2828_v62, %v2824_v35 }
 0x813   :  { %v3979_v19 = vpop.eup %3978 }
 0x814   :  { %v2835_v7 = vmul.f32 %v3979_v19, %v2829_v29 }
 0x816   :  { %3708 = vmatmul.msk.f32.vlgmr.msra.gmra.mxu0 %vm1903_vm0, %v2835_v7  ;;  %3709 = vmatmul.msk.f32.vlgmr.msrb.gmra.mxu1 %vm1903_vm0, %v2835_v7 }
 0x817   :  { %3710 = vmatmul.msk.f32.vlgmr.msra.gmra.mxu2 %vm1903_vm0, %v2835_v7  ;;  %3711 = vmatmul.msk.f32.vlgmr.msra.gmra.mxu3 %vm1903_vm0, %v2835_v7 }
 0x818   :  { %3193 = vmatpush.msra.mxu2 %v1815_v8  ;;  %3147 = vmatpush.msra.mxu0 %v1799_v10 }
 0x819   :  { %3170 = vmatpush.msrb.mxu1 %v1807_v37  ;;  %3216 = vmatpush.msra.mxu3 %v1823_v16 }
 0x81a   :  { %3194 = vmatpush.msra.mxu2 %v1814_v63  ;;  %3148 = vmatpush.msra.mxu0 %v1798_v48 }
 0x81b   :  { %3171 = vmatpush.msrb.mxu1 %v1806_v38  ;;  %3217 = vmatpush.msra.mxu3 %v1822_v18 }
 0x81c   :  { %3195 = vmatpush.msra.mxu2 %v1813_v12  ;;  %3149 = vmatpush.msra.mxu0 %v1797_v28 }
 0x81d   :  { %3172 = vmatpush.msrb.mxu1 %v1805_v46  ;;  %3218 = vmatpush.msra.mxu3 %v1821_v39 }
 0x81e   :  { %3196 = vmatpush.msra.mxu2 %v1812_v25  ;;  %3150 = vmatpush.msra.mxu0 %v1796_v45 }
 0x81f   :  { %3173 = vmatpush.msrb.mxu1 %v1804_v21  ;;  %3219 = vmatpush.msra.mxu3 %v1820_v22 }
 0x820   :  { %3197 = vmatpush.msra.mxu2 %v1811_v24  ;;  %3151 = vmatpush.msra.mxu0 %v1795_v53 }
 0x821   :  { %3174 = vmatpush.msrb.mxu1 %v1803_v26  ;;  %3220 = vmatpush.msra.mxu3 %v1819_v14  ;;  %v1879_v26 = vld [vmem:[#allocation11 + $0x1b8] sm:$0xff] }
 0x822   :  { %3198 = vmatpush.msra.mxu2 %v1810_v55  ;;  %3152 = vmatpush.msra.mxu0 %v1794_v50  ;;  %v1863_v14 = vld [vmem:[#allocation11 + $0x138] sm:$0xff]  ;;  %v1878_v55 = vld [vmem:[#allocation11 + $0x1b0] sm:$0xff] }
 0x823   :  { %3175 = vmatpush.msrb.mxu1 %v1802_v57  ;;  %3221 = vmatpush.msra.mxu3 %v1818_v47  ;;  %v1862_v50 = vld [vmem:[#allocation11 + $0x130] sm:$0xff]  ;;  %v1861_v47 = vld [vmem:[#allocation11 + $0x128] sm:$0xff] }
 0x824   :  { %3199 = vmatpush.msra.mxu2 %v1809_v54  ;;  %3153 = vmatpush.msra.mxu0 %v1793_v51  ;;  %v1870_v57 = vld [vmem:[#allocation11 + $0x170] sm:$0xff]  ;;  %v1869_v54 = vld [vmem:[#allocation11 + $0x168] sm:$0xff] }
 0x825   :  { %3176 = vmatpush.msrb.mxu1 %v1801_v4  ;;  %3222 = vmatpush.msra.mxu3 %v1817_v41  ;;  %v1885_v51 = vld [vmem:[#allocation11 + $0x1e8] sm:$0xff]  ;;  %v1876_v4 = vld [vmem:[#allocation11 + $0x1a0] sm:$0xff] }
 0x826   :  { %3200 = vmatpush.msra.mxu2 %v1808_v30  ;;  %3154 = vmatpush.msra.mxu0 %v1792_v56  ;;  %v1868_v41 = vld [vmem:[#allocation11 + $0x160] sm:$0xff]  ;;  %v1883_v56 = vld [vmem:[#allocation11 + $0x1d8] sm:$0xff] }
 0x827   :  { %3177 = vmatpush.msrb.mxu1 %v1800_v58  ;;  %3223 = vmatpush.msra.mxu3 %v1816_v11  ;;  %v1884_v30 = vld [vmem:[#allocation11 + $0x1e0] sm:$0xff]  ;;  %v1874_v58 = vld [vmem:[#allocation11 + $0x190] sm:$0xff] }
 0x828   :  { %v1858_v11 = vld [vmem:[#allocation11 + $0x110] sm:$0xff] }
 0x893   :  { %v2856_v17 = vpop.f32.mrf.mxu0  ;;  %v2877_v13 = vpop.f32.mrf.mxu1 }
 0x894   :  { %v2859_v0 = vadd.f32 %v2856_v17, %v5622_v9  ;;  %v2880_v5 = vadd.f32 %v2877_v13, %v5623_v32 }
 0x896   :  { %v3712_v33 = vmul.f32 -1.442695, %v2859_v0  ;;  %v3713_v20 = vmul.f32 -1.442695, %v2880_v5 }
 0x898   :  { %3980 = vpow2.f32 %v3712_v33 }
 0x899   :  { %3982 = vpow2.f32 %v3713_v20 }
 0x89a   :  { %v2919_v27 = vpop.f32.mrf.mxu3  ;;  %v2898_v34 = vpop.f32.mrf.mxu2 }
 0x89b   :  { %v2922_v3 = vadd.f32 %v2919_v27, %v5624_v1  ;;  %v2901_v61 = vadd.f32 %v2898_v34, %v5625_v15  ;;  %v1887_v27 = vld [vmem:[#allocation11 + $0x1f8] sm:$0xff]  ;;  %v1886_v1 = vld [vmem:[#allocation11 + $0x1f0] sm:$0xff]  ;;  %v1865_v15 = vld [vmem:[#allocation11 + $0x148] sm:$0xff] }
 0x89c   :  { %v1866_v34 = vld [vmem:[#allocation11 + $0x150] sm:$0xff] }
 0x89d   :  { %v3714_v60 = vmul.f32 -1.442695, %v2922_v3  ;;  %v1877_v3 = vld [vmem:[#allocation11 + $0x1a8] sm:$0xff] }
 0x89e   :  { %v3981_v42 = vpop.eup %3980 }
 0x89f   :  { %v3983_v52 = vpop.eup %3982  ;;  %v2926_v2 = vadd.f32 1.0, %v3981_v42  ;;  %3984 = vpow2.f32 %v3714_v60  ;;  %v1860_v60 = vld [vmem:[#allocation11 + $0x120] sm:$0xff]  ;;  %v1875_v42 = vld [vmem:[#allocation11 + $0x198] sm:$0xff] }
 0x8a0   :  { %v2945_v31 = vadd.f32 1.0, %v3983_v52  ;;  %v1859_v52 = vld [vmem:[#allocation11 + $0x118] sm:$0xff] }
 0x8a1   :  { %3986 = vrcp.f32 %v2926_v2  ;;  %v2938_v62 = vand.u32 2147483648, %v2926_v2  ;;  %v2936_v7 = vand.u32 2147483647, %v2926_v2  ;;  %vm2932_vm6 = vweird.f32 %v2926_v2 }
 0x8a2   :  { %3988 = vrcp.f32 %v2945_v31  ;;  %v2957_v19 = vand.u32 2147483648, %v2945_v31  ;;  %v2955_v10 = vand.u32 2147483647, %v2945_v31  ;;  %vm2951_vm7 = vweird.f32 %v2945_v31 }
 0x8a3   :  { %v2939_v17 = vor.u32 1.1754944e-38, %v2938_v62  ;;  %vm2937_vm10 = vcmp.eq.f32.partialorder %v2936_v7, 8.507059e+37  ;;  %v1897_v62 = vld [vmem:[#allocation14 + $0x8] sm:$0xff]  ;;  %v3455_v7 = vld [vmem:[#allocation16 + $0x30] sm:$0xff] }
 0x8a4   :  { %v2958_v9 = vor.u32 1.1754944e-38, %v2957_v19  ;;  %vm2956_vm11 = vcmp.eq.f32.partialorder %v2955_v10, 8.507059e+37  ;;  %v3385_v19 = vld [vmem:[%s5573_s11 + $0x38] sm:$0xff]  ;;  %v3380_v10 = vld [vmem:[%s5573_s11 + $0x10] sm:$0xff] }
 0x8a5   :  { %v3985_v49 = vpop.eup %3984 }
 0x8a6   :  { %v2965_v59 = vadd.f32 1.0, %v3985_v49  ;;  %v1882_v49 = vld [vmem:[#allocation11 + $0x1d0] sm:$0xff] }
 0x8a7   :  { %v3987_v40 = vpop.eup %3986 }
 0x8a8   :  { %v3989_v23 = vpop.eup %3988  ;;  %v2928_v36 = vmul.f32 %v3987_v40, %v2926_v2  ;;  %3990 = vrcp.f32 %v2965_v59  ;;  %vm2933_vm4 = vweird.f32 %v3987_v40  ;;  %v2977_v39 = vand.u32 2147483648, %v2965_v59  ;;  %v1867_v2 = vld [vmem:[#allocation11 + $0x158] sm:$0xff] }
 0x8a9   :  { %v2947_v6 = vmul.f32 %v3989_v23, %v2945_v31  ;;  %3992 = vtanh.f32 %v2901_v61  ;;  %vm2952_vm5 = vweird.f32 %v3989_v23  ;;  %vm2934_vm8 = vmor %vm2932_vm6, %vm2933_vm4  ;;  %vm2971_vm13 = vweird.f32 %v2965_v59  ;;  %v4074_v31 = vld [vmem:[#allocation2 + $0x30] sm:$0xff]  ;;  %v1881_v61 = vld [vmem:[#allocation11 + $0x1c8] sm:$0xff] }
 0x8aa   :  { %v2929_v43 = vsub.f32 1.0, %v2928_v36  ;;  %vm2953_vm9 = vmor %vm2951_vm7, %vm2952_vm5  ;;  %v2975_v25 = vand.u32 2147483647, %v2965_v59  ;;  %v2978_v21 = vor.u32 1.1754944e-38, %v2977_v39  ;;  %v1856_v36 = vld [vmem:[#allocation11 + $0x100] sm:$0xff] }
 0x8ab   :  { %v2948_v35 = vsub.f32 1.0, %v2947_v6  ;;  %v1864_v6 = vld [vmem:[#allocation11 + $0x140] sm:$0xff] }
 0x8ac   :  { %v2930_v29 = vmul.f32 %v3987_v40, %v2929_v43  ;;  %vm2976_vm15 = vcmp.eq.f32.partialorder %v2975_v25, 8.507059e+37  ;;  %v1880_v43 = vld [vmem:[#allocation11 + $0x1c0] sm:$0xff]  ;;  %v5629_v25 = vld [vmem:[#allocation44_spill] sm:$0xff] }
 0x8ad   :  { %v2949_v8 = vmul.f32 %v3989_v23, %v2948_v35  ;;  %v3456_v35 = vld [vmem:[#allocation16 + $0x38] sm:$0xff] }
 0x8ae   :  { %v3991_v37 = vpop.eup %3990  ;;  %v2931_v16 = vadd.f32 %v3987_v40, %v2930_v29  ;;  %v3381_v29 = vld [vmem:[%s5573_s11 + $0x18] sm:$0xff] }
 0x8af   :  { %v2950_v13 = vadd.f32 %v3989_v23, %v2949_v8  ;;  %v2967_v63 = vmul.f32 %v3991_v37, %v2965_v59  ;;  %v3993_v32 = vpop.eup %3992  ;;  %vm2972_vm12 = vweird.f32 %v3991_v37  ;;  %v1873_v59 = vld [vmem:[#allocation11 + $0x188] sm:$0xff]  ;;  %v3384_v8 = vld [vmem:[%s5573_s11 + $0x30] sm:$0xff] }
 0x8b0   :  { %v2935_v0 = vsel %vm2934_vm8, %v3987_v40, %v2931_v16  ;;  %vm2973_vm14 = vmor %vm2971_vm13, %vm2972_vm12  ;;  %v1857_v40 = vld [vmem:[#allocation11 + $0x108] sm:$0xff]  ;;  %v3383_v16 = vld [vmem:[%s5573_s11 + $0x28] sm:$0xff] }
 0x8b1   :  { %v2940_v5 = vsel %vm2937_vm10, %v2939_v17, %v2935_v0  ;;  %v2954_v48 = vsel %vm2953_vm9, %v3989_v23, %v2950_v13  ;;  %v2968_v38 = vsub.f32 1.0, %v2967_v63  ;;  %v1872_v23 = vld [vmem:[#allocation11 + $0x180] sm:$0xff]  ;;  %v3379_v17 = vld [vmem:[%s5573_s11 + $0x8] sm:$0xff]  ;;  %v3453_v13 = vld [vmem:[#allocation16 + $0x20] sm:$0xff] }
 0x8b2   :  { %v2959_v18 = vsel %vm2956_vm11, %v2958_v9, %v2954_v48  ;;  %v2982_v12 = vmul.f32 %v3993_v32, %v2940_v5  ;;  %v3382_v63 = vld [vmem:[%s5573_s11 + $0x20] sm:$0xff]  ;;  %v3452_v0 = vld [vmem:[#allocation16 + $0x18] sm:$0xff]  ;;  %v3451_v32 = vld [vmem:[#allocation16 + $0x10] sm:$0xff] }
 0x8b3   :  { %v2981_v33 = vmul.f32 %v2959_v18, %v5460_v44  ;;  %v2969_v20 = vmul.f32 %v3991_v37, %v2968_v38  ;;  %v1871_v44 = vld [vmem:[#allocation11 + $0x178] sm:$0xff]  ;;  %v3378_v9 = vld [vmem:[%s5573_s11] sm:$0xff]  ;;  %v3450_v38 = vld [vmem:[#allocation16 + $0x8] sm:$0xff] }
 0x8b4   :  { %v5626_v5 = vld [vmem:[#allocation36_spill] sm:$0xff]  ;;  %v3449_v18 = vld [vmem:[#allocation16] sm:$0xff] }
 0x8b5   :  { %v5472_v28 = vadd.f32 %v2982_v12, %v2981_v33  ;;  %v2970_v46 = vadd.f32 %v3991_v37, %v2969_v20  ;;  %v5627_v48 = vld [vmem:[#allocation32_spill] sm:$0xff]  ;;  %v3448_v12 = vld [vmem:[%s5563_s1] sm:$0xff] }
 0x8b7   :  { %3994 = vtanh.f32 %v5472_v28  ;;  %v2974_v45 = vsel %vm2973_vm14, %v3991_v37, %v2970_v46  ;;  %v3454_v37 = vld [vmem:[#allocation16 + $0x28] sm:$0xff] }
 0x8b8   :  { %v2979_v24 = vsel %vm2976_vm15, %v2978_v21, %v2974_v45  ;;  %v5628_v46 = vld [vmem:[#allocation43_spill] sm:$0xff] }
 0x8bd   :  { %v3995_v22 = vpop.eup %3994 }
 0x8be   :  { %v2985_v53 = vmul.f32 %v3995_v22, %v2979_v24  ;;  %v3393_v24 = vld [vmem:[#allocation17 + $0x38] sm:$0xff] }
 0x8c0   :  { %3715 = vmatmul.msk.f32.vlgmr.msrb.gmra.mxu0 %vm1903_vm0, %v2985_v53  ;;  %3716 = vmatmul.msk.f32.vlgmr.msra.gmra.mxu1 %vm1903_vm0, %v2985_v53 }
 0x8c1   :  { %3717 = vmatmul.msk.f32.vlgmr.msrb.gmra.mxu2 %vm1903_vm0, %v2985_v53  ;;  %3718 = vmatmul.msk.f32.vlgmr.msrb.gmra.mxu3 %vm1903_vm0, %v2985_v53  ;;  %v3392_v53 = vld [vmem:[#allocation17 + $0x30] sm:$0xff] }
 0x8c2   :  { %3281 = vmatpush.msrb.mxu2 %v1879_v26  ;;  %3239 = vmatpush.msrb.mxu0 %v1863_v14  ;;  %v5630_v14 = vld [vmem:[#allocation46_spill] sm:$0xff] }
 0x8c3   :  { %3260 = vmatpush.msra.mxu1 %v1871_v44  ;;  %3302 = vmatpush.msrb.mxu3 %v1887_v27  ;;  %v3391_v27 = vld [vmem:[#allocation17 + $0x28] sm:$0xff] }
 0x8c4   :  { %3282 = vmatpush.msrb.mxu2 %v1878_v55  ;;  %3240 = vmatpush.msrb.mxu0 %v1862_v50 }
 0x8c5   :  { %3261 = vmatpush.msra.mxu1 %v1870_v57  ;;  %3303 = vmatpush.msrb.mxu3 %v1886_v1  ;;  %v3390_v57 = vld [vmem:[#allocation17 + $0x20] sm:$0xff] }
 0x8c6   :  { %3283 = vmatpush.msrb.mxu2 %v1877_v3  ;;  %3241 = vmatpush.msrb.mxu0 %v1861_v47 }
 0x8c7   :  { %3262 = vmatpush.msra.mxu1 %v1869_v54  ;;  %3304 = vmatpush.msrb.mxu3 %v1885_v51  ;;  %v3389_v51 = vld [vmem:[#allocation17 + $0x18] sm:$0xff] }
 0x8c8   :  { %3284 = vmatpush.msrb.mxu2 %v1876_v4  ;;  %3242 = vmatpush.msrb.mxu0 %v1860_v60  ;;  %v3388_v60 = vld [vmem:[#allocation17 + $0x10] sm:$0xff] }
 0x8c9   :  { %3263 = vmatpush.msra.mxu1 %v1868_v41  ;;  %3305 = vmatpush.msrb.mxu3 %v1884_v30  ;;  %v3387_v30 = vld [vmem:[#allocation17 + $0x8] sm:$0xff] }
 0x8ca   :  { %3722 = vmatmul.msk.f32.vlgmr.msra.gmra.mxu0 %vm1903_vm0, %v4074_v31  ;;  %3723 = vmatmul.msk.f32.vlgmr.msrb.gmra.mxu1 %vm1903_vm0, %v4074_v31 }
 0x8cb   :  { %3725 = vmatmul.msk.f32.vlgmr.msra.gmra.mxu3 %vm1903_vm0, %v4074_v31  ;;  %3285 = vmatpush.msrb.mxu2 %v1875_v42  ;;  %v3767_v42 = vld [vmem:[#allocation13 + $0x4] ss:$0 sm:$0xff] }
 0x8cc   :  { %3243 = vmatpush.msrb.mxu0 %v1859_v52  ;;  %3264 = vmatpush.msra.mxu1 %v1867_v2  ;;  %v3768_v52 = vld [vmem:[#allocation13 + $0x5] ss:$0 sm:$0xff] }
 0x8cd   :  { %3306 = vmatpush.msrb.mxu3 %v1883_v56  ;;  %3286 = vmatpush.msrb.mxu2 %v1874_v58  ;;  %v5631_v56 = vld [vmem:[#allocation45_spill] sm:$0xff] }
 0x8ce   :  { %3244 = vmatpush.msrb.mxu0 %v1858_v11  ;;  %3265 = vmatpush.msra.mxu1 %v1866_v34  ;;  %v3386_v11 = vld [vmem:[#allocation17] sm:$0xff] }
 0x8cf   :  { %3307 = vmatpush.msrb.mxu3 %v1882_v49  ;;  %3287 = vmatpush.msrb.mxu2 %v1873_v59  ;;  %v3769_v59 = vld [vmem:[#allocation13 + $0x7] ss:$0 sm:$0xff] }
 0x8d0   :  { %3245 = vmatpush.msrb.mxu0 %v1857_v40  ;;  %3266 = vmatpush.msra.mxu1 %v1865_v15  ;;  %v3401_v15 = vld [vmem:[#allocation17 + $0x78] sm:$0xff] }
 0x8d1   :  { %3308 = vmatpush.msrb.mxu3 %v1881_v61  ;;  %3724 = vmatmul.msk.f32.vlgmr.msra.gmra.mxu2 %vm1903_vm0, %v4074_v31 }
 0x8d2   :  { %3288 = vmatpush.msrb.mxu2 %v1872_v23  ;;  %3246 = vmatpush.msrb.mxu0 %v1856_v36 }
 0x8d3   :  { %3267 = vmatpush.msra.mxu1 %v1864_v6  ;;  %3309 = vmatpush.msrb.mxu3 %v1880_v43 }
 0x8d4   :  { %3468 = vmatpush.msra.mxu2 %v3456_v35  ;;  %3726 = vmatmul.msk.f32.vlgmr.msrb.gmra.mxu0 %vm1903_vm0, %v1897_v62 }
 0x8d5   :  { %3727 = vmatmul.msk.f32.vlgmr.msra.gmra.mxu1 %vm1903_vm0, %v1897_v62  ;;  %3729 = vmatmul.msk.f32.vlgmr.msrb.gmra.mxu3 %vm1903_vm0, %v1897_v62 }
 0x8d6   :  { %3417 = vmatpush.msra.mxu0 %v3385_v19  ;;  %3440 = vmatpush.msrb.mxu1 %v3381_v29 }
 0x8d7   :  { %3469 = vmatpush.msra.mxu2 %v3455_v7  ;;  %3492 = vmatpush.msra.mxu3 %v3393_v24 }
 0x8d8   :  { %3418 = vmatpush.msra.mxu0 %v3384_v8  ;;  %3441 = vmatpush.msrb.mxu1 %v3380_v10 }
 0x8d9   :  { %3470 = vmatpush.msra.mxu2 %v3454_v37  ;;  %3493 = vmatpush.msra.mxu3 %v3392_v53 }
 0x8da   :  { %3419 = vmatpush.msra.mxu0 %v3383_v16  ;;  %3442 = vmatpush.msrb.mxu1 %v3379_v17 }
 0x8db   :  { %3471 = vmatpush.msra.mxu2 %v3453_v13  ;;  %3494 = vmatpush.msra.mxu3 %v3391_v27  ;;  %v3399_v13 = vld [vmem:[#allocation17 + $0x68] sm:$0xff] }
 0x8dc   :  { %3728 = vmatmul.msk.f32.vlgmr.msrb.gmra.mxu2 %vm1903_vm0, %v1897_v62  ;;  %3420 = vmatpush.msra.mxu0 %v3382_v63  ;;  %v3400_v62 = vld [vmem:[#allocation17 + $0x70] sm:$0xff] }
 0x8dd   :  { %3443 = vmatpush.msrb.mxu1 %v3378_v9  ;;  %3472 = vmatpush.msra.mxu2 %v3452_v0 }
 0x8de   :  { %3733 = vmatmul.msk.f32.vlgmr.msra.gmra.mxu0 %vm460_vm1, %v5626_v5  ;;  %3734 = vmatmul.msk.f32.vlgmr.msrb.gmra.mxu1 %vm460_vm1, %v5627_v48  ;;  %v3398_v48 = vld [vmem:[#allocation17 + $0x60] sm:$0xff] }
 0x8df   :  { %3473 = vmatpush.msra.mxu2 %v3451_v32  ;;  %3495 = vmatpush.msra.mxu3 %v3390_v57 }
 0x8e0   :  { %3516 = vmatpush.msrb.mxu0 %v3401_v15 }
 0x8e1   :  { %3474 = vmatpush.msra.mxu2 %v3450_v38  ;;  %3496 = vmatpush.msra.mxu3 %v3389_v51 }
 0x8e2   :  { %3517 = vmatpush.msrb.mxu0 %v3400_v62 }
 0x8e3   :  { %3475 = vmatpush.msra.mxu2 %v3449_v18  ;;  %3497 = vmatpush.msra.mxu3 %v3388_v60 }
 0x8e4   :  { %3735 = vmatmul.msk.f32.vlgmr.msra.gmra.mxu2 %vm1903_vm0, %v3448_v12  ;;  %3518 = vmatpush.msrb.mxu0 %v3399_v13 }
 0x8e5   :  { %3498 = vmatpush.msra.mxu3 %v3387_v30 }
 0x8e6   :  { %3519 = vmatpush.msrb.mxu0 %v3398_v48 }
 0x8e7   :  { %3499 = vmatpush.msra.mxu3 %v3386_v11 }
 0x93d   :  { %v3006_v33 = vpop.f32.mrf.mxu0  ;;  %v3027_v20 = vpop.f32.mrf.mxu1 }
 0x93e   :  { %v3009_v39 = vadd.f32 %v3006_v33, %v5628_v46  ;;  %v3030_v45 = vadd.f32 %v3027_v20, %v5629_v25  ;;  %v3397_v33 = vld [vmem:[#allocation17 + $0x58] sm:$0xff] }
 0x93f   :  { %3520 = vmatpush.msrb.mxu0 %v3397_v33 }
 0x940   :  { %v3719_v21 = vmul.f32 -1.442695, %v3009_v39  ;;  %v3720_v22 = vmul.f32 -1.442695, %v3030_v45  ;;  %v3396_v45 = vld [vmem:[#allocation17 + $0x50] sm:$0xff] }
 0x941   :  { %3521 = vmatpush.msrb.mxu0 %v3396_v45 }
 0x942   :  { %3996 = vpow2.f32 %v3719_v21 }
 0x943   :  { %3998 = vpow2.f32 %v3720_v22 }
 0x944   :  { %v3069_v26 = vpop.f32.mrf.mxu3  ;;  %v3048_v41 = vpop.f32.mrf.mxu2 }
 0x945   :  { %v3072_v44 = vadd.f32 %v3069_v26, %v5630_v14  ;;  %v3051_v58 = vadd.f32 %v3048_v41, %v5631_v56 }
 0x947   :  { %v3721_v55 = vmul.f32 -1.442695, %v3072_v44  ;;  %v3156_v50 = vpop.f32.mrf.mxu0  ;;  %v3179_v3 = vpop.f32.mrf.mxu1  ;;  %v3395_v44 = vld [vmem:[#allocation17 + $0x48] sm:$0xff] }
 0x948   :  { %v3997_v1 = vpop.eup %3996  ;;  %v3157_v36 = vadd.f32 %v3767_v42, %v3156_v50  ;;  %v3180_v6 = vadd.f32 %v3768_v52, %v3179_v3  ;;  %3522 = vmatpush.msrb.mxu0 %v3395_v44  ;;  %v3770_v42 = vld [vmem:[#allocation13 + $0x6] ss:$0 sm:$0xff] }
 0x949   :  { %v3999_v47 = vpop.eup %3998  ;;  %v5522_v54 = vadd.f32 1.0, %v3997_v1  ;;  %4000 = vpow2.f32 %v3721_v55 }
 0x94a   :  { %v5524_v4 = vadd.f32 1.0, %v3999_v47  ;;  %v3394_v47 = vld [vmem:[#allocation17 + $0x40] sm:$0xff] }
 0x94b   :  { %4002 = vrcp.f32 %v5522_v54  ;;  %v3086_v29 = vand.u32 2147483647, %v5522_v54  ;;  %v3088_v16 = vand.u32 2147483648, %v5522_v54  ;;  %vm3082_vm4 = vweird.f32 %v5522_v54  ;;  %3523 = vmatpush.msrb.mxu0 %v3394_v47  ;;  %v3771_v47 = vld [vmem:[%s5576_s14] ss:$0 sm:$0xff] }
 0x94c   :  { %4004 = vrcp.f32 %v5524_v4  ;;  %v3107_v37 = vand.u32 2147483648, %v5524_v4  ;;  %v3105_v5 = vand.u32 2147483647, %v5524_v4  ;;  %vm3101_vm3 = vweird.f32 %v5524_v4 }
 0x94d   :  { %v3089_v46 = vor.u32 1.1754944e-38, %v3088_v16  ;;  %vm3087_vm7 = vcmp.eq.f32.partialorder %v3086_v29, 8.507059e+37 }
 0x94e   :  { %v3225_v2 = vpop.f32.mrf.mxu3  ;;  %v3108_v21 = vor.u32 1.1754944e-38, %v3107_v37  ;;  %vm3106_vm8 = vcmp.eq.f32.partialorder %v3105_v5, 8.507059e+37 }
 0x94f   :  { %v4001_v31 = vpop.eup %4000  ;;  %v3226_v17 = vadd.f32 %v3769_v59, %v3225_v2 }
 0x950   :  { %v5529_v34 = vadd.f32 1.0, %v4001_v31 }
 0x951   :  { %v4003_v49 = vpop.eup %4002  ;;  %v3248_v40 = vpop.f32.mrf.mxu0 }
 0x952   :  { %v4005_v61 = vpop.eup %4004  ;;  %v3078_v23 = vmul.f32 %v4003_v49, %v5522_v54  ;;  %4006 = vrcp.f32 %v5529_v34  ;;  %v3269_v43 = vpop.f32.mrf.mxu1  ;;  %v3251_v7 = vadd.f32 %v3248_v40, %v3157_v36  ;;  %vm3083_vm1 = vweird.f32 %v4003_v49 }
 0x953   :  { %v3097_v35 = vmul.f32 %v4005_v61, %v5524_v4  ;;  %4008 = vtanh.f32 %v3051_v58  ;;  %v3272_v8 = vadd.f32 %v3269_v43, %v3180_v6  ;;  %vm3102_vm2 = vweird.f32 %v4005_v61  ;;  %vm3084_vm5 = vmor %vm3082_vm4, %vm3083_vm1 }
 0x954   :  { %v3079_v19 = vsub.f32 1.0, %v3078_v23  ;;  %v3730_v9 = vmul.f32 -1.442695, %v3251_v7  ;;  %vm3103_vm6 = vmor %vm3101_vm3, %vm3102_vm2  ;;  %v3202_v3 = vpop.f32.mrf.mxu2  ;;  %vm3121_vm10 = vweird.f32 %v5529_v34  ;;  %v3125_v52 = vand.u32 2147483647, %v5529_v34 }
 0x955   :  { %v3098_v10 = vsub.f32 1.0, %v3097_v35  ;;  %v3731_v0 = vmul.f32 -1.442695, %v3272_v8  ;;  %v3203_v56 = vadd.f32 %v3770_v42, %v3202_v3 }
 0x956   :  { %v3080_v63 = vmul.f32 %v4003_v49, %v3079_v19  ;;  %4010 = vpow2.f32 %v3730_v9  ;;  %vm3126_vm12 = vcmp.eq.f32.partialorder %v3125_v52, 8.507059e+37 }
 0x957   :  { %v3099_v32 = vmul.f32 %v4005_v61, %v3098_v10  ;;  %4012 = vpow2.f32 %v3731_v0 }
 0x958   :  { %v5538_v38 = vpop.eup %4006  ;;  %v3081_v18 = vadd.f32 %v4003_v49, %v3080_v63  ;;  %v3311_v12 = vpop.f32.mrf.mxu3 }
 0x959   :  { %v4009_v20 = vpop.eup %4008  ;;  %v3100_v39 = vadd.f32 %v4005_v61, %v3099_v32  ;;  %v3117_v25 = vmul.f32 %v5538_v38, %v5529_v34  ;;  %v3314_v24 = vadd.f32 %v3311_v12, %v3226_v17  ;;  %vm3122_vm9 = vweird.f32 %v5538_v38  ;;  %v1899_v32 = vld [vmem:[#allocation14 + $0x18] sm:$0xff] }
 0x95a   :  { %v3085_v22 = vsel %vm3084_vm5, %v4003_v49, %v3081_v18  ;;  %vm3123_vm11 = vmor %vm3121_vm10, %vm3122_vm9 }
 0x95b   :  { %v3090_v53 = vsel %vm3087_vm7, %v3089_v46, %v3085_v22  ;;  %v3104_v26 = vsel %vm3103_vm6, %v4005_v61, %v3100_v39  ;;  %v3118_v14 = vsub.f32 1.0, %v3117_v25  ;;  %v3732_v50 = vmul.f32 -1.442695, %v3314_v24  ;;  %v3422_v44 = vpop.f32.mrf.mxu0 }
 0x95c   :  { %v3109_v27 = vsel %vm3106_vm8, %v3108_v21, %v3104_v26  ;;  %v3132_v55 = vmul.f32 %v4009_v20, %v3090_v53  ;;  %v4011_v54 = vpop.eup %4010 }
 0x95d   :  { %v3131_v57 = vmul.f32 %v3109_v27, %v5472_v28  ;;  %v3119_v1 = vmul.f32 %v5538_v38, %v3118_v14  ;;  %4014 = vpow2.f32 %v3732_v50  ;;  %v4013_v51 = vpop.eup %4012  ;;  %v3318_v60 = vadd.f32 1.0, %v4011_v54  ;;  %v3445_v27 = vpop.f32.mrf.mxu1 }
 0x95e   :  { %v3337_v30 = vadd.f32 1.0, %v4013_v51  ;;  %v3127_v28 = vand.u32 2147483648, %v5529_v34  ;;  %v3446_v50 = vadd.f32 %v3445_v27, %v3422_v44 }
 0x95f   :  { %v3133_v4 = vadd.f32 %v3132_v55, %v3131_v57  ;;  %v3120_v41 = vadd.f32 %v5538_v38, %v3119_v1  ;;  %v3290_v59 = vpop.f32.mrf.mxu2  ;;  %v3330_v62 = vand.u32 2147483648, %v3318_v60  ;;  %v3328_v8 = vand.u32 2147483647, %v3318_v60 }
 0x960   :  { %v3128_v58 = vor.u32 1.1754944e-38, %v3127_v28  ;;  %v3293_v61 = vadd.f32 %v3290_v59, %v3203_v56  ;;  %v3349_v29 = vand.u32 2147483648, %v3337_v30  ;;  %v3347_v16 = vand.u32 2147483647, %v3337_v30 }
 0x961   :  { %4016 = vtanh.f32 %v3133_v4  ;;  %v3124_v31 = vsel %vm3123_vm11, %v5538_v38, %v3120_v41  ;;  %vm3324_vm15 = vweird.f32 %v3318_v60  ;;  %vm3343_vm1 = vweird.f32 %v3337_v30 }
 0x962   :  { %4018 = vrcp.f32 %v3318_v60  ;;  %v3129_v40 = vsel %vm3126_vm12, %v3128_v58, %v3124_v31  ;;  %v3331_v63 = vor.u32 1.1754944e-38, %v3330_v62  ;;  %v3350_v0 = vor.u32 1.1754944e-38, %v3349_v29 }
 0x963   :  { %4020 = vrcp.f32 %v3337_v30  ;;  %v4015_v2 = vpop.eup %4014  ;;  %vm3329_vm4 = vcmp.eq.f32.partialorder %v3328_v8, 8.507059e+37  ;;  %vm3348_vm5 = vcmp.eq.f32.partialorder %v3347_v16, 8.507059e+37 }
 0x964   :  { %v3357_v11 = vadd.f32 1.0, %v4015_v2 }
 0x966   :  { %4022 = vrcp.f32 %v3357_v11  ;;  %v3369_v45 = vand.u32 2147483648, %v3357_v11  ;;  %vm3363_vm7 = vweird.f32 %v3357_v11  ;;  %v3367_v21 = vand.u32 2147483647, %v3357_v11 }
 0x967   :  { %v4017_v49 = vpop.eup %4016  ;;  %4024 = vtanh.f32 %v3293_v61  ;;  %v3477_v55 = vpop.f32.mrf.mxu2 }
 0x968   :  { %v4019_v15 = vpop.eup %4018  ;;  %v3135_v23 = vmul.f32 %v4017_v49, %v3129_v40  ;;  %v3370_v24 = vor.u32 1.1754944e-38, %v3369_v45  ;;  %vm3368_vm9 = vcmp.eq.f32.partialorder %v3367_v21, 8.507059e+37  ;;  %v3480_v1 = vadd.f32 %v3477_v55, %v3446_v50 }
 0x969   :  { %v4021_v36 = vpop.eup %4020  ;;  %v3320_v6 = vmul.f32 %v4019_v15, %v3318_v60  ;;  %vm3325_vm13 = vweird.f32 %v4019_v15 }
 0x96a   :  { %v3339_v34 = vmul.f32 %v4021_v36, %v3337_v30  ;;  %3736 = vmatmul.msk.f32.vlgmr.msra.gmra.mxu3 %vm1903_vm0, %v3135_v23  ;;  %vm3344_vm14 = vweird.f32 %v4021_v36  ;;  %vm3326_vm2 = vmor %vm3324_vm15, %vm3325_vm13 }
 0x96b   :  { %v3321_v43 = vsub.f32 1.0, %v3320_v6  ;;  %vm3345_vm3 = vmor %vm3343_vm1, %vm3344_vm14 }
 0x96c   :  { %v3340_v35 = vsub.f32 1.0, %v3339_v34  ;;  %v4023_v19 = vpop.eup %4022 }
 0x96d   :  { %v3322_v7 = vmul.f32 %v4019_v15, %v3321_v43  ;;  %v3359_v37 = vmul.f32 %v4023_v19, %v3357_v11  ;;  %v4025_v48 = vpop.eup %4024  ;;  %vm3364_vm6 = vweird.f32 %v4023_v19 }
 0x96e   :  { %v3341_v10 = vmul.f32 %v4021_v36, %v3340_v35  ;;  %vm3365_vm8 = vmor %vm3363_vm7, %vm3364_vm6 }
 0x96f   :  { %v3323_v17 = vadd.f32 %v4019_v15, %v3322_v7  ;;  %v3360_v13 = vsub.f32 1.0, %v3359_v37 }
 0x970   :  { %v3342_v9 = vadd.f32 %v4021_v36, %v3341_v10 }
 0x971   :  { %v3327_v5 = vsel %vm3326_vm2, %v4019_v15, %v3323_v17  ;;  %v3361_v12 = vmul.f32 %v4023_v19, %v3360_v13 }
 0x972   :  { %v3332_v38 = vsel %vm3329_vm4, %v3331_v63, %v3327_v5  ;;  %v3346_v18 = vsel %vm3345_vm3, %v4021_v36, %v3342_v9 }
 0x973   :  { %v3351_v33 = vsel %vm3348_vm5, %v3350_v0, %v3346_v18  ;;  %v3374_v20 = vmul.f32 %v4025_v48, %v3332_v38  ;;  %v3362_v25 = vadd.f32 %v4023_v19, %v3361_v12 }
 0x974   :  { %v3373_v46 = vmul.f32 %v3351_v33, %v1899_v32 }
 0x975   :  { %v3366_v22 = vsel %vm3365_vm8, %v4023_v19, %v3362_v25 }
 0x976   :  { %v3375_v39 = vadd.f32 %v3374_v20, %v3373_v46  ;;  %v3371_v26 = vsel %vm3368_vm9, %v3370_v24, %v3366_v22 }
 0x978   :  { %4026 = vtanh.f32 %v3375_v39 }
 0x97e   :  { %v4027_v53 = vpop.eup %4026 }
 0x97f   :  { %v3377_v14 = vmul.f32 %v4027_v53, %v3371_v26 }
 0x981   :  { %3737 = vmatmul.msk.f32.vlgmr.msrb.gmra.mxu0 %vm1903_vm0, %v3377_v14 }
 0x9ed   :  { %v3501_v57 = vpop.f32.mrf.mxu3 }
 0x9ee   :  { %v3504_v3 = vadd.f32 %v3501_v57, %v3480_v1 }
 0x9fe   :  { %v3525_v54 = vpop.f32.mrf.mxu0 }
 0x9ff   :  { %v3528_v51 = vadd.f32 %v3525_v54, %v3504_v3 }
 0xa01   :  { %v3533_v4 = vadd.f32 %v3771_v47, %v3528_v51 }
 0xa03   :  { %3534 = vst [vmem:[#allocation19] sm:$0xff] %v3533_v4 }
 0xa04   :  { %3545 = dma.vmem_to_hbm [thread:$0]  %s3541_s4, 128, %s3543_s21, [#allocation4]  }
 0xa05   :  { %4351 = dma.done.wait [#allocation4], 128  }
 0xa06   :  { %4352 = vsyncadd [#allocation4], 4294967168 }
 0xa07   :  { %3550 = vsyncpa [#allocation3], 1 }
 0xa08   :  { %3551 = vsyncpa [#allocation6], 1 }
 0xa09   :  { %3552 = vsyncpa [#allocation9], 1 }
 0xa0a   :  { %3553 = vsyncpa [#allocation12], 1 }
 0xa0b   :  { %3554 = vsyncpa [#allocation15], 1 }
 0xa0c   :  { %3555 = vsyncpa [#allocation18], 1 }
 0xa0d   :  { %3556 = vsyncpa [#allocation4], 1 }

</bundles_post_ra>
